<compile_context>
chip_gen: v7x
topology: tpu7x:2x2x1
jax: 0.10.0
libtpu: 0.0.40
codegen_flags: <defaults>
</compile_context>

<pallas_src>
import functools

import jax
import jax.numpy as jnp
from jax.experimental import pallas as pl
from jax.experimental.pallas import tpu as pltpu


# ----------------------------- linear (matmul + bias) ------------------------
def _linear_kernel(x_ref, w_ref, b_ref, o_ref):
    # x_ref: (TM, K), w_ref: (K, N), b_ref: (1, N) -> o_ref: (TM, N)
    acc = jnp.dot(x_ref[...], w_ref[...], preferred_element_type=jnp.float32)
    o_ref[...] = (acc + b_ref[...]).astype(o_ref.dtype)


def linear_pallas(x2d, w_kn, b_1n, *, tm=512):
    """x2d: (M, K), w_kn: (K, N), b_1n: (1, N) -> (M, N).

    Tiles the token (M) dimension so VMEM use stays bounded and the grid
    software-pipelines; weight and bias index-map to (0, 0) for every tile so
    they are DMA'd once and stay resident in VMEM.
    """
    M, K = x2d.shape
    _, N = w_kn.shape
    TM = M if M < tm else tm
    assert M % TM == 0, f"M={M} must be a multiple of the row tile TM={TM}"
    grid = (pl.cdiv(M, TM),)
    return pl.pallas_call(
        _linear_kernel,
        out_shape=jax.ShapeDtypeStruct((M, N), x2d.dtype),
        grid_spec=pltpu.PrefetchScalarGridSpec(
            num_scalar_prefetch=0,
            grid=grid,
            in_specs=[
                pl.BlockSpec((TM, K), lambda i: (i, 0)),   # streamed rows
                pl.BlockSpec((K, N), lambda i: (0, 0)),    # resident weight
                pl.BlockSpec((1, N), lambda i: (0, 0)),    # resident bias
            ],
            out_specs=pl.BlockSpec((TM, N), lambda i: (i, 0)),
        ),
        compiler_params=pltpu.CompilerParams(
            dimension_semantics=("parallel",),
            vmem_limit_bytes=32 * 1024 * 1024,
        ),
    )(x2d, w_kn, b_1n)


# ----------------------------- flash attention core --------------------------
def _flash_attn_kernel(q_ref, k_ref, v_ref, o_ref, m_sc, l_sc, acc_sc, *, scale):
    kv = pl.program_id(2)

    @pl.when(kv == 0)
    def _():
        m_sc[...] = jnp.full_like(m_sc, -jnp.inf)
        l_sc[...] = jnp.zeros_like(l_sc)
        acc_sc[...] = jnp.zeros_like(acc_sc)

    q = q_ref[...].astype(jnp.float32) * scale          # q = q * scale (as in spec)
    k = k_ref[...].astype(jnp.float32)
    v = v_ref[...].astype(jnp.float32)

    # (1, TQ, D) x (1, TK, D) -> (1, TQ, TK) scores on the MXU.
    s = jnp.einsum('bqd,bkd->bqk', q, k, preferred_element_type=jnp.float32)

    m_new = jnp.maximum(m_sc[...], s.max(axis=-1, keepdims=True))
    alpha = jnp.exp(m_sc[...] - m_new)
    p = jnp.exp(s - m_new)
    l_sc[...] = alpha * l_sc[...] + p.sum(axis=-1, keepdims=True)
    acc_sc[...] = alpha * acc_sc[...] + jnp.einsum(
        'bqk,bkd->bqd', p, v, preferred_element_type=jnp.float32)
    m_sc[...] = m_new

    @pl.when(kv == pl.num_programs(2) - 1)
    def _():
        o_ref[...] = (acc_sc[...] / l_sc[...]).astype(o_ref.dtype)


def flash_attention_pallas(q, k, v, scale, *, tq=128, tk=128):
    """q, k, v: (B*H, N, D) -> softmax(q*scale @ k^T) @ v, shape (B*H, N, D)."""
    BH, N, D = q.shape
    TQ = N if N < tq else tq
    TK = N if N < tk else tk
    assert N % TQ == 0 and N % TK == 0, (
        f"seq len {N} must be a multiple of the q/kv tiles ({TQ}, {TK})")
    grid = (BH, pl.cdiv(N, TQ), pl.cdiv(N, TK))
    kernel = functools.partial(_flash_attn_kernel, scale=scale)
    return pl.pallas_call(
        kernel,
        out_shape=jax.ShapeDtypeStruct((BH, N, D), q.dtype),
        grid_spec=pltpu.PrefetchScalarGridSpec(
            num_scalar_prefetch=0,
            grid=grid,
            in_specs=[
                pl.BlockSpec((1, TQ, D), lambda b, qi, ki: (b, qi, 0)),
                pl.BlockSpec((1, TK, D), lambda b, qi, ki: (b, ki, 0)),
                pl.BlockSpec((1, TK, D), lambda b, qi, ki: (b, ki, 0)),
            ],
            out_specs=pl.BlockSpec((1, TQ, D), lambda b, qi, ki: (b, qi, 0)),
            scratch_shapes=[
                pltpu.VMEM((1, TQ, 1), jnp.float32),   # running max
                pltpu.VMEM((1, TQ, 1), jnp.float32),   # running denom
                pltpu.VMEM((1, TQ, D), jnp.float32),   # output accumulator
            ],
        ),
        compiler_params=pltpu.CompilerParams(
            dimension_semantics=("parallel", "parallel", "arbitrary"),
            vmem_limit_bytes=32 * 1024 * 1024,
        ),
    )(q, k, v)


# ----------------------------- Attention module -------------------------------
class AttentionPallas:
    """Pallas TPU port of the PyTorch `Attention` module (eval-mode forward)."""

    def __init__(self, dim, num_heads=8, qkv_bias=False, qk_scale=None,
                 attn_drop=0.0, proj_drop=0.0, attn_head_dim=None, key=None):
        self.num_heads = num_heads
        head_dim = dim // num_heads
        if attn_head_dim is not None:
            head_dim = attn_head_dim
        all_head_dim = head_dim * num_heads
        self.dim = dim
        self.head_dim = head_dim
        self.all_head_dim = all_head_dim
        self.scale = qk_scale or head_dim ** (-0.5)
        # TODO(synk): attn_drop / proj_drop default to 0.0 (identity); training-mode
        # dropout is not implemented in the Pallas forward.

        if key is None:
            key = jax.random.PRNGKey(0)
        ks = jax.random.split(key, 5)

        def linear_w(k, out_f, in_f):
            bound = 1.0 / (in_f ** 0.5)
            return jax.random.uniform(k, (out_f, in_f), minval=-bound,
                                      maxval=bound, dtype=jnp.float32)

        # PyTorch layout (out_features, in_features) — kept for the reference.
        self.q_weight = linear_w(ks[0], all_head_dim, dim)
        self.k_weight = linear_w(ks[1], all_head_dim, dim)
        self.v_weight = linear_w(ks[2], all_head_dim, dim)
        self.proj_weight = linear_w(ks[3], dim, all_head_dim)
        pb = 1.0 / (all_head_dim ** 0.5)
        self.proj_bias = jax.random.uniform(ks[4], (dim,), minval=-pb, maxval=pb,
                                            dtype=jnp.float32)
        if qkv_bias:
            self.q_bias = jnp.zeros((all_head_dim,), jnp.float32)
            self.v_bias = jnp.zeros((all_head_dim,), jnp.float32)
        else:
            self.q_bias = None
            self.v_bias = None

        # Pre-transpose weights / reshape biases ONCE (perf feedback: do not
        # rebuild (K, N) weights on every call).
        self._wq_t = self.q_weight.T              # (dim, all_head_dim)
        self._wk_t = self.k_weight.T
        self._wv_t = self.v_weight.T
        self._wp_t = self.proj_weight.T           # (all_head_dim, dim)
        zeros_b = jnp.zeros((1, all_head_dim), jnp.float32)
        self._qb = (self.q_bias.reshape(1, -1) if self.q_bias is not None else zeros_b)
        self._kb = zeros_b                        # k_proj never has bias in the spec
        self._vb = (self.v_bias.reshape(1, -1) if self.v_bias is not None else zeros_b)
        self._pb = self.proj_bias.reshape(1, -1)

    def __call__(self, x):
        B, N, C = x.shape
        H, D = self.num_heads, self.head_dim
        x2d = x.reshape(B * N, C)

        q = linear_pallas(x2d, self._wq_t, self._qb)        # (B*N, H*D)
        k = linear_pallas(x2d, self._wk_t, self._kb)
        v = linear_pallas(x2d, self._wv_t, self._vb)

        def to_heads(t):
            return t.reshape(B, N, H, D).transpose(0, 2, 1, 3).reshape(B * H, N, D)

        o = flash_attention_pallas(to_heads(q), to_heads(k), to_heads(v), self.scale)

        o = o.reshape(B, H, N, D).transpose(0, 2, 1, 3).reshape(B * N, H * D)
        y = linear_pallas(o, self._wp_t, self._pb)           # output projection
        return y.reshape(B, N, C)


# ----------------------------- pure-JAX reference -----------------------------
def _reference_attention(x, m):
    B, N, C = x.shape
    H, D = m.num_heads, m.head_dim
    q = x @ m.q_weight.T + (m.q_bias if m.q_bias is not None else 0.0)
    k = x @ m.k_weight.T
    v = x @ m.v_weight.T + (m.v_bias if m.v_bias is not None else 0.0)

    def shape(t):
        return t.reshape(B, N, H, D).transpose(0, 2, 1, 3).reshape(B * H, N, D)

    q = shape(q) * m.scale
    k = shape(k)
    v = shape(v)
    attn = q @ jnp.swapaxes(k, 1, 2)
    attn = jax.nn.softmax(attn, axis=-1)
    out = attn @ v
    out = out.reshape(B, H, N, D).transpose(0, 2, 1, 3).reshape(B, N, H * D)
    return out @ m.proj_weight.T + m.proj_bias


if __name__ == "__main__":
    # Keep both the kernels and the XLA reference at full f32 matmul precision
    # so the numerical comparison is apples-to-apples.
    jax.config.update("jax_default_matmul_precision", "highest")

    key = jax.random.PRNGKey(0)
    kx, kp = jax.random.split(key)

    # Small but TPU-aligned shapes: batch=8, seq=128, dim=256, 8 heads (head_dim=32).
    B, N, C, H = 8, 128, 256, 8
    x = jax.random.normal(kx, (B, N, C), dtype=jnp.float32)

    model = AttentionPallas(dim=C, num_heads=H, qkv_bias=True, key=kp)

    out = jax.block_until_ready(model(x))
    ref = _reference_attention(x, model)

    assert out.shape == (B, N, C), out.shape
    assert jnp.allclose(out, ref, atol=2e-3, rtol=2e-3), (
        "mismatch vs reference, max abs err = "
        f"{float(jnp.max(jnp.abs(out - ref)))}")

    print("KERNEL_OK")
</pallas_src>

<mosaic_0001>
module attributes {stable_mosaic.version = 11 : i64} {
  func.func @_linear_kernel(%arg0: i32, %arg1: memref<512x256xf32, #tpu.memory_space<vmem>>, %arg2: memref<256x256xf32, #tpu.memory_space<vmem>>, %arg3: memref<1x256xf32, #tpu.memory_space<vmem>>, %arg4: memref<512x256xf32, #tpu.memory_space<vmem>>) attributes {dimension_semantics = [#tpu.dimension_semantics<parallel>], iteration_bounds = array<i64: 2>, scalar_prefetch = 0 : i64, scratch_operands = 0 : i64, tpu.core_type = #tpu.core_type<tc>, window_params = [{transform_indices = @transform_0, window_bounds = array<i64: 512, 256>}, {pipeline_mode = #tpu.pipeline_mode<synchronous>, transform_indices = @transform_1, window_bounds = array<i64: 256, 256>}, {pipeline_mode = #tpu.pipeline_mode<synchronous>, transform_indices = @transform_2, window_bounds = array<i64: 1, 256>}, {transform_indices = @transform_3, window_bounds = array<i64: 512, 256>}]} {
    %c0 = arith.constant 0 : index
    %c0_0 = arith.constant 0 : index
    %0 = vector.load %arg1[%c0, %c0_0] : memref<512x256xf32, #tpu.memory_space<vmem>>, vector<512x256xf32>
    %c0_1 = arith.constant 0 : index
    %c0_2 = arith.constant 0 : index
    %1 = vector.load %arg2[%c0_1, %c0_2] : memref<256x256xf32, #tpu.memory_space<vmem>>, vector<256x256xf32>
    %cst = arith.constant dense<0.000000e+00> : vector<512x256xf32>
    %2 = tpu.matmul %0, %1, %cst {dimension_numbers = #tpu.dot_dimension_numbers<[1], [0], [0], [1], [0, 0, 1, 1], [], []>, precision = #tpu.contract_precision<fp32>} : vector<512x256xf32>, vector<256x256xf32>, vector<512x256xf32> -> vector<512x256xf32>
    %c0_3 = arith.constant 0 : index
    %c0_4 = arith.constant 0 : index
    %3 = vector.load %arg3[%c0_3, %c0_4] : memref<1x256xf32, #tpu.memory_space<vmem>>, vector<1x256xf32>
    %4 = vector.broadcast %3 : vector<1x256xf32> to vector<512x256xf32>
    %5 = arith.addf %2, %4 : vector<512x256xf32>
    %c0_5 = arith.constant 0 : index
    %c0_6 = arith.constant 0 : index
    %6 = vector.load %arg4[%c0_5, %c0_6] : memref<512x256xf32, #tpu.memory_space<vmem>>, vector<512x256xf32>
    tpu.vector_store %arg4[%c0_5, %c0_6], %5 {strides = array<i32>} : memref<512x256xf32, #tpu.memory_space<vmem>>, vector<512x256xf32>,
    return
  }
  func.func @transform_0(%arg0: i32) -> (i32, i32) {
    %c0_i32 = arith.constant 0 : i32
    %c0_i32_0 = arith.constant 0 : i32
    return %arg0, %c0_i32 : i32, i32
  }
  func.func @transform_1(%arg0: i32) -> (i32, i32) {
    %c0_i32 = arith.constant 0 : i32
    %c0_i32_0 = arith.constant 0 : i32
    %c0_i32_1 = arith.constant 0 : i32
    return %c0_i32, %c0_i32_0 : i32, i32
  }
  func.func @transform_2(%arg0: i32) -> (i32, i32) {
    %c0_i32 = arith.constant 0 : i32
    %c0_i32_0 = arith.constant 0 : i32
    %c0_i32_1 = arith.constant 0 : i32
    return %c0_i32, %c0_i32_0 : i32, i32
  }
  func.func @transform_3(%arg0: i32) -> (i32, i32) {
    %c0_i32 = arith.constant 0 : i32
    %c0_i32_0 = arith.constant 0 : i32
    return %arg0, %c0_i32 : i32, i32
  }
}

</mosaic_0001>

<bundles_post_ra>
// kernel: tpu_custom_call.1
= control target key start
LH: loop header
LB: loop body
LE: loop exit
PB: predicated region body
PF: predicated region fallthrough
CT: control target
= control target key end

     0   :  { %8 = vsyncpa [#allocation3], 0  ;;  %s10577_s0 = inlined_call_operand.hbm [shape: f32[1024,256], index: 0, kind: input, shape index: {}]   ;;  %s10578_s1 = inlined_call_operand.hbm [shape: f32[256,256], index: 1, kind: input, shape index: {}]   ;;  %s10579_s2 = inlined_call_operand.vmem [shape: f32[1,256], index: 2, kind: input, shape index: {}]   ;;  %s10580_s3 = inlined_call_operand.hbm [shape: f32[1024,256], index: 3, kind: output, shape index: {}]  }
   0x1   :  { %10 = vsyncpa [#allocation3 + $0x1], 0 }
   0x2   :  { %11 = vsyncpa [#allocation6], 0 }
   0x3   :  { %12 = vsyncpa [#allocation4], 0 }
   0x4   :  { %14 = vsyncpa [#allocation4 + $0x1], 0  ;;  %s7219_s12 = smov 0   ;;  %s7221_s13 = smov 0  }
   0x5   :  { %s7223_s14 = smov 0   ;;  %s7225_s15 = smov 0  }
   0x6 LB: > { %s7240_s16 = sadd.s32 4294967295, %s7190_s15   ;;  %s5827_s17 = sadd.s32 4294967294, %s7190_s15   ;;  %s7190_s15 = sphi %s7225_s15, %s12177_s15   ;;  %s7186_s14 = sphi %s7223_s14, %s12176_s14   ;;  %s7182_s13 = sphi %s7221_s13, %s12175_s13   ;;  %s7178_s12 = sphi %s7219_s12, %s12174_s12  }
   0x7   : > { %p40_p0 = scmp.ne.s32.totalorder %s7182_s13, %s7178_s12  ;;  %p10581_p1 = scmp.eq.s32.totalorder %s7240_s16, 0 }
   0x8   : > { %p112_p3 = scmp.eq.s32.totalorder %s5827_s17, 1  ;;  %p5828_p5 = scmp.ge.s32.totalorder %s7190_s15, 1 }
   0x9   : > { %p7249_p4 = por %p10581_p1, %p40_p0  ;;  %p119_p7 = scmp.lt.s32.totalorder %s7190_s15, 3 }
   0xa   : > { %p7254_p6 = por %p112_p3, %p40_p0  ;;  %s7192_s21 = smov [#allocation5]  }
   0xb   : > { %s11159_s18 = scalar_select %p7249_p4, 1, 0 }
   0xc   : > { %s11160_s19 = scalar_select %p7254_p6, 1, 0 }
   0xd   : > { %p7259_p8 = pnand %p5828_p5, %p119_p7  ;;  %s131_s22 = sshll.u32 %s7192_s21, 4  ;;  %s7263_s22 = int_to_ptr.vmem [resolvable:$true] %s131_s22 }
   0xe   : > { %s7275_s24 = sadd.s32 1, %s7190_s15   ;;  %s27_s25 = sadd.s32 1, %s7186_s14 }
   0xf   : > { %s11161_s20 = scalar_select %p7259_p8, 1, 0 }
  0x10   : > { %p7009_p9 = pneg %p7259_p8  ;;  %s24_s26 = ssub.s32 %s7190_s15, %s7275_s24 }
  0x11   : > { %s7062_s29 = scalar_lea.hbm %s10578_s1, 8192 }
  0x12   : > { %p7270_p11 = pnand %p7009_p9, %p10581_p1  ;;  %p7063_p12 = scmp.ne.s32.totalorder %s10578_s1, %s7062_s29 }
  0x13   : > { %p7069_p5 = scmp.lt.u32.totalorder %s7062_s29, %s10578_s1 }
  0x14   : > { %p7064_p13 = pneg %p7270_p11 }
  0x16   : > { %p7065_p0 = pnand %p7064_p13, %p7063_p12 }
  0x18   : > { %p7066_p3 = pneg %p7065_p0 }
  0x1a   : > { %p7071_p7 = pnand %p7069_p5, %p7066_p3 }
  0x1c   : > { %7074 = shalt.err (!%p7071_p7)
}
  0x1d   : > { %s7075_s7 = scalar_lea.vmem %s7263_s22, 8192  ;;  %p7083_p2 = scmp.lt.s32.totalorder %s7263_s22, %s7263_s22 }
  0x1e   : > { %p7076_p9 = scmp.ne.s32.totalorder %s7263_s22, %s7075_s7  ;;  %p7084_p6 = scmp.lt.s32.totalorder %s7075_s7, %s7075_s7 }
  0x20   : > { %p7078_p10 = pnand %p7076_p9, %p7064_p13  ;;  %p7085_p4 = por %p7084_p6, %p7083_p2 }
  0x22   : > { %p7079_p1 = pneg %p7078_p10 }
  0x24   : > { %p7086_p8 = pnand %p7085_p4, %p7079_p1 }
  0x26   : > { %7089 = shalt.err (!%p7086_p8)
}
  0x27   : > { %s7193_s8 = smov 256   ;;  %s7194_s9 = smov 16  }
  0x28   : > { %7012 = dma.hbm_to_vmem [thread:$0]  (!%p7270_p11), %s10578_s1, 8192, %s7263_s22, [#allocation6], %s7193_s8, %s7193_s8, %s7194_s9  }
  0x29   : > { %p25_p1 = scmp.eq.s32.totalorder %s24_s26, 0  ;;  %p34_p2 = scmp.ne.s32.totalorder %s7186_s14, %s7182_s13 }
  0x2a   : > { %p35_p4 = scmp.eq.s32.totalorder %s7190_s15, 0  ;;  %p7022_p6 = scmp.lt.s32.totalorder %s7190_s15, 2 }
  0x2b   : > { %s7309_s17 = scalar_select %p25_p1, %s7186_s14, %s27_s25  }
  0x2c   : > { %p36_p8 = por %p35_p4, %p34_p2  ;;  %p11163_p10 = scmp.eq.s32.totalorder %s7240_s16, 1 }
  0x2d   : > { %s148_s23 = sand.u32 1, %s7186_s14   ;;  %s5846_s27 = sshll.u32 %s7190_s15, 14 }
  0x2e   : > { %p7313_p12 = por %p11163_p10, %p34_p2  ;;  %s5831_s28 = sshll.u32 %s148_s23, 10 }
  0x2f   : > { %s7322_s4 = scalar_lea.hbm %s10577_s0, %s5846_s27  ;;  %s152_s22 = scalar_lea.vmem [#allocation2], %s5831_s28 }
  0x30   : > { %s160_s25 = sshll.u32 %s152_s22, 4  ;;  %p7324_p11 = pnand %p7022_p6, %p36_p8  ;;  %s7328_s25 = int_to_ptr.vmem [resolvable:$true] %s160_s25 }
  0x31   : > { %s7330_s5 = scalar_lea.sflag [#allocation3], %s148_s23  ;;  %s7090_s6 = scalar_lea.hbm %s7322_s4, 16384 }
  0x32   : > { %p7091_p13 = scmp.ne.s32.totalorder %s7322_s4, %s7090_s6  ;;  %p7092_p0 = pneg %p7324_p11 }
  0x33   : > { %s7095_s11 = scalar_lea.hbm %s10577_s0, 32768  ;;  %p7096_p7 = scmp.lt.u32.totalorder %s7322_s4, %s10577_s0 }
  0x34   : > { %p7093_p3 = pnand %p7092_p0, %p7091_p13  ;;  %p7097_p9 = scmp.lt.u32.totalorder %s7095_s11, %s7090_s6 }
  0x35   : > { %p7099_p2 = scmp.lt.u32.totalorder %s7090_s6, %s7322_s4 }
  0x36   : > { %p7094_p5 = pneg %p7093_p3  ;;  %p7098_p1 = por %p7097_p9, %p7096_p7 }
  0x38   : > { %p7100_p4 = por %p7099_p2, %p7098_p1 }
  0x3a   : > { %p7101_p6 = pnand %p7100_p4, %p7094_p5 }
  0x3c   : > { %7104 = shalt.err (!%p7101_p6)
}
  0x3d   : > { %s7105_s23 = scalar_lea.vmem %s7328_s25, 16384  ;;  %s7195_s29 = smov [#allocation2]  }
  0x3e   : > { %p7106_p8 = scmp.ne.s32.totalorder %s7328_s25, %s7105_s23  ;;  %s7110_s30 = sshll.u32 %s7195_s29, 4  ;;  %s7111_s30 = int_to_ptr.vmem [resolvable:$false] %s7110_s30 }
  0x3f   : > { %s7112_s22 = scalar_lea.vmem %s7111_s30, 32768  ;;  %p7113_p3 = scmp.lt.s32.totalorder %s7328_s25, %s7111_s30 }
  0x40   : > { %p7108_p10 = pnand %p7106_p8, %p7092_p0  ;;  %p7114_p7 = scmp.lt.s32.totalorder %s7112_s22, %s7105_s23 }
  0x42   : > { %p7109_p13 = pneg %p7108_p10  ;;  %p7115_p9 = por %p7114_p7, %p7113_p3 }
  0x44   : > { %p7116_p1 = pnand %p7115_p9, %p7109_p13 }
  0x46   : > { %7119 = shalt.err (!%p7116_p1)
}
  0x47   : > { %7016 = dma.hbm_to_vmem [thread:$0]  (!%p7324_p11), %s7322_s4, 16384, %s7328_s25, %s7330_s5, %s7193_s8, %s7193_s8, %s7194_s9  }
  0x48   : > { %p11166_p0 = scmp.ne.s32.totalorder %s11161_s20, 0 }
  0x4a   : > { %172 = sbr.rel (%p11166_p0) target bundleno = 1173 (0x495), region = 32 }
  0x51   : > { %s7364_s6 = sand.u32 1, %s7182_s13   ;;  %p11167_p5 = scmp.ne.s32.totalorder %s11159_s18, 0 }
  0x52   : > { %s5836_s7 = sshll.u32 %s7364_s6, 10  ;;  %s175_s10 = scalar_lea.sflag [#allocation3], %s7364_s6 }
  0x53   : > { %s7370_s26 = scalar_lea.vmem [#allocation2], %s5836_s7 }
  0x54   : > { %7165 = dma.done.wait (%p11167_p5), %s175_s10, 16384  }
  0x55   : > { %7167 = vsyncadd (%p11167_p5), %s175_s10, 4294950912  ;;  %p11168_p11 = scmp.eq.s32.totalorder %s7240_s16, 0 }
  0x57   : > { %7169 = dma.done.wait (%p11168_p11), [#allocation6], 8192   ;;  %p11169_p2 = pmov %p11168_p11 }
  0x58   : > { %v7380_v0 = vld [vmem:[#allocation5 + $0x8] sm:$0xff]  ;;  %v7382_v1 = vld [vmem:[#allocation5 + $0x18] sm:$0xff]  ;;  %v7384_v2 = vld [vmem:[#allocation5] sm:$0xff]  ;;  %s10232_s8 = scalar_lea.vmem [#allocation7], %s5836_s7  ;;  %s5848_s9 = sshll.u32 %s7240_s16, 14 }
  0x59   : > { %7171 = vsyncadd (%p11169_p2), [#allocation6], 4294959104  ;;  %v10595_v3 = vand.u32 4294901760, %v7380_v0  ;;  %v10594_v4 = vand.u32 4294901760, %v7382_v1  ;;  %v7388_v5 = vld [vmem:[#allocation5 + $0x10] sm:$0xff]  ;;  %v10593_v6 = vand.u32 4294901760, %v7384_v2  ;;  %s10529_s11 = scalar_lea.hbm %s10580_s3, %s5848_s9 }
  0x5a   : > { %v7391_v7 = vld [vmem:[#allocation5 + $0x28] sm:$0xff]  ;;  %v7393_v8 = vld [vmem:[#allocation5 + $0x38] sm:$0xff]  ;;  %v10592_v9 = vand.u32 4294901760, %v7388_v5  ;;  %v7398_v12 = vld [vmem:[#allocation5 + $0x20] sm:$0xff]  ;;  %s5744_s4 = sshll.u32 %s10232_s8, 4  ;;  %s5730_s16 = scalar_lea.sflag [#allocation4], %s7364_s6  ;;  %s10531_s4 = int_to_ptr.vmem [resolvable:$true] %s5744_s4 }
  0x5b   : > { %v10591_v10 = vand.u32 4294901760, %v7391_v7  ;;  %v10590_v11 = vand.u32 4294901760, %v7393_v8  ;;  %v7400_v13 = vld [vmem:[#allocation5 + $0x30] sm:$0xff]  ;;  %v7402_v14 = vld [vmem:[#allocation5 + $0x48] sm:$0xff]  ;;  %v7408_v15 = vpack.c.bf16 %v10594_v4, %v10595_v3  ;;  %v7410_v16 = vld [vmem:[#allocation5 + $0x58] sm:$0xff]  ;;  %v10589_v23 = vand.u32 4294901760, %v7398_v12 }
  0x5c   : > { %v7412_v17 = vld [vmem:[#allocation5 + $0x40] sm:$0xff]  ;;  %v7414_v18 = vld [vmem:[#allocation5 + $0x50] sm:$0xff]  ;;  %v7420_v19 = vpack.c.bf16 %v10592_v9, %v10593_v6  ;;  %v348_v21 = vld [vmem:[#allocation5 + $0x68] sm:$0xff]  ;;  %v10588_v24 = vand.u32 4294901760, %v7400_v13  ;;  %v10587_v25 = vand.u32 4294901760, %v7402_v14  ;;  %v10586_v26 = vand.u32 4294901760, %v7410_v16 }
  0x5d   : > { %11170 = vst [vmem:[#allocation11_spill] sm:$0xff] %v7408_v15  ;;  %v7426_v20 = vpack.c.bf16 %v10590_v11, %v10591_v10  ;;  %v350_v22 = vld [vmem:[#allocation5 + $0x78] sm:$0xff]  ;;  %5850 = vmatprep.subr.bf16.mxu1 %v7408_v15  ;;  %6042 = vmatprep.subr.bf16.mxu0 %v7408_v15  ;;  %v10585_v27 = vand.u32 4294901760, %v7412_v17  ;;  %v10584_v28 = vand.u32 4294901760, %v7414_v18  ;;  %v435_v30 = vand.u32 4294901760, %v348_v21  ;;  %v347_v32 = vld [vmem:[#allocation5 + $0x60] sm:$0xff] }
  0x5e   : > { %11171 = vst [vmem:[#allocation12_spill] sm:$0xff] %v7420_v19  ;;  %5852 = vmatpush1.bf16.msra.mxu1 %v7420_v19  ;;  %6044 = vmatpush1.bf16.msra.mxu0 %v7420_v19  ;;  %v7444_v29 = vpack.c.bf16 %v10588_v24, %v10589_v23  ;;  %v439_v31 = vand.u32 4294901760, %v350_v22  ;;  %v349_v33 = vld [vmem:[#allocation5 + $0x70] sm:$0xff]  ;;  %v352_v34 = vld [vmem:[#allocation5 + $0x88] sm:$0xff]  ;;  %v7450_v35 = vpack.c.bf16 %v10586_v26, %v10587_v25  ;;  %v354_v36 = vld [vmem:[#allocation5 + $0x98] sm:$0xff]  ;;  %v437_v43 = vand.u32 4294901760, %v347_v32 }
  0x5f   : > { %11172 = vst [vmem:[#allocation13_spill] sm:$0xff] %v7426_v20  ;;  %5854 = vmatprep.subr.bf16.mxu1 %v7426_v20  ;;  %6046 = vmatprep.subr.bf16.mxu0 %v7426_v20  ;;  %v351_v37 = vld [vmem:[#allocation5 + $0x80] sm:$0xff]  ;;  %v353_v38 = vld [vmem:[#allocation5 + $0x90] sm:$0xff]  ;;  %v7456_v39 = vpack.c.bf16 %v10584_v28, %v10585_v27  ;;  %v7458_v40 = vsub.f32 %v348_v21, %v435_v30  ;;  %v356_v41 = vld [vmem:[#allocation5 + $0xa8] sm:$0xff]  ;;  %v441_v44 = vand.u32 4294901760, %v349_v33  ;;  %v443_v45 = vand.u32 4294901760, %v352_v34 }
  0x60   : > { %11173 = vst [vmem:[#allocation14_spill] sm:$0xff] %v7444_v29  ;;  %11174 = vst [vmem:[#allocation15_spill] sm:$0xff] %v7450_v35  ;;  %v7462_v42 = vsub.f32 %v350_v22, %v439_v31  ;;  %v7466_v46 = vpack.c.bf16 %v439_v31, %v435_v30  ;;  %v447_v47 = vand.u32 4294901760, %v354_v36  ;;  %v445_v48 = vand.u32 4294901760, %v351_v37  ;;  %v358_v50 = vld [vmem:[#allocation5 + $0xb8] sm:$0xff]  ;;  %v355_v51 = vld [vmem:[#allocation5 + $0xa0] sm:$0xff] }
  0x61   : > { %11175 = vst [vmem:[#allocation16_spill] sm:$0xff] %v7456_v39  ;;  %v449_v49 = vand.u32 4294901760, %v353_v38  ;;  %v7468_v52 = vsub.f32 %v347_v32, %v437_v43  ;;  %v7470_v53 = vsub.f32 %v349_v33, %v441_v44  ;;  %v7472_v54 = vsub.f32 %v352_v34, %v443_v45  ;;  %v357_v56 = vld [vmem:[#allocation5 + $0xb0] sm:$0xff]  ;;  %v360_v57 = vld [vmem:[#allocation5 + $0xc8] sm:$0xff]  ;;  %v362_v61 = vld [vmem:[#allocation5 + $0xd8] sm:$0xff]  ;;  %s7120_s27 = scalar_lea.vmem %s10531_s4, 16384 }
  0x62   : > { %5856 = vmatpush1.bf16.msra.mxu1 %v7444_v29  ;;  %6048 = vmatpush1.bf16.msra.mxu0 %v7444_v29  ;;  %11176 = vst [vmem:[#allocation17_spill] sm:$0xff] %v7466_v46  ;;  %v451_v55 = vand.u32 4294901760, %v356_v41  ;;  %v7474_v58 = vpack.c.bf16 %v441_v44, %v437_v43  ;;  %v7476_v59 = vsub.f32 %v354_v36, %v447_v47  ;;  %v7480_v62 = vld [vmem:[#allocation5 + $0xc0] sm:$0xff]  ;;  %v455_v21 = vand.u32 4294901760, %v358_v50  ;;  %v7488_v31 = vld [vmem:[#allocation5 + $0xd0] sm:$0xff]  ;;  %v7494_v36 = vld [vmem:[#allocation5 + $0xe8] sm:$0xff]  ;;  %p7121_p4 = scmp.ne.s32.totalorder %s10531_s4, %s7120_s27 }
  0x63   : > { %5858 = vmatprep.subr.bf16.mxu1 %v7450_v35  ;;  %6050 = vmatprep.subr.bf16.mxu0 %v7450_v35  ;;  %v7478_v60 = vsub.f32 %v351_v37, %v445_v48  ;;  %v7484_v63 = vsub.f32 %v353_v38, %v449_v49  ;;  %v453_v30 = vand.u32 4294901760, %v355_v51  ;;  %v7492_v32 = vpack.c.bf16 %v447_v47, %v443_v45  ;;  %v7501_v44 = vld [vmem:[#allocation5 + $0xf8] sm:$0xff]  ;;  %v7503_v28 = vld [vmem:[#allocation5 + $0xe0] sm:$0xff]  ;;  %v7510_v47 = vld [vmem:[#allocation5 + $0xf0] sm:$0xff]  ;;  %s7196_s28 = smov [#allocation7]  }
  0x64   : > { %11177 = vst [vmem:[#allocation18_spill] sm:$0xff] %v7474_v58  ;;  %v7486_v22 = vsub.f32 %v356_v41, %v451_v55  ;;  %v457_v33 = vand.u32 4294901760, %v357_v56  ;;  %v459_v34 = vand.u32 4294901760, %v360_v57  ;;  %v7496_v37 = vsub.f32 %v358_v50, %v455_v21  ;;  %v7512_v25 = vld [vmem:[#allocation5 + $0x108] sm:$0xff]  ;;  %v7526_v23 = vld [vmem:[#allocation5 + $0x100] sm:$0xff]  ;;  %v7602_v20 = vld [vmem:[#allocation5 + $0x150] sm:$0xff]  ;;  %p7122_p6 = pnand %p7121_p4, %p7313_p12 }
  0x65   : > { %11178 = vst [vmem:[#allocation19_spill] sm:$0xff] %v7492_v32  ;;  %v7498_v38 = vsub.f32 %v355_v51, %v453_v30  ;;  %v463_v43 = vand.u32 4294901760, %v362_v61  ;;  %v461_v41 = vand.u32 4294901760, %v7480_v62  ;;  %v465_v45 = vand.u32 4294901760, %v7488_v31  ;;  %v7604_v19 = vld [vmem:[#allocation5 + $0x168] sm:$0xff]  ;;  %s7124_s23 = sshll.u32 %s7196_s28, 4  ;;  %s7125_s23 = int_to_ptr.vmem [resolvable:$false] %s7124_s23 }
  0x66   : > { %5860 = vmatpush1.bf16.msra.mxu1 %v7456_v39  ;;  %6052 = vmatpush1.bf16.msra.mxu0 %v7456_v39  ;;  %v7505_v27 = vsub.f32 %v357_v56, %v457_v33  ;;  %v7507_v26 = vsub.f32 %v360_v57, %v459_v34  ;;  %v7516_v50 = vpack.c.bf16 %v449_v49, %v445_v48  ;;  %v467_v56 = vand.u32 4294901760, %v7494_v36  ;;  %v7524_v57 = vld [vmem:[#allocation5 + $0x118] sm:$0xff]  ;;  %p7123_p8 = pneg %p7122_p6  ;;  %s7126_s29 = scalar_lea.vmem %s7125_s23, 32768 }
  0x67   : > { %5862 = vmatprep.subr.bf16.mxu1 %v7466_v46  ;;  %6054 = vmatprep.subr.bf16.mxu0 %v7466_v46  ;;  %v7518_v51 = vsub.f32 %v362_v61, %v463_v43  ;;  %v7521_v24 = vsub.f32 %v7480_v62, %v461_v41  ;;  %v7530_v11 = vpack.c.bf16 %v455_v21, %v451_v55  ;;  %v471_v49 = vand.u32 4294901760, %v7501_v44  ;;  %v7537_v62 = vld [vmem:[#allocation5 + $0x110] sm:$0xff]  ;;  %v7546_v55 = vld [vmem:[#allocation5 + $0x128] sm:$0xff]  ;;  %v7548_v21 = vld [vmem:[#allocation5 + $0x138] sm:$0xff]  ;;  %p7127_p10 = scmp.lt.s32.totalorder %s10531_s4, %s7125_s23  ;;  %p7128_p13 = scmp.lt.s32.totalorder %s7126_s29, %s7120_s27 }
  0x68   : > { %11179 = vst [vmem:[#allocation20_spill] sm:$0xff] %v7516_v50  ;;  %v7533_v48 = vsub.f32 %v7488_v31, %v465_v45  ;;  %v10597_v61 = vand.u32 4294901760, %v7503_v28  ;;  %v7539_v10 = vpack.c.bf16 %v457_v33, %v453_v30  ;;  %v7542_v9 = vsub.f32 %v7494_v36, %v467_v56  ;;  %v7560_v36 = vld [vmem:[#allocation5 + $0x120] sm:$0xff]  ;;  %v7577_v30 = vld [vmem:[#allocation5 + $0x148] sm:$0xff]  ;;  %v7593_v39 = vld [vmem:[#allocation5 + $0x158] sm:$0xff] }
  0x69   : > { %11180 = vst [vmem:[#allocation21_spill] sm:$0xff] %v7521_v24  ;;  %11181 = vst [vmem:[#allocation22_spill] sm:$0xff] %v7530_v11  ;;  %v473_v6 = vand.u32 4294901760, %v7510_v47  ;;  %v7551_v31 = vsub.f32 %v7501_v44, %v471_v49  ;;  %v7566_v4 = vpack.c.bf16 %v463_v43, %v459_v34  ;;  %v481_v33 = vand.u32 4294901760, %v7537_v62  ;;  %p7129_p3 = por %p7128_p13, %p7127_p10 }
  0x6a   : > { %5864 = vmatpush1.bf16.msra.mxu1 %v7474_v58  ;;  %6056 = vmatpush1.bf16.msra.mxu0 %v7474_v58  ;;  %11182 = vst [vmem:[#allocation23_spill] sm:$0xff] %v7533_v48  ;;  %11183 = vst [vmem:[#allocation24_spill] sm:$0xff] %v7539_v10  ;;  %v7556_v3 = vsub.f32 %v7503_v28, %v10597_v61  ;;  %v11189_v61 = vand.u32 4294901760, %v7512_v25  ;;  %v11193_v43 = vand.u32 4294901760, %v7526_v23  ;;  %v10618_v29 = vand.u32 4294901760, %v7593_v39 }
  0x6b   : > { %5866 = vmatprep.subr.bf16.mxu1 %v7492_v32  ;;  %6058 = vmatprep.subr.bf16.mxu0 %v7492_v32  ;;  %11184 = vst [vmem:[#allocation25_spill] sm:$0xff] %v7542_v9  ;;  %11185 = vst [vmem:[#allocation26_spill] sm:$0xff] %v7551_v31  ;;  %v7562_v32 = vld [vmem:[#allocation5 + $0x130] sm:$0xff]  ;;  %v7569_v44 = vsub.f32 %v7510_v47, %v473_v6  ;;  %v7596_v35 = vsub.f32 %v7537_v62, %v481_v33  ;;  %v11198_v62 = vand.u32 4294901760, %v7548_v21  ;;  %p7130_p7 = pnand %p7129_p3, %p7123_p8 }
  0x6c   : > { %11186 = vst [vmem:[#allocation27_spill] sm:$0xff] %v7556_v3  ;;  %11187 = vst [vmem:[#allocation28_spill] sm:$0xff] %v7566_v4  ;;  %v7574_v58 = vsub.f32 %v7512_v25, %v11189_v61  ;;  %v7589_v47 = vsub.f32 %v7526_v23, %v11193_v43  ;;  %v10609_v61 = vand.u32 4294901760, %v7546_v55  ;;  %v7606_v43 = vpack.c.bf16 %v465_v45, %v461_v41  ;;  %v7763_v31 = vld [vmem:[#allocation5 + $0x1d0] sm:$0xff]  ;;  %v7781_v3 = vld [vmem:[#allocation5 + $0x1f8] sm:$0xff] }
  0x6d   : > { %11188 = vst [vmem:[#allocation29_spill] sm:$0xff] %v7569_v44  ;;  %11195 = vst [vmem:[#allocation33_spill] sm:$0xff] %v7596_v35  ;;  %v7616_v15 = vsub.f32 %v7548_v21, %v11198_v62  ;;  %v7621_v35 = vld [vmem:[#allocation5 + $0x160] sm:$0xff]  ;;  %v7625_v41 = vpack.c.bf16 %v471_v49, %v467_v56  ;;  %v11201_v45 = vand.u32 4294901760, %v7560_v36  ;;  %v11203_v62 = vand.u32 4294901760, %v7562_v32  ;;  %v7699_v44 = vld [vmem:[#allocation5 + $0x1b8] sm:$0xff] }
  0x6e   : > { %5868 = vmatpush1.bf16.msra.mxu1 %v7516_v50  ;;  %6060 = vmatpush1.bf16.msra.mxu0 %v7516_v50  ;;  %11190 = vst [vmem:[#allocation30_spill] sm:$0xff] %v7574_v58  ;;  %v11191_v50 = vand.u32 4294901760, %v7524_v57  ;;  %11194 = vst [vmem:[#allocation32_spill] sm:$0xff] %v7589_v47  ;;  %v7611_v46 = vsub.f32 %v7546_v55, %v10609_v61  ;;  %v7657_v47 = vld [vmem:[#allocation5 + $0x188] sm:$0xff]  ;;  %v10652_v24 = vand.u32 4294901760, %v7781_v3 }
  0x6f   : > { %5870 = vmatprep.subr.bf16.mxu1 %v7530_v11  ;;  %6062 = vmatprep.subr.bf16.mxu0 %v7530_v11  ;;  %11196 = vst [vmem:[#allocation34_spill] sm:$0xff] %v7606_v43  ;;  %11199 = vst [vmem:[#allocation36_spill] sm:$0xff] %v7616_v15  ;;  %v7619_v11 = vld [vmem:[#allocation5 + $0x178] sm:$0xff]  ;;  %v7630_v61 = vsub.f32 %v7560_v36, %v11201_v45  ;;  %v7635_v15 = vsub.f32 %v7562_v32, %v11203_v62  ;;  %v7697_v58 = vld [vmem:[#allocation5 + $0x1a8] sm:$0xff] }
  0x70   : > { %v7584_v34 = vsub.f32 %v7524_v57, %v11191_v50  ;;  %v7600_v50 = vld [vmem:[#allocation5 + $0x140] sm:$0xff]  ;;  %11197 = vst [vmem:[#allocation35_spill] sm:$0xff] %v7611_v46  ;;  %11200 = vst [vmem:[#allocation37_spill] sm:$0xff] %v7625_v41  ;;  %v7648_v46 = vld [vmem:[#allocation5 + $0x170] sm:$0xff]  ;;  %v7653_v62 = vsub.f32 %v7593_v39, %v10618_v29  ;;  %v11211_v29 = vand.u32 4294901760, %v7604_v19 }
  0x71   : > { %11202 = vst [vmem:[#allocation38_spill] sm:$0xff] %v7630_v61  ;;  %11204 = vst [vmem:[#allocation39_spill] sm:$0xff] %v7635_v15  ;;  %v10620_v49 = vand.u32 4294901760, %v7600_v50  ;;  %v11209_v61 = vand.u32 4294901760, %v7602_v20  ;;  %v7676_v15 = vld [vmem:[#allocation5 + $0x180] sm:$0xff] }
  0x72   : > { %11192 = vst [vmem:[#allocation31_spill] sm:$0xff] %v7584_v34  ;;  %5872 = vmatpush1.bf16.msra.mxu1 %v7539_v10  ;;  %6064 = vmatpush1.bf16.msra.mxu0 %v7539_v10  ;;  %v11205_v10 = vand.u32 4294901760, %v7577_v30  ;;  %11207 = vst [vmem:[#allocation41_spill] sm:$0xff] %v7653_v62  ;;  %v7678_v62 = vld [vmem:[#allocation5 + $0x190] sm:$0xff] }
  0x73   : > { %5874 = vmatprep.subr.bf16.mxu1 %v7566_v4  ;;  %6066 = vmatprep.subr.bf16.mxu0 %v7566_v4  ;;  %v7664_v45 = vsub.f32 %v7600_v50, %v10620_v49  ;;  %v7674_v4 = vsub.f32 %v7604_v19, %v11211_v29  ;;  %v11213_v49 = vand.u32 4294901760, %v7503_v28  ;;  %v11220_v28 = vand.u32 4294901760, %v7524_v57  ;;  %v7742_v57 = vld [vmem:[#allocation5 + $0x1c0] sm:$0xff] }
  0x74   : > { %v7643_v56 = vsub.f32 %v7577_v30, %v11205_v10  ;;  %v7659_v10 = vld [vmem:[#allocation5 + $0x198] sm:$0xff] }
  0x75   : > { %11208 = vst [vmem:[#allocation42_spill] sm:$0xff] %v7664_v45  ;;  %11212 = vst [vmem:[#allocation44_spill] sm:$0xff] %v7674_v4  ;;  %v7684_v45 = vpack.c.bf16 %v473_v6, %v11213_v49  ;;  %v11217_v4 = vand.u32 4294901760, %v7621_v35  ;;  %v11219_v6 = vand.u32 4294901760, %v7512_v25  ;;  %v7740_v25 = vld [vmem:[#allocation5 + $0x1d8] sm:$0xff] }
  0x76   : > { %11206 = vst [vmem:[#allocation40_spill] sm:$0xff] %v7643_v56  ;;  %v7669_v56 = vsub.f32 %v7602_v20, %v11209_v61  ;;  %5876 = vmatpush1.bf16.msra.mxu1 %v7606_v43  ;;  %6068 = vmatpush1.bf16.msra.mxu0 %v7606_v43  ;;  %v11215_v61 = vand.u32 4294901760, %v7619_v11  ;;  %v11222_v43 = vand.u32 4294901760, %v7526_v23  ;;  %v11227_v23 = vand.u32 4294901760, %v7659_v10 }
  0x77   : > { %11214 = vst [vmem:[#allocation45_spill] sm:$0xff] %v7684_v45  ;;  %v7695_v34 = vsub.f32 %v7621_v35, %v11217_v4  ;;  %5878 = vmatprep.subr.bf16.mxu1 %v7625_v41  ;;  %6070 = vmatprep.subr.bf16.mxu0 %v7625_v41  ;;  %v7707_v49 = vpack.c.bf16 %v11220_v28, %v11219_v6  ;;  %v7711_v4 = vld [vmem:[#allocation5 + $0x1a0] sm:$0xff]  ;;  %v7724_v6 = vld [vmem:[#allocation5 + $0x1b0] sm:$0xff]  ;;  %v7726_v28 = vld [vmem:[#allocation5 + $0x1c8] sm:$0xff] }
  0x78   : > { %11210 = vst [vmem:[#allocation43_spill] sm:$0xff] %v7669_v56  ;;  %v7689_v56 = vsub.f32 %v7619_v11, %v11215_v61  ;;  %v10631_v61 = vand.u32 4294901760, %v7657_v47 }
  0x79   : > { %11218 = vst [vmem:[#allocation47_spill] sm:$0xff] %v7695_v34  ;;  %11221 = vst [vmem:[#allocation48_spill] sm:$0xff] %v7707_v49  ;;  %v7715_v34 = vpack.c.bf16 %v481_v33, %v11222_v43  ;;  %v7736_v33 = vsub.f32 %v7659_v10, %v11227_v23  ;;  %v11232_v23 = vand.u32 4294901760, %v7676_v15 }
  0x7a   : > { %11216 = vst [vmem:[#allocation46_spill] sm:$0xff] %v7689_v56  ;;  %v11224_v56 = vand.u32 4294901760, %v7648_v46  ;;  %v7731_v29 = vsub.f32 %v7657_v47, %v10631_v61  ;;  %5880 = vmatpush1.bf16.msra.mxu1 %v7684_v45  ;;  %6072 = vmatpush1.bf16.msra.mxu0 %v7684_v45  ;;  %v11229_v61 = vand.u32 4294901760, %v7546_v55  ;;  %v7765_v45 = vld [vmem:[#allocation5 + $0x1e8] sm:$0xff]  ;;  %v11236_v55 = vand.u32 4294901760, %v7697_v58 }
  0x7b   : > { %11223 = vst [vmem:[#allocation49_spill] sm:$0xff] %v7715_v34  ;;  %11228 = vst [vmem:[#allocation52_spill] sm:$0xff] %v7736_v33  ;;  %v7755_v43 = vsub.f32 %v7676_v15, %v11232_v23  ;;  %5882 = vmatprep.subr.bf16.mxu1 %v7707_v49  ;;  %6074 = vmatprep.subr.bf16.mxu0 %v7707_v49  ;;  %v10647_v23 = vand.u32 4294901760, %v7726_v28 }
  0x7c   : > { %v7720_v41 = vsub.f32 %v7648_v46, %v11224_v56  ;;  %11226 = vst [vmem:[#allocation51_spill] sm:$0xff] %v7731_v29  ;;  %v11230_v29 = vand.u32 4294901760, %v7548_v21  ;;  %v11234_v56 = vand.u32 4294901760, %v7678_v62  ;;  %v7772_v21 = vsub.f32 %v7697_v58, %v11236_v55 }
  0x7d   : > { %11233 = vst [vmem:[#allocation54_spill] sm:$0xff] %v7755_v43  ;;  %v208_v43 = vld [vmem:[%s7370_s26 + $0x8] sm:$0xff]  ;;  %v11244_v55 = vand.u32 4294901760, %v7560_v36 }
  0x7e   : > { %11225 = vst [vmem:[#allocation50_spill] sm:$0xff] %v7720_v41  ;;  %v7750_v41 = vpack.c.bf16 %v11230_v29, %v11229_v61  ;;  %v7760_v33 = vsub.f32 %v7678_v62, %v11234_v56  ;;  %11237 = vst [vmem:[#allocation56_spill] sm:$0xff] %v7772_v21  ;;  %v11238_v29 = vand.u32 4294901760, %v7699_v44  ;;  %v10645_v56 = vand.u32 4294901760, %v7724_v6  ;;  %v7790_v21 = vld [vmem:[#allocation5 + $0x1e0] sm:$0xff]  ;;  %5884 = vmatpush1.bf16.msra.mxu1 %v7715_v34 }
  0x7f   : > { %6076 = vmatpush1.bf16.msra.mxu0 %v7715_v34 }
  0x80   : > { %11231 = vst [vmem:[#allocation53_spill] sm:$0xff] %v7750_v41  ;;  %11235 = vst [vmem:[#allocation55_spill] sm:$0xff] %v7760_v33  ;;  %v7777_v61 = vsub.f32 %v7699_v44, %v11238_v29  ;;  %v11240_v33 = vand.u32 4294901760, %v7711_v4  ;;  %v7795_v29 = vsub.f32 %v7724_v6, %v10645_v56  ;;  %v11245_v56 = vand.u32 4294901760, %v7562_v32  ;;  %5886 = vmatprep.subr.bf16.mxu1 %v7750_v41 }
  0x81   : > { %6078 = vmatprep.subr.bf16.mxu0 %v7750_v41  ;;  %v11252_v32 = vand.u32 4294901760, %v7742_v57  ;;  %v11262_v41 = vand.u32 4294901760, %v7602_v20  ;;  %v11268_v20 = vand.u32 4294901760, %v7604_v19 }
  0x82   : > { %11239 = vst [vmem:[#allocation57_spill] sm:$0xff] %v7777_v61  ;;  %v7786_v49 = vsub.f32 %v7711_v4, %v11240_v33  ;;  %11242 = vst [vmem:[#allocation59_spill] sm:$0xff] %v7795_v29  ;;  %v7800_v61 = vsub.f32 %v7726_v28, %v10647_v23  ;;  %v7813_v29 = vpack.c.bf16 %v11245_v56, %v11244_v55  ;;  %v11247_v23 = vand.u32 4294901760, %v7577_v30 }
  0x83   : > { %v11250_v33 = vand.u32 4294901760, %v7740_v25  ;;  %v7832_v36 = vsub.f32 %v7742_v57, %v11252_v32  ;;  %v7848_v55 = vsub.f32 %v7781_v3, %v10652_v24  ;;  %v7851_v32 = vand.u32 4294901760, %v208_v43 }
  0x84   : > { %11241 = vst [vmem:[#allocation58_spill] sm:$0xff] %v7786_v49  ;;  %11243 = vst [vmem:[#allocation60_spill] sm:$0xff] %v7800_v61  ;;  %v7804_v49 = vld [vmem:[#allocation5 + $0x1f0] sm:$0xff]  ;;  %v11248_v61 = vand.u32 4294901760, %v7593_v39  ;;  %v11254_v39 = vand.u32 4294901760, %v7763_v31  ;;  %5888 = vmatpush1.bf16.msra.mxu1 %v7813_v29  ;;  %6080 = vmatpush1.bf16.msra.mxu0 %v7813_v29 }
  0x85   : > { %11246 = vst [vmem:[#allocation61_spill] sm:$0xff] %v7813_v29  ;;  %v7824_v48 = vsub.f32 %v7740_v25, %v11250_v33  ;;  %11253 = vst [vmem:[#allocation64_spill] sm:$0xff] %v7832_v36  ;;  %v10657_v33 = vand.u32 4294901760, %v7804_v49 }
  0x86   : > { %v7819_v9 = vpack.c.bf16 %v11248_v61, %v11247_v23  ;;  %v7837_v30 = vsub.f32 %v7763_v31, %v11254_v39  ;;  %v11256_v61 = vand.u32 4294901760, %v7765_v45  ;;  %v10655_v23 = vand.u32 4294901760, %v7790_v21  ;;  %11258 = vst [vmem:[#allocation67_spill] sm:$0xff] %v7848_v55  ;;  %11259 = vst [vmem:[#allocation68_spill] sm:$0xff] %v7851_v32 }
  0x87   : > { %11251 = vst [vmem:[#allocation63_spill] sm:$0xff] %v7824_v48  ;;  %v7869_v34 = vsub.f32 %v7804_v49, %v10657_v33  ;;  %v7872_v55 = vsub.f32 %v208_v43, %v7851_v32  ;;  %v11271_v33 = vand.u32 4294901760, %v7382_v1  ;;  %v11282_v32 = vand.u32 4294901760, %v7393_v8  ;;  %v221_v48 = vld [vmem:[%s7370_s26 + $0x70] sm:$0xff] }
  0x88   : > { %11249 = vst [vmem:[#allocation62_spill] sm:$0xff] %v7819_v9  ;;  %11255 = vst [vmem:[#allocation65_spill] sm:$0xff] %v7837_v30  ;;  %v7842_v56 = vsub.f32 %v7765_v45, %v11256_v61  ;;  %v7856_v39 = vsub.f32 %v7790_v21, %v10655_v23  ;;  %v11261_v61 = vand.u32 4294901760, %v7600_v50  ;;  %v11266_v23 = vand.u32 4294901760, %v7380_v0  ;;  %5890 = vmatprep.subr.bf16.mxu1 %v7819_v9 }
  0x89   : > { %11264 = vst [vmem:[#allocation71_spill] sm:$0xff] %v7869_v34  ;;  %11265 = vst [vmem:[#allocation72_spill] sm:$0xff] %v7872_v55  ;;  %6082 = vmatprep.subr.bf16.mxu0 %v7819_v9  ;;  %v11269_v50 = vand.u32 4294901760, %v7619_v11  ;;  %v541_v43 = vand.u32 4294901760, %v7872_v55  ;;  %v7892_v29 = vsub.f32 %v7382_v1, %v11271_v33  ;;  %v11275_v9 = vand.u32 4294901760, %v7388_v5  ;;  %v210_v11 = vld [vmem:[%s7370_s26 + $0x18] sm:$0xff] }
  0x8a   : > { %11257 = vst [vmem:[#allocation66_spill] sm:$0xff] %v7842_v56  ;;  %11260 = vst [vmem:[#allocation69_spill] sm:$0xff] %v7856_v39  ;;  %v7864_v24 = vpack.c.bf16 %v11262_v41, %v11261_v61  ;;  %v7877_v39 = vsub.f32 %v7380_v0, %v11266_v23  ;;  %v207_v61 = vld [vmem:[%s7370_s26] sm:$0xff]  ;;  %v11273_v0 = vand.u32 4294901760, %v7384_v2  ;;  %v11278_v1 = vand.u32 4294901760, %v7621_v35 }
  0x8b   : > { %v7885_v41 = vpack.c.bf16 %v11269_v50, %v11268_v20  ;;  %11272 = vst [vmem:[#allocation75_spill] sm:$0xff] %v7892_v29  ;;  %v7902_v19 = vsub.f32 %v7388_v5, %v11275_v9  ;;  %v11277_v20 = vand.u32 4294901760, %v7391_v7  ;;  %v542_v5 = vsub.f32 %v7872_v55, %v541_v43  ;;  %3425 = vmatprep.mubr.f32.mxu0 %v541_v43 }
  0x8c   : > { %11263 = vst [vmem:[#allocation70_spill] sm:$0xff] %v7864_v24  ;;  %11267 = vst [vmem:[#allocation73_spill] sm:$0xff] %v7877_v39  ;;  %v7897_v23 = vsub.f32 %v7384_v2, %v11273_v0  ;;  %5892 = vmatpush1.bf16.msra.mxu1 %v7864_v24  ;;  %6084 = vmatpush1.bf16.msra.mxu0 %v7864_v24  ;;  %v11279_v2 = vand.u32 4294901760, %v7648_v46  ;;  %v7919_v9 = vand.u32 4294901760, %v207_v61  ;;  %v209_v0 = vld [vmem:[%s7370_s26 + $0x10] sm:$0xff]  ;;  %v11286_v46 = vand.u32 4294901760, %v7657_v47 }
  0x8d   : > { %11270 = vst [vmem:[#allocation74_spill] sm:$0xff] %v7885_v41  ;;  %11276 = vst [vmem:[#allocation77_spill] sm:$0xff] %v7902_v19  ;;  %v7908_v50 = vsub.f32 %v7391_v7, %v11277_v20  ;;  %v7925_v7 = vsub.f32 %v7393_v8, %v11282_v32  ;;  %v11284_v20 = vand.u32 4294901760, %v7398_v12  ;;  %5894 = vmatprep.subr.bf16.mxu1 %v7885_v41  ;;  %6086 = vmatprep.subr.bf16.mxu0 %v7885_v41  ;;  %v212_v47 = vld [vmem:[%s7370_s26 + $0x28] sm:$0xff] }
  0x8e   : > { %11274 = vst [vmem:[#allocation76_spill] sm:$0xff] %v7897_v23  ;;  %v7916_v33 = vpack.c.bf16 %v11279_v2, %v11278_v1  ;;  %11281 = vst [vmem:[#allocation79_spill] sm:$0xff] %v7919_v9  ;;  %v11287_v1 = vand.u32 4294901760, %v7659_v10  ;;  %v1566_v55 = vand.u32 4294901760, %v7877_v39  ;;  %v11289_v8 = vand.u32 4294901760, %v7400_v13 }
  0x8f   : > { %11283 = vst [vmem:[#allocation80_spill] sm:$0xff] %v7925_v7  ;;  %v7930_v35 = vsub.f32 %v7398_v12, %v11284_v20  ;;  %v11291_v12 = vand.u32 4294901760, %v7402_v14  ;;  %v543_v24 = vand.u32 4294901760, %v542_v5  ;;  %v7951_v41 = vand.u32 4294901760, %v210_v11  ;;  %v211_v5 = vld [vmem:[%s7370_s26 + $0x20] sm:$0xff] }
  0x90   : > { %11280 = vst [vmem:[#allocation78_spill] sm:$0xff] %v7916_v33  ;;  %v7938_v2 = vpack.c.bf16 %v11287_v1, %v11286_v46  ;;  %v7944_v32 = vsub.f32 %v7400_v13, %v11289_v8  ;;  %v11293_v10 = vand.u32 4294901760, %v7410_v16  ;;  %v11294_v1 = vand.u32 4294901760, %v7412_v17  ;;  %5896 = vmatpush1.bf16.msra.mxu1 %v7916_v33  ;;  %6088 = vmatpush1.bf16.msra.mxu0 %v7916_v33 }
  0x91   : > { %11285 = vst [vmem:[#allocation81_spill] sm:$0xff] %v7930_v35  ;;  %v7949_v20 = vsub.f32 %v7402_v14, %v11291_v12  ;;  %11292 = vst [vmem:[#allocation84_spill] sm:$0xff] %v7951_v41  ;;  %v11295_v8 = vand.u32 4294901760, %v7414_v18  ;;  %v7969_v43 = vand.u32 4294901760, %v209_v0  ;;  %v11298_v12 = vand.u32 4294901760, %v7678_v62  ;;  %544 = vmatprep.mubr.f32.mxu1 %v543_v24 }
  0x92   : > { %11288 = vst [vmem:[#allocation82_spill] sm:$0xff] %v7938_v2  ;;  %11290 = vst [vmem:[#allocation83_spill] sm:$0xff] %v7944_v32  ;;  %v7957_v46 = vsub.f32 %v7410_v16, %v11293_v10  ;;  %v7962_v13 = vsub.f32 %v7412_v17, %v11294_v1  ;;  %v11297_v16 = vand.u32 4294901760, %v7676_v15  ;;  %v7981_v17 = vsub.f32 %v207_v61, %v7919_v9  ;;  %v214_v1 = vld [vmem:[%s7370_s26 + $0x38] sm:$0xff] }
  0x93   : > { %v7967_v14 = vsub.f32 %v7414_v18, %v11295_v8  ;;  %11296 = vst [vmem:[#allocation85_spill] sm:$0xff] %v7969_v43  ;;  %v1578_v18 = vand.u32 4294901760, %v7892_v29  ;;  %5898 = vmatprep.subr.bf16.mxu1 %v7938_v2  ;;  %6090 = vmatprep.subr.bf16.mxu0 %v7938_v2  ;;  %v11301_v8 = vand.u32 4294901760, %v7697_v58  ;;  %v11302_v15 = vand.u32 4294901760, %v7699_v44 }
  0x94   : > { %v7978_v10 = vpack.c.bf16 %v11298_v12, %v11297_v16  ;;  %11300 = vst [vmem:[#allocation87_spill] sm:$0xff] %v7981_v17  ;;  %v11304_v62 = vand.u32 4294901760, %v7711_v4  ;;  %v11305_v16 = vand.u32 4294901760, %v7724_v6  ;;  %v1567_v12 = vsub.f32 %v7877_v39, %v1566_v55 }
  0x95   : > { %v7991_v33 = vpack.c.bf16 %v11302_v15, %v11301_v8  ;;  %v8000_v9 = vand.u32 4294901760, %v212_v47  ;;  %v11308_v34 = vand.u32 4294901760, %v7726_v28  ;;  %v11309_v2 = vand.u32 4294901760, %v7740_v25  ;;  %v213_v8 = vld [vmem:[%s7370_s26 + $0x30] sm:$0xff] }
  0x96   : > { %11299 = vst [vmem:[#allocation86_spill] sm:$0xff] %v7978_v10  ;;  %v7997_v61 = vpack.c.bf16 %v11305_v16, %v11304_v62  ;;  %v1584_v44 = vand.u32 4294901760, %v7902_v19  ;;  %v8011_v4 = vsub.f32 %v210_v11, %v7951_v41  ;;  %v8013_v6 = vand.u32 4294901760, %v211_v5  ;;  %5900 = vmatpush1.bf16.msra.mxu1 %v7978_v10  ;;  %6092 = vmatpush1.bf16.msra.mxu0 %v7978_v10 }
  0x97   : > { %11303 = vst [vmem:[#allocation88_spill] sm:$0xff] %v7991_v33  ;;  %11307 = vst [vmem:[#allocation90_spill] sm:$0xff] %v8000_v9  ;;  %v8007_v58 = vpack.c.bf16 %v11309_v2, %v11308_v34  ;;  %v11313_v15 = vand.u32 4294901760, %v7742_v57  ;;  %v11314_v62 = vand.u32 4294901760, %v7763_v31  ;;  %v11316_v34 = vand.u32 4294901760, %v7765_v45  ;;  %5902 = vmatprep.subr.bf16.mxu1 %v7991_v33  ;;  %6094 = vmatprep.subr.bf16.mxu0 %v7991_v33 }
  0x98   : > { %11306 = vst [vmem:[#allocation89_spill] sm:$0xff] %v7997_v61  ;;  %11311 = vst [vmem:[#allocation92_spill] sm:$0xff] %v8011_v4  ;;  %v11317_v25 = vand.u32 4294901760, %v7781_v3  ;;  %v11319_v2 = vand.u32 4294901760, %v7790_v21  ;;  %v11320_v11 = vand.u32 4294901760, %v7804_v49  ;;  %v8035_v41 = vsub.f32 %v209_v0, %v7969_v43  ;;  %v216_v49 = vld [vmem:[%s7370_s26 + $0x48] sm:$0xff] }
  0x99   : > { %11310 = vst [vmem:[#allocation91_spill] sm:$0xff] %v8007_v58  ;;  %11312 = vst [vmem:[#allocation93_spill] sm:$0xff] %v8013_v6  ;;  %v8020_v28 = vpack.c.bf16 %v11314_v62, %v11313_v15  ;;  %v1579_v45 = vsub.f32 %v7892_v29, %v1578_v18  ;;  %v11323_v3 = vand.u32 4294901760, %v7897_v23  ;;  %v8044_v21 = vand.u32 4294901760, %v214_v1  ;;  %v215_v15 = vld [vmem:[%s7370_s26 + $0x40] sm:$0xff] }
  0x9a   : > { %v8026_v24 = vpack.c.bf16 %v11317_v25, %v11316_v34  ;;  %v8032_v16 = vpack.c.bf16 %v11320_v11, %v11319_v2  ;;  %11322 = vst [vmem:[#allocation97_spill] sm:$0xff] %v8035_v41  ;;  %v1568_v0 = vand.u32 4294901760, %v1567_v12  ;;  %v6105_v62 = vpack.c.bf16 %v1578_v18, %v1566_v55  ;;  %5904 = vmatpush1.bf16.msra.mxu1 %v7997_v61  ;;  %v219_v29 = vld [vmem:[%s7370_s26 + $0x60] sm:$0xff] }
  0x9b   : > { %11315 = vst [vmem:[#allocation94_spill] sm:$0xff] %v8020_v28  ;;  %v1573_v57 = vsub.f32 %v7897_v23, %v11323_v3  ;;  %11324 = vst [vmem:[#allocation98_spill] sm:$0xff] %v8044_v21  ;;  %v8051_v34 = vsub.f32 %v212_v47, %v8000_v9  ;;  %v8053_v25 = vand.u32 4294901760, %v213_v8  ;;  %v1585_v2 = vsub.f32 %v7902_v19, %v1584_v44 }
  0x9c   : > { %11318 = vst [vmem:[#allocation95_spill] sm:$0xff] %v8026_v24  ;;  %11321 = vst [vmem:[#allocation96_spill] sm:$0xff] %v8032_v16  ;;  %v8058_v3 = vsub.f32 %v211_v5, %v8013_v6  ;;  %v8062_v43 = vand.u32 4294901760, %v216_v49  ;;  %v8064_v12 = vand.u32 4294901760, %v215_v15  ;;  %v1602_v55 = vand.u32 4294901760, %v7925_v7  ;;  %6096 = vmatpush1.bf16.msra.mxu0 %v7997_v61  ;;  %5906 = vmatprep.subr.bf16.mxu1 %v8007_v58 }
  0x9d   : > { %11325 = vst [vmem:[#allocation99_spill] sm:$0xff] %v8051_v34  ;;  %11326 = vst [vmem:[#allocation100_spill] sm:$0xff] %v8053_v25  ;;  %v11330_v47 = vand.u32 4294901760, %v7981_v17  ;;  %v1580_v5 = vand.u32 4294901760, %v1579_v45  ;;  %v1574_v11 = vand.u32 4294901760, %v1573_v57  ;;  %v8073_v31 = vsub.f32 %v214_v1, %v8044_v21  ;;  %6098 = vmatprep.subr.bf16.mxu0 %v8007_v58 }
  0x9e   : > { %11327 = vst [vmem:[#allocation101_spill] sm:$0xff] %v8058_v3  ;;  %11328 = vst [vmem:[#allocation102_spill] sm:$0xff] %v8062_v43  ;;  %v8079_v33 = vsub.f32 %v213_v8, %v8053_v25  ;;  %v1596_v61 = vand.u32 4294901760, %v7930_v35  ;;  %v1608_v6 = vand.u32 4294901760, %v7944_v32  ;;  %v1586_v9 = vand.u32 4294901760, %v1585_v2  ;;  %5908 = vmatpush1.bf16.msra.mxu1 %v8020_v28 }
  0x9f   : > { %11329 = vst [vmem:[#allocation103_spill] sm:$0xff] %v8064_v12  ;;  %v548_v18 = vsub.f32 %v7981_v17, %v11330_v47  ;;  %11331 = vst [vmem:[#allocation104_spill] sm:$0xff] %v8073_v31  ;;  %v11333_v45 = vand.u32 4294901760, %v8011_v4  ;;  %v11334_v1 = vand.u32 4294901760, %v7908_v50  ;;  %v1603_v58 = vsub.f32 %v7925_v7, %v1602_v55  ;;  %5910 = vmatprep.subr.bf16.mxu1 %v8026_v24 }
  0xa0   : > { %11332 = vst [vmem:[#allocation105_spill] sm:$0xff] %v8079_v33  ;;  %v11335_v10 = vand.u32 4294901760, %v8035_v41  ;;  %v8097_v2 = vsub.f32 %v216_v49, %v8062_v43  ;;  %6100 = vmatpush1.bf16.msra.mxu0 %v8020_v28  ;;  %v5913_v21 = vpack.c.bf16 %v1580_v5, %v1568_v0  ;;  %v11339_v49 = vand.u32 4294901760, %v8051_v34  ;;  %v217_v5 = vld [vmem:[%s7370_s26 + $0x50] sm:$0xff] }
  0xa1   : > { %v558_v57 = vsub.f32 %v8011_v4, %v11333_v45  ;;  %v1591_v47 = vsub.f32 %v7908_v50, %v11334_v1  ;;  %v8100_v45 = vsub.f32 %v215_v15, %v8064_v12  ;;  %v549_v1 = vand.u32 4294901760, %v548_v18  ;;  %6102 = vmatprep.subr.bf16.mxu0 %v8026_v24 }
  0xa2   : > { %v8093_v8 = vsub.f32 %v8035_v41, %v11335_v10  ;;  %11336 = vst [vmem:[#allocation106_spill] sm:$0xff] %v8097_v2  ;;  %v11338_v10 = vand.u32 4294901760, %v7897_v23  ;;  %v8112_v15 = vsub.f32 %v8051_v34, %v11339_v49  ;;  %v1597_v0 = vsub.f32 %v7930_v35, %v1596_v61  ;;  %5912 = vmatpush1.bf16.msra.mxu1 %v8032_v16 }
  0xa3   : > { %11337 = vst [vmem:[#allocation107_spill] sm:$0xff] %v8100_v45  ;;  %v1609_v18 = vsub.f32 %v7944_v32, %v1608_v6  ;;  %v5915_v19 = vpack.c.bf16 %v1586_v9, %v1574_v11  ;;  %v559_v28 = vand.u32 4294901760, %v558_v57  ;;  %v1592_v12 = vand.u32 4294901760, %v1591_v47  ;;  %v222_v32 = vld [vmem:[%s7370_s26 + $0x78] sm:$0xff]  ;;  %5914 = vmatprep.subr.bf16.mxu1 %v5913_v21 }
  0xa4   : > { %v6107_v7 = vpack.c.bf16 %v1584_v44, %v11338_v10  ;;  %v218_v44 = vld [vmem:[%s7370_s26 + $0x58] sm:$0xff]  ;;  %v220_v10 = vld [vmem:[%s7370_s26 + $0x68] sm:$0xff]  ;;  %v1604_v24 = vand.u32 4294901760, %v1603_v58  ;;  %v565_v43 = vand.u32 4294901760, %v8093_v8  ;;  %v11340_v23 = vand.u32 4294901760, %v8058_v3  ;;  %6104 = vmatpush1.bf16.msra.mxu0 %v8032_v16 }
  0xa5   : > { %v11341_v9 = vand.u32 4294901760, %v8073_v31  ;;  %v8137_v11 = vand.u32 4294901760, %v218_v44  ;;  %v8141_v57 = vand.u32 4294901760, %v220_v10  ;;  %6106 = vmatprep.subr.bf16.mxu0 %v6105_v62  ;;  %v575_v47 = vand.u32 4294901760, %v8112_v15  ;;  %550 = vmatmul.mubr.f32.vlgmr.msra.gmra.mrb[0].mxu1 %v549_v1 }
  0xa6   : > { %v8124_v49 = vsub.f32 %v8058_v3, %v11340_v23  ;;  %v8139_v23 = vand.u32 4294901760, %v217_v5  ;;  %v11342_v8 = vand.u32 4294901760, %v8079_v33  ;;  %v1598_v25 = vand.u32 4294901760, %v1597_v0  ;;  %5916 = vmatpush1.bf16.msra.mxu1 %v5915_v19  ;;  %560 = vmatprep.mubr.f32.mxu1 %v559_v28 }
  0xa7   : > { %v8135_v58 = vsub.f32 %v8073_v31, %v11341_v9  ;;  %v1610_v16 = vand.u32 4294901760, %v1609_v18  ;;  %v5917_v39 = vpack.c.bf16 %v1604_v24, %v1592_v12  ;;  %v11343_v9 = vand.u32 4294901760, %v7908_v50 }
  0xa8   : > { %v8147_v35 = vsub.f32 %v8079_v33, %v11342_v8  ;;  %v8151_v30 = vand.u32 4294901760, %v219_v29  ;;  %v8153_v36 = vand.u32 4294901760, %v222_v32  ;;  %v11346_v21 = vand.u32 4294901760, %v7981_v17  ;;  %v226_v17 = vld [vmem:[%s7370_s26 + $0x98] sm:$0xff] }
  0xa9   : > { %v6109_v56 = vpack.c.bf16 %v1602_v55, %v11343_v9  ;;  %v581_v62 = vand.u32 4294901760, %v8124_v49  ;;  %v11347_v15 = vand.u32 4294901760, %v8097_v2  ;;  %v11348_v24 = vand.u32 4294901760, %v8100_v45  ;;  %5918 = vmatprep.subr.bf16.mxu1 %v5917_v39  ;;  %566 = vmatmul.mubr.f32.gmra.mrb[2].mxu1 %v565_v43 }
  0xaa   : > { %11344 = vst [vmem:[#allocation108_spill] sm:$0xff] %v8151_v30  ;;  %11345 = vst [vmem:[#allocation109_spill] sm:$0xff] %v8153_v36  ;;  %3429 = vmatmul.mubr.f32.vlgmr.msra.gmra.mrb[0].mxu0 %v11346_v21  ;;  %v6111_v55 = vpack.c.bf16 %v1608_v6, %v1596_v61  ;;  %v8170_v1 = vsub.f32 %v218_v44, %v8137_v11  ;;  %v8173_v18 = vsub.f32 %v217_v5, %v8139_v23 }
  0xab   : > { %v8162_v0 = vsub.f32 %v8097_v2, %v11347_v15  ;;  %v8167_v12 = vsub.f32 %v8100_v45, %v11348_v24  ;;  %v8176_v49 = vsub.f32 %v220_v10, %v8141_v57  ;;  %v1614_v8 = vand.u32 4294901760, %v7949_v20  ;;  %6108 = vmatpush1.bf16.msra.mxu0 %v6107_v7  ;;  %v224_v10 = vld [vmem:[%s7370_s26 + $0x88] sm:$0xff]  ;;  %576 = vmatprep.mubr.f32.mxu1 %v575_v47  ;;  %v223_v24 = vld [vmem:[%s7370_s26 + $0x80] sm:$0xff] }
  0xac   : > { %11349 = vst [vmem:[#allocation110_spill] sm:$0xff] %v8170_v1  ;;  %11350 = vst [vmem:[#allocation111_spill] sm:$0xff] %v8173_v18  ;;  %v11352_v9 = vand.u32 4294901760, %v8011_v4  ;;  %v5919_v21 = vpack.c.bf16 %v1610_v16, %v1598_v25  ;;  %v8181_v61 = vand.u32 4294901760, %v221_v48  ;;  %v1626_v19 = vand.u32 4294901760, %v7957_v46  ;;  %6110 = vmatprep.subr.bf16.mxu0 %v6109_v56 }
  0xad   : > { %11351 = vst [vmem:[#allocation112_spill] sm:$0xff] %v8176_v49  ;;  %v1620_v6 = vand.u32 4294901760, %v7962_v13  ;;  %v8186_v28 = vsub.f32 %v219_v29, %v8151_v30  ;;  %v8189_v44 = vsub.f32 %v222_v32, %v8153_v36  ;;  %v1615_v5 = vsub.f32 %v7949_v20, %v1614_v8  ;;  %582 = vmatmul.mubr.f32.gmra.mrb[4].mxu1 %v581_v62  ;;  %v266_v36 = vld [vmem:[%s7370_s26 + $0x1d8] sm:$0xff] }
  0xae   : > { %3437 = vmatprep.mubr.f32.mxu0 %v11352_v9  ;;  %11353 = vst [vmem:[#allocation113_spill] sm:$0xff] %v8181_v61  ;;  %v1632_v7 = vand.u32 4294901760, %v7967_v14  ;;  %v11356_v16 = vand.u32 4294901760, %v8035_v41  ;;  %v591_v25 = vand.u32 4294901760, %v8135_v58  ;;  %v1627_v56 = vsub.f32 %v7957_v46, %v1626_v19  ;;  %5920 = vmatpush1.bf16.msra.mxu1 %v5919_v21 }
  0xaf   : > { %11354 = vst [vmem:[#allocation114_spill] sm:$0xff] %v8186_v28  ;;  %11355 = vst [vmem:[#allocation115_spill] sm:$0xff] %v8189_v44  ;;  %v1621_v29 = vsub.f32 %v7962_v13, %v1620_v6  ;;  %v6113_v39 = vpack.c.bf16 %v1626_v19, %v1614_v8  ;;  %v11357_v32 = vand.u32 4294901760, %v8051_v34  ;;  %v10710_v15 = vand.u32 4294901760, %v8170_v1  ;;  %6112 = vmatpush1.bf16.msra.mxu0 %v6111_v55 }
  0xb0   : > { %3441 = vmatmul.mubr.f32.gmra.mrb[2].mxu0 %v11356_v16  ;;  %v1616_v9 = vand.u32 4294901760, %v1615_v5  ;;  %v1633_v16 = vsub.f32 %v7967_v14, %v1632_v7  ;;  %v10709_v58 = vand.u32 4294901760, %v8176_v49  ;;  %v1628_v41 = vand.u32 4294901760, %v1627_v56  ;;  %592 = vmatprep.mubr.f32.mxu1 %v591_v25  ;;  %v225_v25 = vld [vmem:[%s7370_s26 + $0x90] sm:$0xff] }
  0xb1   : > { %3449 = vmatprep.mubr.f32.mxu0 %v11357_v32  ;;  %v1622_v4 = vand.u32 4294901760, %v1621_v29  ;;  %v6115_v8 = vpack.c.bf16 %v1632_v7, %v1620_v6  ;;  %v597_v47 = vand.u32 4294901760, %v8147_v35  ;;  %v8209_v19 = vsub.f32 %v221_v48, %v8181_v61  ;;  %6114 = vmatprep.subr.bf16.mxu0 %v6113_v39 }
  0xb2   : > { %v8211_v32 = vand.u32 4294901760, %v224_v10  ;;  %v1634_v43 = vand.u32 4294901760, %v1633_v16  ;;  %v11360_v5 = vand.u32 4294901760, %v8058_v3  ;;  %v10708_v55 = vand.u32 4294901760, %v8186_v28 }
  0xb3   : > { %11358 = vst [vmem:[#allocation116_spill] sm:$0xff] %v8209_v19  ;;  %v10707_v21 = vand.u32 4294901760, %v8189_v44  ;;  %v8217_v56 = vand.u32 4294901760, %v223_v24  ;;  %v5921_v6 = vpack.c.bf16 %v1628_v41, %v1616_v9  ;;  %v11362_v48 = vand.u32 4294901760, %v8073_v31  ;;  %6116 = vmatpush1.bf16.msra.mxu0 %v6115_v8  ;;  %598 = vmatmul.mubr.f32.gmra.mrb[6].mxu1 %v597_v47 }
  0xb4   : > { %11359 = vst [vmem:[#allocation117_spill] sm:$0xff] %v8211_v32  ;;  %3453 = vmatmul.mubr.f32.gmra.mrb[4].mxu0 %v11360_v5  ;;  %v607_v35 = vand.u32 4294901760, %v8162_v0  ;;  %v622_v62 = vsub.f32 %v8170_v1, %v10710_v15  ;;  %v5923_v7 = vpack.c.bf16 %v1634_v43, %v1622_v4  ;;  %v8225_v29 = vand.u32 4294901760, %v226_v17  ;;  %v230_v15 = vld [vmem:[%s7370_s26 + $0xb8] sm:$0xff] }
  0xb5   : > { %11361 = vst [vmem:[#allocation118_spill] sm:$0xff] %v8217_v56  ;;  %3461 = vmatprep.mubr.f32.mxu0 %v11362_v48  ;;  %v11364_v39 = vand.u32 4294901760, %v8173_v18  ;;  %v638_v41 = vsub.f32 %v8176_v49, %v10709_v58  ;;  %5922 = vmatprep.subr.bf16.mxu1 %v5921_v6  ;;  %v10711_v0 = vand.u32 4294901760, %v8209_v19  ;;  %v8236_v9 = vsub.f32 %v224_v10, %v8211_v32  ;;  %v228_v6 = vld [vmem:[%s7370_s26 + $0xa8] sm:$0xff] }
  0xb6   : > { %11363 = vst [vmem:[#allocation119_spill] sm:$0xff] %v8225_v29  ;;  %5924 = vmatpush1.bf16.msra.mxu1 %v5923_v7  ;;  %v11366_v4 = vand.u32 4294901760, %v8079_v33  ;;  %v613_v43 = vand.u32 4294901760, %v8167_v12  ;;  %v8244_v5 = vsub.f32 %v8186_v28, %v10708_v55  ;;  %v8249_v8 = vsub.f32 %v8189_v44, %v10707_v21  ;;  %608 = vmatprep.mubr.f32.mxu1 %v607_v35  ;;  %v227_v55 = vld [vmem:[%s7370_s26 + $0xa0] sm:$0xff] }
  0xb7   : > { %v628_v16 = vsub.f32 %v8173_v18, %v11364_v39  ;;  %11365 = vst [vmem:[#allocation120_spill] sm:$0xff] %v8236_v9  ;;  %v8252_v10 = vsub.f32 %v223_v24, %v8217_v56  ;;  %v11368_v47 = vand.u32 4294901760, %v8097_v2  ;;  %v623_v48 = vand.u32 4294901760, %v622_v62 }
  0xb8   : > { %3465 = vmatmul.mubr.f32.gmra.mrb[6].mxu0 %v11366_v4  ;;  %v8258_v12 = vsub.f32 %v226_v17, %v8225_v29  ;;  %v8260_v7 = vand.u32 4294901760, %v225_v25  ;;  %v1638_v39 = vand.u32 4294901760, %v7458_v40  ;;  %v639_v21 = vand.u32 4294901760, %v638_v41  ;;  %614 = vmatmul.mubr.f32.gmra.mrb[8].mxu1 %v613_v43 }
  0xb9   : > { %11367 = vst [vmem:[#allocation121_spill] sm:$0xff] %v8252_v10  ;;  %3473 = vmatprep.mubr.f32.mxu0 %v11368_v47  ;;  %v629_v4 = vand.u32 4294901760, %v628_v16  ;;  %v8267_v24 = vsub.f32 %v8209_v19, %v10711_v0  ;;  %v8270_v62 = vand.u32 4294901760, %v228_v6  ;;  %v11372_v47 = vand.u32 4294901760, %v8100_v45  ;;  %v229_v0 = vld [vmem:[%s7370_s26 + $0xb0] sm:$0xff]  ;;  %624 = vmatprep.mubr.f32.mxu1 %v623_v48 }
  0xba   : > { %11369 = vst [vmem:[#allocation122_spill] sm:$0xff] %v8258_v12  ;;  %11370 = vst [vmem:[#allocation123_spill] sm:$0xff] %v8260_v7  ;;  %v1639_v17 = vsub.f32 %v7458_v40, %v1638_v39  ;;  %v645_v16 = vand.u32 4294901760, %v8244_v5  ;;  %v655_v41 = vand.u32 4294901760, %v8249_v8  ;;  %v1650_v2 = vand.u32 4294901760, %v7462_v42  ;;  %v232_v5 = vld [vmem:[%s7370_s26 + $0xc8] sm:$0xff] }
  0xbb   : > { %11371 = vst [vmem:[#allocation124_spill] sm:$0xff] %v8270_v62  ;;  %v11373_v35 = vand.u32 4294901760, %v8170_v1  ;;  %v8285_v43 = vsub.f32 %v225_v25, %v8260_v7  ;;  %v1644_v8 = vand.u32 4294901760, %v7468_v52  ;;  %v1656_v31 = vand.u32 4294901760, %v7470_v53 }
  0xbc   : > { %3477 = vmatmul.mubr.f32.gmra.mrb[8].mxu0 %v11372_v47  ;;  %v8287_v47 = vand.u32 4294901760, %v227_v55  ;;  %v1640_v45 = vand.u32 4294901760, %v1639_v17  ;;  %v1651_v58 = vsub.f32 %v7462_v42, %v1650_v2  ;;  %v6117_v3 = vpack.c.bf16 %v1650_v2, %v1638_v39  ;;  %630 = vmatmul.mubr.f32.gmra.mrb[10].mxu1 %v629_v4 }
  0xbd   : > { %3485 = vmatprep.mubr.f32.mxu0 %v11373_v35  ;;  %11374 = vst [vmem:[#allocation125_spill] sm:$0xff] %v8285_v43  ;;  %v8294_v48 = vsub.f32 %v228_v6, %v8270_v62  ;;  %v8296_v35 = vand.u32 4294901760, %v230_v15  ;;  %v8298_v33 = vand.u32 4294901760, %v229_v0  ;;  %v1645_v25 = vsub.f32 %v7468_v52, %v1644_v8  ;;  %640 = vmatprep.mubr.f32.mxu1 %v639_v21 }
  0xbe   : > { %11375 = vst [vmem:[#allocation126_spill] sm:$0xff] %v8287_v47  ;;  %v11379_v1 = vand.u32 4294901760, %v8173_v18  ;;  %v8303_v17 = vand.u32 4294901760, %v232_v5  ;;  %v1652_v34 = vand.u32 4294901760, %v1651_v58  ;;  %v1657_v7 = vsub.f32 %v7470_v53, %v1656_v31  ;;  %v231_v58 = vld [vmem:[%s7370_s26 + $0xc0] sm:$0xff]  ;;  %6118 = vmatprep.subr.bf16.mxu0 %v6117_v3 }
  0xbf   : > { %11376 = vst [vmem:[#allocation127_spill] sm:$0xff] %v8294_v48  ;;  %11377 = vst [vmem:[#allocation128_spill] sm:$0xff] %v8296_v35  ;;  %v6119_v2 = vpack.c.bf16 %v1656_v31, %v1644_v8  ;;  %v11381_v6 = vand.u32 4294901760, %v8176_v49  ;;  %v11382_v39 = vand.u32 4294901760, %v8236_v9  ;;  %v1646_v18 = vand.u32 4294901760, %v1645_v25  ;;  %v234_v25 = vld [vmem:[%s7370_s26 + $0xd8] sm:$0xff] }
  0xc0   : > { %11378 = vst [vmem:[#allocation129_spill] sm:$0xff] %v8298_v33  ;;  %3489 = vmatmul.mubr.f32.gmra.mrb[10].mxu0 %v11379_v1  ;;  %11380 = vst [vmem:[#allocation130_spill] sm:$0xff] %v8303_v17  ;;  %v8313_v1 = vsub.f32 %v227_v55, %v8287_v47  ;;  %v661_v31 = vand.u32 4294901760, %v8267_v24  ;;  %v5925_v8 = vpack.c.bf16 %v1652_v34, %v1640_v45  ;;  %v1658_v21 = vand.u32 4294901760, %v1657_v7  ;;  %v233_v24 = vld [vmem:[%s7370_s26 + $0xd0] sm:$0xff]  ;;  %v236_v34 = vld [vmem:[%s7370_s26 + $0xe8] sm:$0xff] }
  0xc1   : > { %3497 = vmatprep.mubr.f32.mxu0 %v11381_v6  ;;  %v670_v62 = vsub.f32 %v8236_v9, %v11382_v39  ;;  %v11384_v6 = vand.u32 4294901760, %v8252_v10  ;;  %v11385_v29 = vand.u32 4294901760, %v8258_v12  ;;  %v8324_v4 = vsub.f32 %v230_v15, %v8296_v35  ;;  %6120 = vmatpush1.bf16.msra.mxu0 %v6119_v2  ;;  %v237_v35 = vld [vmem:[%s7370_s26 + $0xf0] sm:$0xff] }
  0xc2   : > { %11383 = vst [vmem:[#allocation131_spill] sm:$0xff] %v8313_v1  ;;  %v8327_v55 = vsub.f32 %v229_v0, %v8298_v33  ;;  %646 = vmatmul.mubr.f32.gmra.mrb[12].mxu1 %v645_v16  ;;  %v11388_v3 = vand.u32 4294901760, %v8186_v28  ;;  %v8336_v7 = vsub.f32 %v232_v5, %v8303_v17  ;;  %v5927_v15 = vpack.c.bf16 %v1658_v21, %v1646_v18 }
  0xc3   : > { %v676_v49 = vsub.f32 %v8252_v10, %v11384_v6  ;;  %v686_v39 = vsub.f32 %v8258_v12, %v11385_v29  ;;  %11386 = vst [vmem:[#allocation132_spill] sm:$0xff] %v8324_v4  ;;  %v8338_v29 = vand.u32 4294901760, %v231_v58  ;;  %656 = vmatprep.mubr.f32.mxu1 %v655_v41  ;;  %v11391_v0 = vand.u32 4294901760, %v8189_v44  ;;  %5926 = vmatprep.subr.bf16.mxu1 %v5925_v8 }
  0xc4   : > { %11387 = vst [vmem:[#allocation133_spill] sm:$0xff] %v8327_v55  ;;  %3501 = vmatmul.mubr.f32.gmra.mrb[12].mxu0 %v11388_v3  ;;  %11389 = vst [vmem:[#allocation134_spill] sm:$0xff] %v8336_v7  ;;  %v671_v6 = vand.u32 4294901760, %v670_v62  ;;  %v11392_v2 = vand.u32 4294901760, %v8285_v43  ;;  %v8346_v45 = vand.u32 4294901760, %v234_v25  ;;  %v8348_v5 = vand.u32 4294901760, %v233_v24  ;;  %5928 = vmatpush1.bf16.msra.mxu1 %v5927_v15 }
  0xc5   : > { %11390 = vst [vmem:[#allocation135_spill] sm:$0xff] %v8338_v29  ;;  %3509 = vmatprep.mubr.f32.mxu0 %v11391_v0  ;;  %v8350_v28 = vand.u32 4294901760, %v236_v34  ;;  %v677_v18 = vand.u32 4294901760, %v676_v49  ;;  %v687_v41 = vand.u32 4294901760, %v686_v39  ;;  %v11396_v0 = vand.u32 4294901760, %v8209_v19  ;;  %v235_v49 = vld [vmem:[%s7370_s26 + $0xe0] sm:$0xff] }
  0xc6   : > { %v692_v16 = vsub.f32 %v8285_v43, %v11392_v2  ;;  %11393 = vst [vmem:[#allocation136_spill] sm:$0xff] %v8346_v45  ;;  %11394 = vst [vmem:[#allocation137_spill] sm:$0xff] %v8348_v5  ;;  %662 = vmatmul.mubr.f32.gmra.mrb[14].mxu1 %v661_v31  ;;  %v11397_v2 = vand.u32 4294901760, %v8294_v48  ;;  %v8361_v44 = vsub.f32 %v231_v58, %v8338_v29  ;;  %v1662_v39 = vand.u32 4294901760, %v7472_v54 }
  0xc7   : > { %11395 = vst [vmem:[#allocation138_spill] sm:$0xff] %v8350_v28  ;;  %672 = vmatprep.mubr.f32.mxu1 %v671_v6  ;;  %v11399_v15 = vand.u32 4294901760, %v8236_v9  ;;  %v1668_v21 = vand.u32 4294901760, %v7478_v60  ;;  %v8373_v3 = vsub.f32 %v234_v25, %v8346_v45  ;;  %v8376_v58 = vsub.f32 %v233_v24, %v8348_v5  ;;  %v238_v9 = vld [vmem:[%s7370_s26 + $0xf8] sm:$0xff] }
  0xc8   : > { %3513 = vmatmul.mubr.f32.gmra.mrb[14].mxu0 %v11396_v0  ;;  %v702_v8 = vsub.f32 %v8294_v48, %v11397_v2  ;;  %11398 = vst [vmem:[#allocation139_spill] sm:$0xff] %v8361_v44  ;;  %v693_v31 = vand.u32 4294901760, %v692_v16  ;;  %v11400_v0 = vand.u32 4294901760, %v8313_v1  ;;  %v1674_v2 = vand.u32 4294901760, %v7476_v59 }
  0xc9   : > { %3521 = vmatprep.mubr.f32.mxu0 %v11399_v15  ;;  %11401 = vst [vmem:[#allocation140_spill] sm:$0xff] %v8373_v3  ;;  %11402 = vst [vmem:[#allocation141_spill] sm:$0xff] %v8376_v58  ;;  %v8379_v6 = vsub.f32 %v236_v34, %v8350_v28  ;;  %v1663_v16 = vsub.f32 %v7472_v54, %v1662_v39  ;;  %v8382_v15 = vand.u32 4294901760, %v235_v49  ;;  %v1680_v29 = vand.u32 4294901760, %v7484_v63 }
  0xca   : > { %v708_v62 = vsub.f32 %v8313_v1, %v11400_v0  ;;  %v1675_v0 = vsub.f32 %v7476_v59, %v1674_v2  ;;  %v1669_v19 = vsub.f32 %v7478_v60, %v1668_v21  ;;  %678 = vmatmul.mubr.f32.gmra.mrb[16].mxu1 %v677_v18  ;;  %v11405_v25 = vand.u32 4294901760, %v8252_v10 }
  0xcb   : > { %11403 = vst [vmem:[#allocation142_spill] sm:$0xff] %v8379_v6  ;;  %11404 = vst [vmem:[#allocation143_spill] sm:$0xff] %v8382_v15  ;;  %v703_v24 = vand.u32 4294901760, %v702_v8  ;;  %v11406_v34 = vand.u32 4294901760, %v8324_v4  ;;  %v1664_v5 = vand.u32 4294901760, %v1663_v16  ;;  %v6121_v45 = vpack.c.bf16 %v1674_v2, %v1662_v39  ;;  %688 = vmatprep.mubr.f32.mxu1 %v687_v41  ;;  %v240_v2 = vld [vmem:[%s7370_s26 + $0x108] sm:$0xff] }
  0xcc   : > { %3525 = vmatmul.mubr.f32.gmra.mrb[16].mxu0 %v11405_v25  ;;  %v11407_v17 = vand.u32 4294901760, %v8258_v12  ;;  %v10751_v33 = vand.u32 4294901760, %v8361_v44  ;;  %v1676_v47 = vand.u32 4294901760, %v1675_v0  ;;  %v1670_v18 = vand.u32 4294901760, %v1669_v19 }
  0xcd   : > { %v718_v28 = vsub.f32 %v8324_v4, %v11406_v34  ;;  %v1681_v10 = vsub.f32 %v7484_v63, %v1680_v29  ;;  %v8400_v56 = vand.u32 4294901760, %v238_v9  ;;  %6122 = vmatprep.subr.bf16.mxu0 %v6121_v45  ;;  %v6123_v39 = vpack.c.bf16 %v1680_v29, %v1668_v21 }
  0xce   : > { %3533 = vmatprep.mubr.f32.mxu0 %v11407_v17  ;;  %v10750_v41 = vand.u32 4294901760, %v8379_v6  ;;  %v8404_v17 = vsub.f32 %v235_v49, %v8382_v15  ;;  %v5929_v16 = vpack.c.bf16 %v1676_v47, %v1664_v5  ;;  %694 = vmatmul.mubr.f32.gmra.mrb[18].mxu1 %v693_v31  ;;  %v11410_v19 = vand.u32 4294901760, %v8285_v43  ;;  %v239_v47 = vld [vmem:[%s7370_s26 + $0x100] sm:$0xff] }
  0xcf   : > { %11408 = vst [vmem:[#allocation144_spill] sm:$0xff] %v8400_v56  ;;  %v1682_v0 = vand.u32 4294901760, %v1681_v10  ;;  %v709_v34 = vand.u32 4294901760, %v708_v62  ;;  %v11411_v25 = vand.u32 4294901760, %v8327_v55  ;;  %v8412_v45 = vand.u32 4294901760, %v237_v35  ;;  %704 = vmatprep.mubr.f32.mxu1 %v703_v24  ;;  %6124 = vmatpush1.bf16.msra.mxu0 %v6123_v39 }
  0xd0   : > { %11409 = vst [vmem:[#allocation145_spill] sm:$0xff] %v8404_v17  ;;  %3537 = vmatmul.mubr.f32.gmra.mrb[18].mxu0 %v11410_v19  ;;  %v11413_v29 = vand.u32 4294901760, %v8294_v48  ;;  %v719_v21 = vand.u32 4294901760, %v718_v28  ;;  %v11414_v49 = vand.u32 4294901760, %v8336_v7  ;;  %v740_v62 = vsub.f32 %v8361_v44, %v10751_v33  ;;  %5930 = vmatprep.subr.bf16.mxu1 %v5929_v16 }
  0xd1   : > { %v724_v8 = vsub.f32 %v8327_v55, %v11411_v25  ;;  %11412 = vst [vmem:[#allocation146_spill] sm:$0xff] %v8412_v45  ;;  %v5931_v5 = vpack.c.bf16 %v1682_v0, %v1670_v18  ;;  %v11415_v31 = vand.u32 4294901760, %v8373_v3  ;;  %v8427_v24 = vsub.f32 %v238_v9, %v8400_v56  ;;  %v246_v56 = vld [vmem:[%s7370_s26 + $0x138] sm:$0xff] }
  0xd2   : > { %3545 = vmatprep.mubr.f32.mxu0 %v11413_v29  ;;  %v734_v10 = vsub.f32 %v8336_v7, %v11414_v49  ;;  %v8429_v19 = vand.u32 4294901760, %v240_v2  ;;  %v11418_v28 = vand.u32 4294901760, %v8376_v58  ;;  %v8439_v18 = vsub.f32 %v8379_v6, %v10750_v41  ;;  %710 = vmatmul.mubr.f32.gmra.mrb[20].mxu1 %v709_v34 }
  0xd3   : > { %v750_v25 = vsub.f32 %v8373_v3, %v11415_v31  ;;  %11416 = vst [vmem:[#allocation147_spill] sm:$0xff] %v8427_v24  ;;  %5932 = vmatpush1.bf16.msra.mxu1 %v5931_v5  ;;  %v11419_v9 = vand.u32 4294901760, %v8313_v1  ;;  %v725_v39 = vand.u32 4294901760, %v724_v8  ;;  %v8445_v16 = vsub.f32 %v237_v35, %v8412_v45  ;;  %720 = vmatprep.mubr.f32.mxu1 %v719_v21  ;;  %v241_v8 = vld [vmem:[%s7370_s26 + $0x110] sm:$0xff]  ;;  %v243_v1 = vld [vmem:[%s7370_s26 + $0x120] sm:$0xff] }
  0xd4   : > { %11417 = vst [vmem:[#allocation148_spill] sm:$0xff] %v8429_v19  ;;  %v8434_v29 = vsub.f32 %v8376_v58, %v11418_v28  ;;  %v8447_v49 = vand.u32 4294901760, %v239_v47  ;;  %v11422_v31 = vand.u32 4294901760, %v8324_v4  ;;  %v735_v28 = vand.u32 4294901760, %v734_v10 }
  0xd5   : > { %3549 = vmatmul.mubr.f32.gmra.mrb[20].mxu0 %v11419_v9  ;;  %11420 = vst [vmem:[#allocation149_spill] sm:$0xff] %v8445_v16  ;;  %v741_v41 = vand.u32 4294901760, %v740_v62  ;;  %v751_v33 = vand.u32 4294901760, %v750_v25  ;;  %v8453_v34 = vsub.f32 %v240_v2, %v8429_v19  ;;  %v242_v9 = vld [vmem:[%s7370_s26 + $0x118] sm:$0xff]  ;;  %v767_v0 = vand.u32 4294901760, %v8439_v18 }
  0xd6   : > { %11421 = vst [vmem:[#allocation150_spill] sm:$0xff] %v8447_v49  ;;  %3557 = vmatprep.mubr.f32.mxu0 %v11422_v31  ;;  %v757_v35 = vand.u32 4294901760, %v8434_v29  ;;  %v11424_v21 = vand.u32 4294901760, %v8404_v17  ;;  %v1686_v10 = vand.u32 4294901760, %v7486_v22  ;;  %726 = vmatmul.mubr.f32.gmra.mrb[22].mxu1 %v725_v39  ;;  %v11425_v62 = vand.u32 4294901760, %v8327_v55  ;;  %v244_v29 = vld [vmem:[%s7370_s26 + $0x128] sm:$0xff] }
  0xd7   : > { %11423 = vst [vmem:[#allocation151_spill] sm:$0xff] %v8453_v34  ;;  %v8469_v25 = vsub.f32 %v239_v47, %v8447_v49  ;;  %v1698_v18 = vand.u32 4294901760, %v7496_v37  ;;  %v1692_v31 = vand.u32 4294901760, %v7498_v38  ;;  %736 = vmatprep.mubr.f32.mxu1 %v735_v28  ;;  %v8476_v5 = vand.u32 4294901760, %v242_v9 }
  0xd8   : > { %v8462_v4 = vsub.f32 %v8404_v17, %v11424_v21  ;;  %v11427_v21 = vand.u32 4294901760, %v8336_v7  ;;  %v8478_v39 = vand.u32 4294901760, %v241_v8  ;;  %v1704_v2 = vand.u32 4294901760, %v7505_v27 }
  0xd9   : > { %3561 = vmatmul.mubr.f32.gmra.mrb[22].mxu0 %v11425_v62  ;;  %11426 = vst [vmem:[#allocation152_spill] sm:$0xff] %v8469_v25  ;;  %11428 = vst [vmem:[#allocation153_spill] sm:$0xff] %v8476_v5  ;;  %v1687_v62 = vsub.f32 %v7486_v22, %v1686_v10  ;;  %v11430_v47 = vand.u32 4294901760, %v8427_v24  ;;  %v1699_v48 = vsub.f32 %v7496_v37, %v1698_v18  ;;  %v11432_v19 = vand.u32 4294901760, %v8361_v44 }
  0xda   : > { %3569 = vmatprep.mubr.f32.mxu0 %v11427_v21  ;;  %11429 = vst [vmem:[#allocation154_spill] sm:$0xff] %v8478_v39  ;;  %v1693_v28 = vsub.f32 %v7498_v38, %v1692_v31  ;;  %v6125_v7 = vpack.c.bf16 %v1698_v18, %v1686_v10  ;;  %v8488_v21 = vand.u32 4294901760, %v244_v29  ;;  %v1705_v12 = vsub.f32 %v7505_v27, %v1704_v2 }
  0xdb   : > { %v782_v55 = vsub.f32 %v8427_v24, %v11430_v47  ;;  %v1688_v43 = vand.u32 4294901760, %v1687_v62  ;;  %v6127_v49 = vpack.c.bf16 %v1704_v2, %v1692_v31  ;;  %742 = vmatmul.mubr.f32.gmra.mrb[24].mxu1 %v741_v41  ;;  %v1700_v15 = vand.u32 4294901760, %v1699_v48  ;;  %v248_v47 = vld [vmem:[%s7370_s26 + $0x148] sm:$0xff] }
  0xdc   : > { %11431 = vst [vmem:[#allocation155_spill] sm:$0xff] %v8488_v21  ;;  %v1694_v10 = vand.u32 4294901760, %v1693_v28  ;;  %752 = vmatprep.mubr.f32.mxu1 %v751_v33  ;;  %v11433_v18 = vand.u32 4294901760, %v8373_v3  ;;  %v8499_v62 = vsub.f32 %v242_v9, %v8476_v5  ;;  %v8502_v41 = vsub.f32 %v241_v8, %v8478_v39  ;;  %6126 = vmatprep.subr.bf16.mxu0 %v6125_v7  ;;  %v247_v8 = vld [vmem:[%s7370_s26 + $0x140] sm:$0xff]  ;;  %v254_v39 = vld [vmem:[%s7370_s26 + $0x178] sm:$0xff] }
  0xdd   : > { %3573 = vmatmul.mubr.f32.gmra.mrb[24].mxu0 %v11432_v19  ;;  %v8504_v2 = vand.u32 4294901760, %v243_v1  ;;  %v245_v19 = vld [vmem:[%s7370_s26 + $0x130] sm:$0xff]  ;;  %v1706_v31 = vand.u32 4294901760, %v1705_v12  ;;  %v773_v45 = vand.u32 4294901760, %v8462_v4  ;;  %v5933_v48 = vpack.c.bf16 %v1700_v15, %v1688_v43 }
  0xde   : > { %3581 = vmatprep.mubr.f32.mxu0 %v11433_v18  ;;  %11434 = vst [vmem:[#allocation156_spill] sm:$0xff] %v8499_v62  ;;  %11435 = vst [vmem:[#allocation157_spill] sm:$0xff] %v8502_v41  ;;  %v11437_v33 = vand.u32 4294901760, %v8445_v16  ;;  %v8513_v18 = vsub.f32 %v244_v29, %v8488_v21  ;;  %v8515_v9 = vand.u32 4294901760, %v246_v56  ;;  %6128 = vmatpush1.bf16.msra.mxu0 %v6127_v49  ;;  %v11440_v12 = vand.u32 4294901760, %v8376_v58 }
  0xdf   : > { %11436 = vst [vmem:[#allocation158_spill] sm:$0xff] %v8504_v2  ;;  %v5935_v3 = vpack.c.bf16 %v1706_v31, %v1694_v10  ;;  %758 = vmatmul.mubr.f32.gmra.mrb[26].mxu1 %v757_v35  ;;  %v783_v4 = vand.u32 4294901760, %v782_v55  ;;  %v11441_v43 = vand.u32 4294901760, %v8453_v34  ;;  %v11442_v15 = vand.u32 4294901760, %v8469_v25  ;;  %5934 = vmatprep.subr.bf16.mxu1 %v5933_v48 }
  0xe0   : > { %v788_v28 = vsub.f32 %v8445_v16, %v11437_v33  ;;  %11438 = vst [vmem:[#allocation159_spill] sm:$0xff] %v8513_v18  ;;  %11439 = vst [vmem:[#allocation160_spill] sm:$0xff] %v8515_v9  ;;  %v8526_v33 = vand.u32 4294901760, %v245_v19  ;;  %768 = vmatprep.mubr.f32.mxu1 %v767_v0  ;;  %v11444_v10 = vand.u32 4294901760, %v8379_v6  ;;  %v8533_v55 = vsub.f32 %v243_v1, %v8504_v2 }
  0xe1   : > { %3585 = vmatmul.mubr.f32.gmra.mrb[26].mxu0 %v11440_v12  ;;  %v798_v7 = vsub.f32 %v8453_v34, %v11441_v43  ;;  %v804_v29 = vsub.f32 %v8469_v25, %v11442_v15  ;;  %v8535_v31 = vand.u32 4294901760, %v248_v47  ;;  %v8537_v12 = vand.u32 4294901760, %v247_v8  ;;  %5936 = vmatpush1.bf16.msra.mxu1 %v5935_v3 }
  0xe2   : > { %11443 = vst [vmem:[#allocation161_spill] sm:$0xff] %v8526_v33  ;;  %3593 = vmatprep.mubr.f32.mxu0 %v11444_v10  ;;  %11445 = vst [vmem:[#allocation162_spill] sm:$0xff] %v8533_v55  ;;  %v789_v43 = vand.u32 4294901760, %v788_v28  ;;  %v10783_v15 = vand.u32 4294901760, %v8513_v18  ;;  %v8541_v0 = vsub.f32 %v246_v56, %v8515_v9  ;;  %v250_v10 = vld [vmem:[%s7370_s26 + $0x158] sm:$0xff]  ;;  %v11449_v49 = vand.u32 4294901760, %v8404_v17 }
  0xe3   : > { %11446 = vst [vmem:[#allocation163_spill] sm:$0xff] %v8535_v31  ;;  %11447 = vst [vmem:[#allocation164_spill] sm:$0xff] %v8537_v12  ;;  %774 = vmatmul.mubr.f32.gmra.mrb[28].mxu1 %v773_v45  ;;  %v799_v35 = vand.u32 4294901760, %v798_v7  ;;  %v805_v1 = vand.u32 4294901760, %v804_v29  ;;  %v8547_v6 = vsub.f32 %v245_v19, %v8526_v33  ;;  %v1710_v58 = vand.u32 4294901760, %v7507_v26  ;;  %v11458_v17 = vld [vmem:[#allocation23_spill] sm:$0xff] }
  0xe4   : > { %11448 = vst [vmem:[#allocation165_spill] sm:$0xff] %v8541_v0  ;;  %784 = vmatprep.mubr.f32.mxu1 %v783_v4  ;;  %v11451_v48 = vand.u32 4294901760, %v8427_v24  ;;  %v11452_v56 = vand.u32 4294901760, %v8499_v62  ;;  %v11453_v45 = vand.u32 4294901760, %v8502_v41  ;;  %v8560_v19 = vsub.f32 %v248_v47, %v8535_v31  ;;  %v11457_v24 = vld [vmem:[#allocation21_spill] sm:$0xff]  ;;  %v252_v31 = vld [vmem:[%s7370_s26 + $0x168] sm:$0xff] }
  0xe5   : > { %3597 = vmatmul.mubr.f32.gmra.mrb[28].mxu0 %v11449_v49  ;;  %11450 = vst [vmem:[#allocation166_spill] sm:$0xff] %v8547_v6  ;;  %v8563_v4 = vsub.f32 %v247_v8, %v8537_v12  ;;  %v8565_v29 = vand.u32 4294901760, %v250_v10  ;;  %v1711_v49 = vsub.f32 %v7507_v26, %v1710_v58  ;;  %v1716_v7 = vand.u32 4294901760, %v11457_v24  ;;  %v249_v12 = vld [vmem:[%s7370_s26 + $0x150] sm:$0xff] }
  0xe6   : > { %3605 = vmatprep.mubr.f32.mxu0 %v11451_v48  ;;  %v814_v3 = vsub.f32 %v8499_v62, %v11452_v56  ;;  %v820_v28 = vsub.f32 %v8502_v41, %v11453_v45  ;;  %11454 = vst [vmem:[#allocation167_spill] sm:$0xff] %v8560_v19  ;;  %v1722_v48 = vand.u32 4294901760, %v7518_v51  ;;  %v830_v56 = vsub.f32 %v8513_v18, %v10783_v15 }
  0xe7   : > { %11455 = vst [vmem:[#allocation168_spill] sm:$0xff] %v8563_v4  ;;  %11456 = vst [vmem:[#allocation169_spill] sm:$0xff] %v8565_v29  ;;  %v1728_v47 = vand.u32 4294901760, %v11458_v17  ;;  %790 = vmatmul.mubr.f32.gmra.mrb[30].mxu1 %v789_v43  ;;  %v11459_v8 = vand.u32 4294901760, %v8445_v16  ;;  %v1712_v33 = vand.u32 4294901760, %v1711_v49  ;;  %v11460_v45 = vand.u32 4294901760, %v8453_v34 }
  0xe8   : > { %v1723_v9 = vsub.f32 %v7518_v51, %v1722_v48  ;;  %v6129_v15 = vpack.c.bf16 %v1722_v48, %v1710_v58  ;;  %800 = vmatprep.mubr.f32.mxu1 %v799_v35  ;;  %v815_v2 = vand.u32 4294901760, %v814_v3  ;;  %v1717_v16 = vsub.f32 %v11457_v24, %v1716_v7  ;;  %v251_v49 = vld [vmem:[%s7370_s26 + $0x160] sm:$0xff] }
  0xe9   : > { %3609 = vmatmul.mubr.f32.gmra.mrb[30].mxu0 %v11459_v8  ;;  %v1729_v8 = vsub.f32 %v11458_v17, %v1728_v47  ;;  %v8588_v44 = vsub.f32 %v250_v10, %v8565_v29  ;;  %v6131_v35 = vpack.c.bf16 %v1728_v47, %v1716_v7  ;;  %v8592_v48 = vand.u32 4294901760, %v249_v12 }
  0xea   : > { %3617 = vmatprep.mubr.f32.mxu0 %v11460_v45  ;;  %v1724_v58 = vand.u32 4294901760, %v1723_v9  ;;  %6130 = vmatprep.subr.bf16.mxu0 %v6129_v15  ;;  %v8594_v3 = vand.u32 4294901760, %v252_v31  ;;  %v1718_v45 = vand.u32 4294901760, %v1717_v16  ;;  %v11464_v34 = vand.u32 4294901760, %v8469_v25  ;;  %v253_v9 = vld [vmem:[%s7370_s26 + $0x170] sm:$0xff] }
  0xeb   : > { %11461 = vst [vmem:[#allocation21_spill] sm:$0xff] %v8588_v44  ;;  %11462 = vst [vmem:[#allocation170_spill] sm:$0xff] %v8592_v48  ;;  %v1730_v43 = vand.u32 4294901760, %v1729_v8  ;;  %806 = vmatmul.mubr.f32.gmra.mrb[32].mxu1 %v805_v1  ;;  %v821_v21 = vand.u32 4294901760, %v820_v28  ;;  %v831_v5 = vand.u32 4294901760, %v830_v56  ;;  %v11465_v10 = vand.u32 4294901760, %v8533_v55  ;;  %6132 = vmatpush1.bf16.msra.mxu0 %v6131_v35 }
  0xec   : > { %11463 = vst [vmem:[#allocation171_spill] sm:$0xff] %v8594_v3  ;;  %v5937_v15 = vpack.c.bf16 %v1724_v58, %v1712_v33  ;;  %816 = vmatprep.mubr.f32.mxu1 %v815_v2  ;;  %v11466_v7 = vand.u32 4294901760, %v8499_v62  ;;  %v11467_v47 = vand.u32 4294901760, %v8541_v0  ;;  %v8607_v1 = vand.u32 4294901760, %v251_v49 }
  0xed   : > { %3621 = vmatmul.mubr.f32.gmra.mrb[32].mxu0 %v11464_v34  ;;  %v836_v29 = vsub.f32 %v8533_v55, %v11465_v10  ;;  %v8609_v8 = vand.u32 4294901760, %v254_v39  ;;  %v256_v34 = vld [vmem:[%s7370_s26 + $0x188] sm:$0xff]  ;;  %v5939_v28 = vpack.c.bf16 %v1730_v43, %v1718_v45  ;;  %v11470_v56 = vand.u32 4294901760, %v8547_v6 }
  0xee   : > { %3629 = vmatprep.mubr.f32.mxu0 %v11466_v7  ;;  %v846_v16 = vsub.f32 %v8541_v0, %v11467_v47  ;;  %11468 = vst [vmem:[#allocation172_spill] sm:$0xff] %v8607_v1  ;;  %v11471_v33 = vand.u32 4294901760, %v8560_v19  ;;  %v11472_v58 = vand.u32 4294901760, %v8563_v4  ;;  %5938 = vmatprep.subr.bf16.mxu1 %v5937_v15  ;;  %v8625_v43 = vsub.f32 %v249_v12, %v8592_v48  ;;  %v11481_v47 = vld [vmem:[#allocation25_spill] sm:$0xff] }
  0xef   : > { %11469 = vst [vmem:[#allocation173_spill] sm:$0xff] %v8609_v8  ;;  %v852_v10 = vsub.f32 %v8547_v6, %v11470_v56  ;;  %v8628_v45 = vsub.f32 %v252_v31, %v8594_v3  ;;  %v8630_v56 = vand.u32 4294901760, %v253_v9  ;;  %5940 = vmatpush1.bf16.msra.mxu1 %v5939_v28  ;;  %v8634_v62 = vand.u32 4294901760, %v256_v34  ;;  %v255_v28 = vld [vmem:[%s7370_s26 + $0x180] sm:$0xff] }
  0xf0   : > { %v862_v2 = vsub.f32 %v8560_v19, %v11471_v33  ;;  %v8621_v7 = vsub.f32 %v8563_v4, %v11472_v58  ;;  %11473 = vst [vmem:[#allocation174_spill] sm:$0xff] %v8625_v43  ;;  %822 = vmatmul.mubr.f32.gmra.mrb[34].mxu1 %v821_v21  ;;  %v11476_v33 = vand.u32 4294901760, %v8502_v41  ;;  %v837_v58 = vand.u32 4294901760, %v836_v29 }
  0xf1   : > { %11474 = vst [vmem:[#allocation175_spill] sm:$0xff] %v8628_v45  ;;  %11475 = vst [vmem:[#allocation176_spill] sm:$0xff] %v8630_v56  ;;  %832 = vmatprep.mubr.f32.mxu1 %v831_v5  ;;  %v11478_v35 = vand.u32 4294901760, %v8513_v18  ;;  %v847_v12 = vand.u32 4294901760, %v846_v16  ;;  %v8639_v15 = vsub.f32 %v251_v49, %v8607_v1  ;;  %v8642_v31 = vsub.f32 %v254_v39, %v8609_v8  ;;  %v258_v18 = vld [vmem:[%s7370_s26 + $0x198] sm:$0xff]  ;;  %v11488_v16 = vld [vmem:[#allocation27_spill] sm:$0xff] }
  0xf2   : > { %3633 = vmatmul.mubr.f32.gmra.mrb[34].mxu0 %v11476_v33  ;;  %11477 = vst [vmem:[#allocation177_spill] sm:$0xff] %v8634_v62  ;;  %v1734_v21 = vand.u32 4294901760, %v11481_v47  ;;  %v853_v25 = vand.u32 4294901760, %v852_v10  ;;  %v863_v41 = vand.u32 4294901760, %v862_v2  ;;  %v869_v29 = vand.u32 4294901760, %v8621_v7  ;;  %v257_v49 = vld [vmem:[%s7370_s26 + $0x190] sm:$0xff] }
  0xf3   : > { %3641 = vmatprep.mubr.f32.mxu0 %v11478_v35  ;;  %11479 = vst [vmem:[#allocation178_spill] sm:$0xff] %v8639_v15  ;;  %11480 = vst [vmem:[#allocation179_spill] sm:$0xff] %v8642_v31  ;;  %v11482_v33 = vand.u32 4294901760, %v8588_v44  ;;  %v8654_v35 = vsub.f32 %v253_v9, %v8630_v56  ;;  %v11484_v10 = vand.u32 4294901760, %v8533_v55  ;;  %v8660_v2 = vsub.f32 %v256_v34, %v8634_v62  ;;  %v11491_v34 = vld [vmem:[#allocation29_spill] sm:$0xff] }
  0xf4   : > { %v1735_v39 = vsub.f32 %v11481_v47, %v1734_v21  ;;  %838 = vmatmul.mubr.f32.gmra.mrb[36].mxu1 %v837_v58  ;;  %v8662_v7 = vand.u32 4294901760, %v255_v28  ;;  %v1740_v1 = vand.u32 4294901760, %v11488_v16  ;;  %v11489_v9 = vand.u32 4294901760, %v8541_v0 }
  0xf5   : > { %v878_v5 = vsub.f32 %v8588_v44, %v11482_v33  ;;  %11483 = vst [vmem:[#allocation180_spill] sm:$0xff] %v8654_v35  ;;  %11485 = vst [vmem:[#allocation181_spill] sm:$0xff] %v8660_v2  ;;  %v11487_v33 = vld [vmem:[#allocation26_spill] sm:$0xff]  ;;  %848 = vmatprep.mubr.f32.mxu1 %v847_v12  ;;  %v1752_v55 = vand.u32 4294901760, %v11491_v34  ;;  %v11492_v12 = vand.u32 4294901760, %v8625_v43  ;;  %v8696_v61 = vand.u32 4294901760, %v257_v49 }
  0xf6   : > { %3645 = vmatmul.mubr.f32.gmra.mrb[36].mxu0 %v11484_v10  ;;  %11486 = vst [vmem:[#allocation182_spill] sm:$0xff] %v8662_v7  ;;  %v1746_v8 = vand.u32 4294901760, %v11487_v33  ;;  %v8670_v10 = vand.u32 4294901760, %v258_v18  ;;  %v1736_v62 = vand.u32 4294901760, %v1735_v39  ;;  %v1741_v3 = vsub.f32 %v11488_v16, %v1740_v1 }
  0xf7   : > { %3653 = vmatprep.mubr.f32.mxu0 %v11489_v9  ;;  %v884_v0 = vsub.f32 %v8625_v43, %v11492_v12  ;;  %v1753_v58 = vsub.f32 %v11491_v34, %v1752_v55  ;;  %v6135_v32 = vpack.c.bf16 %v1752_v55, %v1740_v1  ;;  %v11493_v39 = vand.u32 4294901760, %v8547_v6  ;;  %11498 = vst [vmem:[#allocation186_spill] sm:$0xff] %v8696_v61  ;;  %v262_v6 = vld [vmem:[%s7370_s26 + $0x1b8] sm:$0xff] }
  0xf8   : > { %11490 = vst [vmem:[#allocation183_spill] sm:$0xff] %v8670_v10  ;;  %v1747_v56 = vsub.f32 %v11487_v33, %v1746_v8  ;;  %v6133_v48 = vpack.c.bf16 %v1746_v8, %v1734_v21  ;;  %854 = vmatmul.mubr.f32.gmra.mrb[38].mxu1 %v853_v25  ;;  %v8685_v8 = vsub.f32 %v255_v28, %v8662_v7  ;;  %v260_v21 = vld [vmem:[%s7370_s26 + $0x1a8] sm:$0xff]  ;;  %v1742_v12 = vand.u32 4294901760, %v1741_v3  ;;  %v259_v28 = vld [vmem:[%s7370_s26 + $0x1a0] sm:$0xff] }
  0xf9   : > { %864 = vmatprep.mubr.f32.mxu1 %v863_v41  ;;  %v11495_v9 = vand.u32 4294901760, %v8560_v19  ;;  %v879_v34 = vand.u32 4294901760, %v878_v5  ;;  %v11496_v55 = vand.u32 4294901760, %v8628_v45  ;;  %v8694_v1 = vsub.f32 %v258_v18, %v8670_v10  ;;  %v261_v10 = vld [vmem:[%s7370_s26 + $0x1b0] sm:$0xff]  ;;  %v279_v33 = vld [vmem:[%s7370_s26 + $0x240] sm:$0xff] }
  0xfa   : > { %3657 = vmatmul.mubr.f32.gmra.mrb[38].mxu0 %v11493_v39  ;;  %11494 = vst [vmem:[#allocation184_spill] sm:$0xff] %v8685_v8  ;;  %v1748_v16 = vand.u32 4294901760, %v1747_v56  ;;  %v1754_v39 = vand.u32 4294901760, %v1753_v58  ;;  %6134 = vmatprep.subr.bf16.mxu0 %v6133_v48  ;;  %v11499_v41 = vand.u32 4294901760, %v8639_v15  ;;  %v11500_v5 = vand.u32 4294901760, %v8642_v31 }
  0xfb   : > { %3665 = vmatprep.mubr.f32.mxu0 %v11495_v9  ;;  %v894_v25 = vsub.f32 %v8628_v45, %v11496_v55  ;;  %11497 = vst [vmem:[#allocation185_spill] sm:$0xff] %v8694_v1  ;;  %v8706_v55 = vand.u32 4294901760, %v260_v21  ;;  %6136 = vmatpush1.bf16.msra.mxu0 %v6135_v32  ;;  %v11502_v58 = vand.u32 4294901760, %v8563_v4  ;;  %v885_v19 = vand.u32 4294901760, %v884_v0 }
  0xfc   : > { %v5941_v56 = vpack.c.bf16 %v1748_v16, %v1736_v62  ;;  %v900_v3 = vsub.f32 %v8639_v15, %v11499_v41  ;;  %v910_v9 = vsub.f32 %v8642_v31, %v11500_v5  ;;  %v5943_v18 = vpack.c.bf16 %v1754_v39, %v1742_v12  ;;  %870 = vmatmul.mubr.f32.gmra.mrb[40].mxu1 %v869_v29  ;;  %v264_v5 = vld [vmem:[%s7370_s26 + $0x1c8] sm:$0xff] }
  0xfd   : > { %11501 = vst [vmem:[#allocation187_spill] sm:$0xff] %v8706_v55  ;;  %v11503_v62 = vand.u32 4294901760, %v8654_v35  ;;  %v11504_v16 = vand.u32 4294901760, %v8660_v2  ;;  %880 = vmatprep.mubr.f32.mxu1 %v879_v34  ;;  %v11505_v32 = vand.u32 4294901760, %v8588_v44  ;;  %v895_v29 = vand.u32 4294901760, %v894_v25 }
  0xfe   : > { %3669 = vmatmul.mubr.f32.gmra.mrb[40].mxu0 %v11502_v58  ;;  %v8723_v12 = vand.u32 4294901760, %v259_v28  ;;  %v8725_v39 = vand.u32 4294901760, %v262_v6  ;;  %v8728_v58 = vsub.f32 %v257_v49, %v8696_v61  ;;  %5942 = vmatprep.subr.bf16.mxu1 %v5941_v56  ;;  %v8733_v34 = vand.u32 4294901760, %v261_v10 }
  0xff   : > { %v916_v48 = vsub.f32 %v8654_v35, %v11503_v62  ;;  %v8716_v41 = vsub.f32 %v8660_v2, %v11504_v16  ;;  %3677 = vmatprep.mubr.f32.mxu0 %v11505_v32  ;;  %v901_v62 = vand.u32 4294901760, %v900_v3  ;;  %v8731_v16 = vsub.f32 %v260_v21, %v8706_v55  ;;  %5944 = vmatpush1.bf16.msra.mxu1 %v5943_v18 }
 0x100   : > { %11506 = vst [vmem:[#allocation188_spill] sm:$0xff] %v8723_v12  ;;  %11507 = vst [vmem:[#allocation189_spill] sm:$0xff] %v8725_v39  ;;  %886 = vmatmul.mubr.f32.gmra.mrb[42].mxu1 %v885_v19  ;;  %v11511_v25 = vand.u32 4294901760, %v8625_v43  ;;  %v911_v32 = vand.u32 4294901760, %v910_v9  ;;  %v11512_v49 = vand.u32 4294901760, %v8685_v8  ;;  %v11513_v21 = vand.u32 4294901760, %v8628_v45 }
 0x101   : > { %11508 = vst [vmem:[#allocation190_spill] sm:$0xff] %v8728_v58  ;;  %11509 = vst [vmem:[#allocation191_spill] sm:$0xff] %v8731_v16  ;;  %v917_v0 = vand.u32 4294901760, %v916_v48  ;;  %v927_v44 = vand.u32 4294901760, %v8716_v41  ;;  %896 = vmatprep.mubr.f32.mxu1 %v895_v29  ;;  %v11514_v3 = vand.u32 4294901760, %v8694_v1  ;;  %v8750_v19 = vsub.f32 %v259_v28, %v8723_v12  ;;  %v263_v48 = vld [vmem:[%s7370_s26 + $0x1c0] sm:$0xff] }
 0x102   : > { %11510 = vst [vmem:[#allocation192_spill] sm:$0xff] %v8733_v34  ;;  %3681 = vmatmul.mubr.f32.gmra.mrb[42].mxu0 %v11511_v25  ;;  %v932_v56 = vsub.f32 %v8685_v8, %v11512_v49  ;;  %v8753_v9 = vsub.f32 %v262_v6, %v8725_v39  ;;  %v11517_v41 = vld [vmem:[#allocation30_spill] sm:$0xff]  ;;  %v8758_v29 = vand.u32 4294901760, %v264_v5  ;;  %v11519_v45 = vld [vmem:[#allocation31_spill] sm:$0xff]  ;;  %v11520_v43 = vld [vmem:[#allocation32_spill] sm:$0xff]  ;;  %v8764_v28 = vsub.f32 %v261_v10, %v8733_v34 }
 0x103   : > { %3689 = vmatprep.mubr.f32.mxu0 %v11513_v21  ;;  %v8747_v18 = vsub.f32 %v8694_v1, %v11514_v3  ;;  %11515 = vst [vmem:[#allocation193_spill] sm:$0xff] %v8750_v19  ;;  %v1758_v25 = vand.u32 4294901760, %v11517_v41  ;;  %v1770_v21 = vand.u32 4294901760, %v11519_v45  ;;  %v1764_v4 = vand.u32 4294901760, %v11520_v43  ;;  %v11522_v39 = vld [vmem:[#allocation33_spill] sm:$0xff] }
 0x104   : > { %11516 = vst [vmem:[#allocation194_spill] sm:$0xff] %v8753_v9  ;;  %11518 = vst [vmem:[#allocation195_spill] sm:$0xff] %v8758_v29  ;;  %v1776_v12 = vand.u32 4294901760, %v11522_v39  ;;  %902 = vmatmul.mubr.f32.gmra.mrb[44].mxu1 %v901_v62  ;;  %v11523_v49 = vand.u32 4294901760, %v8639_v15  ;;  %v8770_v55 = vand.u32 4294901760, %v263_v48  ;;  %v11525_v10 = vand.u32 4294901760, %v8642_v31 }
 0x105   : > { %11521 = vst [vmem:[#allocation196_spill] sm:$0xff] %v8764_v28  ;;  %v1759_v6 = vsub.f32 %v11517_v41, %v1758_v25  ;;  %v1771_v61 = vsub.f32 %v11519_v45, %v1770_v21  ;;  %v1765_v7 = vsub.f32 %v11520_v43, %v1764_v4  ;;  %v6137_v3 = vpack.c.bf16 %v1770_v21, %v1758_v25  ;;  %v265_v45 = vld [vmem:[%s7370_s26 + $0x1d0] sm:$0xff]  ;;  %v268_v43 = vld [vmem:[%s7370_s26 + $0x1e8] sm:$0xff] }
 0x106   : > { %3693 = vmatmul.mubr.f32.gmra.mrb[44].mxu0 %v11523_v49  ;;  %11524 = vst [vmem:[#allocation197_spill] sm:$0xff] %v8770_v55  ;;  %912 = vmatprep.mubr.f32.mxu1 %v911_v32  ;;  %v1777_v15 = vsub.f32 %v11522_v39, %v1776_v12  ;;  %v8781_v49 = vsub.f32 %v264_v5, %v8758_v29  ;;  %v943_v34 = vand.u32 4294901760, %v8747_v18  ;;  %v11527_v41 = vand.u32 4294901760, %v8728_v58 }
 0x107   : > { %3701 = vmatprep.mubr.f32.mxu0 %v11525_v10  ;;  %v1760_v62 = vand.u32 4294901760, %v1759_v6  ;;  %v1772_v25 = vand.u32 4294901760, %v1771_v61  ;;  %v1766_v32 = vand.u32 4294901760, %v1765_v7  ;;  %6138 = vmatprep.subr.bf16.mxu0 %v6137_v3  ;;  %v6139_v21 = vpack.c.bf16 %v1776_v12, %v1764_v4  ;;  %v267_v4 = vld [vmem:[%s7370_s26 + $0x1e0] sm:$0xff]  ;;  %v270_v7 = vld [vmem:[%s7370_s26 + $0x1f8] sm:$0xff] }
 0x108   : > { %11526 = vst [vmem:[#allocation198_spill] sm:$0xff] %v8781_v49  ;;  %v933_v10 = vand.u32 4294901760, %v932_v56  ;;  %v948_v6 = vsub.f32 %v8728_v58, %v11527_v41  ;;  %v1778_v31 = vand.u32 4294901760, %v1777_v15  ;;  %918 = vmatmul.mubr.f32.gmra.mrb[46].mxu1 %v917_v0  ;;  %v11528_v5 = vand.u32 4294901760, %v8654_v35  ;;  %v272_v35 = vld [vmem:[%s7370_s26 + $0x208] sm:$0xff] }
 0x109   : > { %v10850_v29 = vand.u32 4294901760, %v8764_v28  ;;  %v8793_v39 = vsub.f32 %v263_v48, %v8770_v55  ;;  %v8795_v61 = vand.u32 4294901760, %v266_v36  ;;  %v5945_v12 = vpack.c.bf16 %v1772_v25, %v1760_v62  ;;  %928 = vmatprep.mubr.f32.mxu1 %v927_v44  ;;  %6140 = vmatpush1.bf16.msra.mxu0 %v6139_v21 }
 0x10a   : > { %3705 = vmatmul.mubr.f32.gmra.mrb[46].mxu0 %v11528_v5  ;;  %v11531_v56 = vand.u32 4294901760, %v8660_v2  ;;  %v11532_v15 = vand.u32 4294901760, %v8731_v16  ;;  %v8804_v18 = vand.u32 4294901760, %v265_v45  ;;  %v8806_v41 = vand.u32 4294901760, %v268_v43 }
 0x10b   : > { %11529 = vst [vmem:[#allocation199_spill] sm:$0xff] %v8793_v39  ;;  %11530 = vst [vmem:[#allocation200_spill] sm:$0xff] %v8795_v61  ;;  %v5947_v48 = vpack.c.bf16 %v1778_v31, %v1766_v32  ;;  %v11535_v3 = vand.u32 4294901760, %v8750_v19  ;;  %v11536_v62 = vand.u32 4294901760, %v8753_v9  ;;  %5946 = vmatprep.subr.bf16.mxu1 %v5945_v12  ;;  %v11539_v31 = vand.u32 4294901760, %v8685_v8  ;;  %v269_v12 = vld [vmem:[%s7370_s26 + $0x1f0] sm:$0xff] }
 0x10c   : > { %3713 = vmatprep.mubr.f32.mxu0 %v11531_v56  ;;  %v958_v0 = vsub.f32 %v8731_v16, %v11532_v15  ;;  %11533 = vst [vmem:[#allocation201_spill] sm:$0xff] %v8804_v18  ;;  %11534 = vst [vmem:[#allocation202_spill] sm:$0xff] %v8806_v41  ;;  %v8815_v56 = vand.u32 4294901760, %v267_v4  ;;  %v8817_v15 = vand.u32 4294901760, %v270_v7  ;;  %934 = vmatmul.mubr.f32.gmra.mrb[48].mxu1 %v933_v10  ;;  %v949_v32 = vand.u32 4294901760, %v948_v6 }
 0x10d   : > { %v964_v5 = vsub.f32 %v8750_v19, %v11535_v3  ;;  %v974_v44 = vsub.f32 %v8753_v9, %v11536_v62  ;;  %5948 = vmatpush1.bf16.msra.mxu1 %v5947_v48  ;;  %v8824_v3 = vsub.f32 %v8764_v28, %v10850_v29  ;;  %v8828_v21 = vsub.f32 %v266_v36, %v8795_v61  ;;  %v11555_v61 = vld [vmem:[#allocation39_spill] sm:$0xff] }
 0x10e   : > { %11537 = vst [vmem:[#allocation203_spill] sm:$0xff] %v8815_v56  ;;  %11538 = vst [vmem:[#allocation204_spill] sm:$0xff] %v8817_v15  ;;  %3717 = vmatmul.mubr.f32.gmra.mrb[48].mxu0 %v11539_v31  ;;  %944 = vmatprep.mubr.f32.mxu1 %v943_v34  ;;  %v11541_v48 = vand.u32 4294901760, %v8694_v1  ;;  %v959_v10 = vand.u32 4294901760, %v958_v0  ;;  %v8834_v25 = vsub.f32 %v265_v45, %v8804_v18  ;;  %v11544_v31 = vld [vmem:[#allocation35_spill] sm:$0xff]  ;;  %v11545_v62 = vand.u32 4294901760, %v8781_v49 }
 0x10f   : > { %11540 = vst [vmem:[#allocation205_spill] sm:$0xff] %v8828_v21  ;;  %v8837_v6 = vsub.f32 %v268_v43, %v8806_v41  ;;  %v1782_v29 = vand.u32 4294901760, %v11544_v31  ;;  %v965_v8 = vand.u32 4294901760, %v964_v5  ;;  %v975_v2 = vand.u32 4294901760, %v974_v44  ;;  %v11551_v1 = vld [vmem:[#allocation36_spill] sm:$0xff] }
 0x110   : > { %3725 = vmatprep.mubr.f32.mxu0 %v11541_v48  ;;  %11542 = vst [vmem:[#allocation206_spill] sm:$0xff] %v8834_v25  ;;  %v990_v36 = vsub.f32 %v8781_v49, %v11545_v62  ;;  %v8845_v34 = vsub.f32 %v267_v4, %v8815_v56  ;;  %v8848_v0 = vsub.f32 %v270_v7, %v8817_v15  ;;  %v8850_v45 = vand.u32 4294901760, %v269_v12  ;;  %v11554_v56 = vld [vmem:[#allocation38_spill] sm:$0xff] }
 0x111   : > { %11543 = vst [vmem:[#allocation207_spill] sm:$0xff] %v8837_v6  ;;  %v1783_v43 = vsub.f32 %v11544_v31, %v1782_v29  ;;  %950 = vmatmul.mubr.f32.gmra.mrb[50].mxu1 %v949_v32  ;;  %v11549_v5 = vand.u32 4294901760, %v8728_v58  ;;  %v981_v44 = vand.u32 4294901760, %v8824_v3  ;;  %v11550_v62 = vand.u32 4294901760, %v8793_v39  ;;  %v271_v3 = vld [vmem:[%s7370_s26 + $0x200] sm:$0xff] }
 0x112   : > { %11546 = vst [vmem:[#allocation208_spill] sm:$0xff] %v8845_v34  ;;  %11547 = vst [vmem:[#allocation209_spill] sm:$0xff] %v8848_v0  ;;  %v1794_v7 = vand.u32 4294901760, %v11551_v1  ;;  %960 = vmatprep.mubr.f32.mxu1 %v959_v10  ;;  %v11552_v15 = vand.u32 4294901760, %v8731_v16  ;;  %v1788_v41 = vand.u32 4294901760, %v11554_v56  ;;  %v1800_v4 = vand.u32 4294901760, %v11555_v61 }
 0x113   : > { %11548 = vst [vmem:[#allocation210_spill] sm:$0xff] %v8850_v45  ;;  %3729 = vmatmul.mubr.f32.gmra.mrb[50].mxu0 %v11549_v5  ;;  %v8859_v48 = vsub.f32 %v8793_v39, %v11550_v62  ;;  %v8867_v5 = vand.u32 4294901760, %v272_v35  ;;  %v1784_v18 = vand.u32 4294901760, %v1783_v43  ;;  %v8876_v32 = vsub.f32 %v269_v12, %v8850_v45 }
 0x114   : > { %3737 = vmatprep.mubr.f32.mxu0 %v11552_v15  ;;  %v1795_v62 = vsub.f32 %v11551_v1, %v1794_v7  ;;  %v6141_v55 = vpack.c.bf16 %v1794_v7, %v1782_v29  ;;  %v1789_v58 = vsub.f32 %v11554_v56, %v1788_v41  ;;  %v11557_v16 = vand.u32 4294901760, %v8750_v19  ;;  %v273_v19 = vld [vmem:[%s7370_s26 + $0x210] sm:$0xff] }
 0x115   : > { %11553 = vst [vmem:[#allocation211_spill] sm:$0xff] %v8867_v5  ;;  %11556 = vst [vmem:[#allocation212_spill] sm:$0xff] %v8876_v32  ;;  %966 = vmatmul.mubr.f32.gmra.mrb[52].mxu1 %v965_v8  ;;  %v8881_v43 = vand.u32 4294901760, %v271_v3  ;;  %v1801_v29 = vsub.f32 %v11555_v61, %v1800_v4  ;;  %v6143_v7 = vpack.c.bf16 %v1800_v4, %v1788_v41  ;;  %v11559_v10 = vand.u32 4294901760, %v8753_v9  ;;  %v11586_v61 = vld [vmem:[#allocation43_spill] sm:$0xff] }
 0x116   : > { %v1796_v1 = vand.u32 4294901760, %v1795_v62  ;;  %976 = vmatprep.mubr.f32.mxu1 %v975_v2  ;;  %v991_v15 = vand.u32 4294901760, %v990_v36  ;;  %v11560_v12 = vand.u32 4294901760, %v8828_v21  ;;  %v8890_v8 = vsub.f32 %v272_v35, %v8867_v5  ;;  %6142 = vmatprep.subr.bf16.mxu0 %v6141_v55 }
 0x117   : > { %3741 = vmatmul.mubr.f32.gmra.mrb[52].mxu0 %v11557_v16  ;;  %11558 = vst [vmem:[#allocation213_spill] sm:$0xff] %v8881_v43  ;;  %v274_v16 = vld [vmem:[%s7370_s26 + $0x218] sm:$0xff]  ;;  %v1790_v56 = vand.u32 4294901760, %v1789_v58  ;;  %v997_v62 = vand.u32 4294901760, %v8859_v48  ;;  %v11562_v41 = vand.u32 4294901760, %v8834_v25  ;;  %v11563_v36 = vand.u32 4294901760, %v8837_v6 }
 0x118   : > { %3749 = vmatprep.mubr.f32.mxu0 %v11559_v10  ;;  %v1006_v45 = vsub.f32 %v8828_v21, %v11560_v12  ;;  %11561 = vst [vmem:[#allocation214_spill] sm:$0xff] %v8890_v8  ;;  %v5949_v4 = vpack.c.bf16 %v1796_v1, %v1784_v18  ;;  %v1802_v10 = vand.u32 4294901760, %v1801_v29  ;;  %v11564_v12 = vand.u32 4294901760, %v8845_v34  ;;  %v276_v1 = vld [vmem:[%s7370_s26 + $0x228] sm:$0xff]  ;;  %6144 = vmatpush1.bf16.msra.mxu0 %v6143_v7 }
 0x119   : > { %v1012_v2 = vsub.f32 %v8834_v25, %v11562_v41  ;;  %v1022_v9 = vsub.f32 %v8837_v6, %v11563_v36  ;;  %v11565_v58 = vand.u32 4294901760, %v8848_v0  ;;  %982 = vmatmul.mubr.f32.gmra.mrb[54].mxu1 %v981_v44  ;;  %v11566_v55 = vand.u32 4294901760, %v8764_v28 }
 0x11a   : > { %v8904_v35 = vsub.f32 %v8845_v34, %v11564_v12  ;;  %v8916_v18 = vsub.f32 %v271_v3, %v8881_v43  ;;  %v8918_v29 = vand.u32 4294901760, %v274_v16  ;;  %v8920_v36 = vand.u32 4294901760, %v273_v19  ;;  %992 = vmatprep.mubr.f32.mxu1 %v991_v15  ;;  %v275_v3 = vld [vmem:[%s7370_s26 + $0x220] sm:$0xff]  ;;  %5950 = vmatprep.subr.bf16.mxu1 %v5949_v4 }
 0x11b   : > { %v8909_v48 = vsub.f32 %v8848_v0, %v11565_v58  ;;  %3753 = vmatmul.mubr.f32.gmra.mrb[54].mxu0 %v11566_v55  ;;  %v5951_v12 = vpack.c.bf16 %v1802_v10, %v1790_v56  ;;  %v11570_v58 = vand.u32 4294901760, %v8781_v49  ;;  %v1007_v41 = vand.u32 4294901760, %v1006_v45  ;;  %v278_v10 = vld [vmem:[%s7370_s26 + $0x238] sm:$0xff]  ;;  %v277_v45 = vld [vmem:[%s7370_s26 + $0x230] sm:$0xff] }
 0x11c   : > { %11567 = vst [vmem:[#allocation215_spill] sm:$0xff] %v8916_v18  ;;  %11568 = vst [vmem:[#allocation216_spill] sm:$0xff] %v8918_v29  ;;  %v1013_v7 = vand.u32 4294901760, %v1012_v2  ;;  %v8925_v55 = vand.u32 4294901760, %v276_v1  ;;  %v1023_v28 = vand.u32 4294901760, %v1022_v9  ;;  %v1029_v43 = vand.u32 4294901760, %v8904_v35 }
 0x11d   : > { %11569 = vst [vmem:[#allocation217_spill] sm:$0xff] %v8920_v36  ;;  %3761 = vmatprep.mubr.f32.mxu0 %v11570_v58  ;;  %v1039_v5 = vand.u32 4294901760, %v8909_v48  ;;  %v11572_v56 = vand.u32 4294901760, %v8876_v32  ;;  %5952 = vmatpush1.bf16.msra.mxu1 %v5951_v12  ;;  %v11573_v2 = vand.u32 4294901760, %v8793_v39  ;;  %v8941_v9 = vsub.f32 %v274_v16, %v8918_v29  ;;  %v280_v35 = vld [vmem:[%s7370_s26 + $0x248] sm:$0xff]  ;;  %v11580_v58 = vld [vmem:[#allocation41_spill] sm:$0xff] }
 0x11e   : > { %11571 = vst [vmem:[#allocation218_spill] sm:$0xff] %v8925_v55  ;;  %998 = vmatmul.mubr.f32.gmra.mrb[56].mxu1 %v997_v62  ;;  %v8944_v4 = vsub.f32 %v273_v19, %v8920_v36  ;;  %v11576_v48 = vld [vmem:[#allocation40_spill] sm:$0xff]  ;;  %v11578_v62 = vand.u32 4294901760, %v8890_v8  ;;  %v1818_v16 = vand.u32 4294901760, %v11580_v58  ;;  %v11581_v39 = vld [vmem:[#allocation42_spill] sm:$0xff]  ;;  %v8958_v19 = vsub.f32 %v276_v1, %v8925_v55 }
 0x11f   : > { %v8933_v15 = vsub.f32 %v8876_v32, %v11572_v56  ;;  %3765 = vmatmul.mubr.f32.gmra.mrb[56].mxu0 %v11573_v2  ;;  %11574 = vst [vmem:[#allocation219_spill] sm:$0xff] %v8941_v9  ;;  %v1806_v44 = vand.u32 4294901760, %v11576_v48  ;;  %1008 = vmatprep.mubr.f32.mxu1 %v1007_v41  ;;  %v11577_v56 = vand.u32 4294901760, %v8828_v21  ;;  %v8953_v2 = vand.u32 4294901760, %v275_v3 }
 0x120   : > { %11575 = vst [vmem:[#allocation220_spill] sm:$0xff] %v8944_v4  ;;  %v1054_v12 = vsub.f32 %v8890_v8, %v11578_v62  ;;  %v1812_v49 = vand.u32 4294901760, %v11581_v39  ;;  %11582 = vst [vmem:[#allocation222_spill] sm:$0xff] %v8958_v19  ;;  %v8960_v36 = vand.u32 4294901760, %v278_v10  ;;  %v8962_v41 = vand.u32 4294901760, %v277_v45 }
 0x121   : > { %3773 = vmatprep.mubr.f32.mxu0 %v11577_v56  ;;  %11579 = vst [vmem:[#allocation221_spill] sm:$0xff] %v8953_v2  ;;  %v1807_v56 = vsub.f32 %v11576_v48, %v1806_v44  ;;  %v8965_v21 = vand.u32 4294901760, %v280_v35  ;;  %v1819_v62 = vsub.f32 %v11580_v58, %v1818_v16  ;;  %v1824_v31 = vand.u32 4294901760, %v11586_v61 }
 0x122   : > { %11583 = vst [vmem:[#allocation223_spill] sm:$0xff] %v8960_v36  ;;  %11584 = vst [vmem:[#allocation224_spill] sm:$0xff] %v8962_v41  ;;  %v1813_v29 = vsub.f32 %v11581_v39, %v1812_v49  ;;  %1014 = vmatmul.mubr.f32.gmra.mrb[58].mxu1 %v1013_v7  ;;  %v11587_v30 = vand.u32 4294901760, %v8834_v25  ;;  %v10901_v55 = vand.u32 4294901760, %v8944_v4  ;;  %v6145_v17 = vpack.c.bf16 %v1818_v16, %v1806_v44 }
 0x123   : > { %11585 = vst [vmem:[#allocation225_spill] sm:$0xff] %v8965_v21  ;;  %v1808_v47 = vand.u32 4294901760, %v1807_v56  ;;  %1024 = vmatprep.mubr.f32.mxu1 %v1023_v28  ;;  %v11588_v48 = vand.u32 4294901760, %v8837_v6  ;;  %v8978_v58 = vsub.f32 %v275_v3, %v8953_v2  ;;  %v1820_v39 = vand.u32 4294901760, %v1819_v62  ;;  %v282_v62 = vld [vmem:[%s7370_s26 + $0x258] sm:$0xff] }
 0x124   : > { %3777 = vmatmul.mubr.f32.gmra.mrb[58].mxu0 %v11587_v30  ;;  %v1814_v7 = vand.u32 4294901760, %v1813_v29  ;;  %v1825_v25 = vsub.f32 %v11586_v61, %v1824_v31  ;;  %v10900_v30 = vand.u32 4294901760, %v8958_v19  ;;  %v8983_v1 = vsub.f32 %v278_v10, %v8960_v36  ;;  %6146 = vmatprep.subr.bf16.mxu0 %v6145_v17 }
 0x125   : > { %3785 = vmatprep.mubr.f32.mxu0 %v11588_v48  ;;  %11589 = vst [vmem:[#allocation226_spill] sm:$0xff] %v8978_v58  ;;  %v8986_v56 = vsub.f32 %v277_v45, %v8962_v41  ;;  %v6147_v28 = vpack.c.bf16 %v1824_v31, %v1812_v49  ;;  %v8989_v44 = vsub.f32 %v280_v35, %v8965_v21  ;;  %v8991_v3 = vand.u32 4294901760, %v279_v33 }
 0x126   : > { %11590 = vst [vmem:[#allocation227_spill] sm:$0xff] %v8983_v1  ;;  %v5953_v29 = vpack.c.bf16 %v1820_v39, %v1808_v47  ;;  %v1826_v48 = vand.u32 4294901760, %v1825_v25  ;;  %1030 = vmatmul.mubr.f32.gmra.mrb[60].mxu1 %v1029_v43  ;;  %v11594_v16 = vand.u32 4294901760, %v8845_v34  ;;  %v1045_v10 = vand.u32 4294901760, %v8933_v15  ;;  %v281_v25 = vld [vmem:[%s7370_s26 + $0x250] sm:$0xff]  ;;  %v284_v43 = vld [vmem:[%s7370_s26 + $0x268] sm:$0xff] }
 0x127   : > { %11591 = vst [vmem:[#allocation228_spill] sm:$0xff] %v8986_v56  ;;  %11592 = vst [vmem:[#allocation229_spill] sm:$0xff] %v8989_v44  ;;  %v11595_v45 = vand.u32 4294901760, %v8916_v18  ;;  %1040 = vmatprep.mubr.f32.mxu1 %v1039_v5  ;;  %v11596_v49 = vand.u32 4294901760, %v8848_v0  ;;  %v1055_v31 = vand.u32 4294901760, %v1054_v12  ;;  %v11597_v35 = vand.u32 4294901760, %v8941_v9  ;;  %6148 = vmatpush1.bf16.msra.mxu0 %v6147_v28 }
 0x128   : > { %11593 = vst [vmem:[#allocation230_spill] sm:$0xff] %v8991_v3  ;;  %3789 = vmatmul.mubr.f32.gmra.mrb[60].mxu0 %v11594_v16  ;;  %v10903_v39 = vand.u32 4294901760, %v8978_v58  ;;  %v5955_v16 = vpack.c.bf16 %v1826_v48, %v1814_v7  ;;  %v1076_v15 = vsub.f32 %v8944_v4, %v10901_v55  ;;  %v1086_v5 = vsub.f32 %v8958_v19, %v10900_v30 }
 0x129   : > { %v1060_v17 = vsub.f32 %v8916_v18, %v11595_v45  ;;  %3797 = vmatprep.mubr.f32.mxu0 %v11596_v49  ;;  %v1070_v47 = vsub.f32 %v8941_v9, %v11597_v35  ;;  %v10904_v45 = vand.u32 4294901760, %v8983_v1  ;;  %5954 = vmatprep.subr.bf16.mxu1 %v5953_v29  ;;  %v9018_v35 = vsub.f32 %v279_v33, %v8991_v3 }
 0x12a   : > { %v9020_v7 = vand.u32 4294901760, %v282_v62  ;;  %5956 = vmatpush1.bf16.msra.mxu1 %v5955_v16  ;;  %v11600_v48 = vand.u32 4294901760, %v8876_v32  ;;  %v9024_v55 = vand.u32 4294901760, %v281_v25  ;;  %v9026_v12 = vand.u32 4294901760, %v284_v43 }
 0x12b   : > { %11598 = vst [vmem:[#allocation231_spill] sm:$0xff] %v9018_v35  ;;  %1046 = vmatmul.mubr.f32.gmra.mrb[62].mxu1 %v1045_v10  ;;  %v1061_v30 = vand.u32 4294901760, %v1060_v17  ;;  %v11603_v28 = vand.u32 4294901760, %v8890_v8  ;;  %v1071_v33 = vand.u32 4294901760, %v1070_v47  ;;  %v1092_v29 = vsub.f32 %v8978_v58, %v10903_v39  ;;  %v11607_v39 = vld [vmem:[#allocation44_spill] sm:$0xff] }
 0x12c   : > { %11599 = vst [vmem:[#allocation232_spill] sm:$0xff] %v9020_v7  ;;  %3801 = vmatmul.mubr.f32.gmra.mrb[62].mxu0 %v11600_v48  ;;  %11601 = vst [vmem:[#allocation233_spill] sm:$0xff] %v9024_v55  ;;  %1056 = vmatprep.mubr.f32.mxu1 %v1055_v31  ;;  %v1077_v16 = vand.u32 4294901760, %v1076_v15  ;;  %v1087_v10 = vand.u32 4294901760, %v1086_v5  ;;  %v1102_v48 = vsub.f32 %v8983_v1, %v10904_v45  ;;  %v11604_v17 = vand.u32 4294901760, %v8986_v56  ;;  %v283_v31 = vld [vmem:[%s7370_s26 + $0x260] sm:$0xff] }
 0x12d   : > { %11602 = vst [vmem:[#allocation234_spill] sm:$0xff] %v9026_v12  ;;  %3809 = vmatprep.mubr.f32.mxu0 %v11603_v28  ;;  %v11605_v8 = vand.u32 4294901760, %v8989_v44  ;;  %v9049_v15 = vsub.f32 %v282_v62, %v9020_v7  ;;  %v286_v5 = vld [vmem:[%s7370_s26 + $0x278] sm:$0xff]  ;;  %v1830_v45 = vand.u32 4294901760, %v11607_v39  ;;  %v11608_v32 = vand.u32 4294901760, %v8916_v18  ;;  %v11612_v28 = vld [vmem:[#allocation47_spill] sm:$0xff] }
 0x12e   : > { %v9039_v49 = vsub.f32 %v8986_v56, %v11604_v17  ;;  %v9056_v17 = vsub.f32 %v281_v25, %v9024_v55  ;;  %v9059_v0 = vsub.f32 %v284_v43, %v9026_v12  ;;  %v1836_v6 = vand.u32 4294901760, %v11612_v28  ;;  %v285_v43 = vld [vmem:[%s7370_s26 + $0x270] sm:$0xff] }
 0x12f   : > { %v9045_v47 = vsub.f32 %v8989_v44, %v11605_v8  ;;  %11606 = vst [vmem:[#allocation235_spill] sm:$0xff] %v9049_v15  ;;  %1062 = vmatmul.mubr.f32.gmra.mrb[64].mxu1 %v1061_v30  ;;  %v11611_v8 = vld [vmem:[#allocation46_spill] sm:$0xff]  ;;  %v11613_v62 = vand.u32 4294901760, %v8941_v9  ;;  %v1093_v7 = vand.u32 4294901760, %v1092_v29  ;;  %v9065_v3 = vand.u32 4294901760, %v283_v31 }
 0x130   : > { %3813 = vmatmul.mubr.f32.gmra.mrb[64].mxu0 %v11608_v32  ;;  %11609 = vst [vmem:[#allocation236_spill] sm:$0xff] %v9056_v17  ;;  %11610 = vst [vmem:[#allocation237_spill] sm:$0xff] %v9059_v0  ;;  %v1842_v34 = vand.u32 4294901760, %v11611_v8  ;;  %1072 = vmatprep.mubr.f32.mxu1 %v1071_v33  ;;  %v1831_v32 = vsub.f32 %v11607_v39, %v1830_v45  ;;  %v11615_v30 = vld [vmem:[#allocation50_spill] sm:$0xff]  ;;  %v9069_v18 = vand.u32 4294901760, %v286_v5  ;;  %v10931_v33 = vand.u32 4294901760, %v9049_v15 }
 0x131   : > { %3821 = vmatprep.mubr.f32.mxu0 %v11613_v62  ;;  %11614 = vst [vmem:[#allocation47_spill] sm:$0xff] %v9065_v3  ;;  %v1848_v25 = vand.u32 4294901760, %v11615_v30  ;;  %v1837_v55 = vsub.f32 %v11612_v28, %v1836_v6  ;;  %v11617_v41 = vand.u32 4294901760, %v8944_v4  ;;  %v10930_v36 = vand.u32 4294901760, %v9056_v17  ;;  %v288_v39 = vld [vmem:[%s7370_s26 + $0x288] sm:$0xff]  ;;  %v11642_v4 = vld [vmem:[#allocation55_spill] sm:$0xff] }
 0x132   : > { %11616 = vst [vmem:[#allocation238_spill] sm:$0xff] %v9069_v18  ;;  %v1843_v12 = vsub.f32 %v11611_v8, %v1842_v34  ;;  %v6149_v21 = vpack.c.bf16 %v1842_v34, %v1830_v45  ;;  %v1832_v9 = vand.u32 4294901760, %v1831_v32  ;;  %v11618_v34 = vand.u32 4294901760, %v8958_v19 }
 0x133   : > { %v1849_v29 = vsub.f32 %v11615_v30, %v1848_v25  ;;  %v6151_v62 = vpack.c.bf16 %v1848_v25, %v1836_v6  ;;  %1078 = vmatmul.mubr.f32.gmra.mrb[66].mxu1 %v1077_v16  ;;  %v1838_v61 = vand.u32 4294901760, %v1837_v55  ;;  %v1103_v45 = vand.u32 4294901760, %v1102_v48  ;;  %v287_v25 = vld [vmem:[%s7370_s26 + $0x280] sm:$0xff] }
 0x134   : > { %3825 = vmatmul.mubr.f32.gmra.mrb[66].mxu0 %v11617_v41  ;;  %v1844_v8 = vand.u32 4294901760, %v1843_v12  ;;  %1088 = vmatprep.mubr.f32.mxu1 %v1087_v10  ;;  %v9084_v32 = vsub.f32 %v283_v31, %v9065_v3  ;;  %v9086_v6 = vand.u32 4294901760, %v285_v43  ;;  %v9089_v41 = vsub.f32 %v286_v5, %v9069_v18 }
 0x135   : > { %3833 = vmatprep.mubr.f32.mxu0 %v11618_v34  ;;  %v1850_v16 = vand.u32 4294901760, %v1849_v29  ;;  %6150 = vmatprep.subr.bf16.mxu0 %v6149_v21  ;;  %v11622_v55 = vand.u32 4294901760, %v9018_v35  ;;  %v9095_v10 = vand.u32 4294901760, %v288_v39  ;;  %v11624_v31 = vand.u32 4294901760, %v8978_v58  ;;  %v11641_v58 = vld [vmem:[#allocation54_spill] sm:$0xff] }
 0x136   : > { %11619 = vst [vmem:[#allocation239_spill] sm:$0xff] %v9084_v32  ;;  %11620 = vst [vmem:[#allocation240_spill] sm:$0xff] %v9086_v6  ;;  %v5957_v2 = vpack.c.bf16 %v1844_v8, %v1832_v9  ;;  %6152 = vmatpush1.bf16.msra.mxu0 %v6151_v62  ;;  %v1109_v29 = vand.u32 4294901760, %v9039_v49  ;;  %v1134_v9 = vsub.f32 %v9049_v15, %v10931_v33  ;;  %v11625_v5 = vand.u32 4294901760, %v9059_v0  ;;  %v11632_v62 = vld [vmem:[#allocation51_spill] sm:$0xff] }
 0x137   : > { %11621 = vst [vmem:[#allocation241_spill] sm:$0xff] %v9089_v41  ;;  %v1124_v12 = vsub.f32 %v9018_v35, %v11622_v55  ;;  %11623 = vst [vmem:[#allocation242_spill] sm:$0xff] %v9095_v10  ;;  %v5959_v48 = vpack.c.bf16 %v1850_v16, %v1838_v61  ;;  %1094 = vmatmul.mubr.f32.gmra.mrb[68].mxu1 %v1093_v7  ;;  %v1140_v21 = vsub.f32 %v9056_v17, %v10930_v36  ;;  %v290_v7 = vld [vmem:[%s7370_s26 + $0x298] sm:$0xff] }
 0x138   : > { %3837 = vmatmul.mubr.f32.gmra.mrb[68].mxu0 %v11624_v31  ;;  %v9109_v61 = vsub.f32 %v9059_v0, %v11625_v5  ;;  %1104 = vmatprep.mubr.f32.mxu1 %v1103_v45  ;;  %v11626_v8 = vand.u32 4294901760, %v8983_v1  ;;  %v1119_v49 = vand.u32 4294901760, %v9045_v47  ;;  %v9117_v34 = vsub.f32 %v285_v43, %v9086_v6  ;;  %v289_v31 = vld [vmem:[%s7370_s26 + $0x290] sm:$0xff] }
 0x139   : > { %v9119_v16 = vand.u32 4294901760, %v287_v25  ;;  %5958 = vmatprep.subr.bf16.mxu1 %v5957_v2  ;;  %v1125_v5 = vand.u32 4294901760, %v1124_v12  ;;  %v9124_v36 = vsub.f32 %v288_v39, %v9095_v10  ;;  %v9126_v45 = vand.u32 4294901760, %v290_v7  ;;  %v293_v6 = vld [vmem:[%s7370_s26 + $0x2b0] sm:$0xff] }
 0x13a   : > { %3845 = vmatprep.mubr.f32.mxu0 %v11626_v8  ;;  %11627 = vst [vmem:[#allocation243_spill] sm:$0xff] %v9117_v34  ;;  %v292_v8 = vld [vmem:[%s7370_s26 + $0x2a8] sm:$0xff]  ;;  %5960 = vmatpush1.bf16.msra.mxu1 %v5959_v48  ;;  %v11631_v47 = vand.u32 4294901760, %v8986_v56  ;;  %v1135_v43 = vand.u32 4294901760, %v1134_v9  ;;  %v1141_v33 = vand.u32 4294901760, %v1140_v21  ;;  %v1151_v55 = vand.u32 4294901760, %v9109_v61 }
 0x13b   : > { %11628 = vst [vmem:[#allocation244_spill] sm:$0xff] %v9119_v16  ;;  %11629 = vst [vmem:[#allocation245_spill] sm:$0xff] %v9124_v36  ;;  %1110 = vmatmul.mubr.f32.gmra.mrb[70].mxu1 %v1109_v29  ;;  %v1854_v2 = vand.u32 4294901760, %v11632_v62  ;;  %v11633_v39 = vand.u32 4294901760, %v8989_v44  ;;  %v11634_v12 = vand.u32 4294901760, %v9084_v32  ;;  %v9140_v29 = vsub.f32 %v287_v25, %v9119_v16  ;;  %v291_v21 = vld [vmem:[%s7370_s26 + $0x2a0] sm:$0xff] }
 0x13c   : > { %11630 = vst [vmem:[#allocation246_spill] sm:$0xff] %v9126_v45  ;;  %3849 = vmatmul.mubr.f32.gmra.mrb[70].mxu0 %v11631_v47  ;;  %1120 = vmatprep.mubr.f32.mxu1 %v1119_v49  ;;  %v9142_v9 = vand.u32 4294901760, %v289_v31  ;;  %v11637_v61 = vand.u32 4294901760, %v9089_v41  ;;  %v9148_v47 = vand.u32 4294901760, %v292_v8  ;;  %v11639_v44 = vld [vmem:[#allocation52_spill] sm:$0xff]  ;;  %v9154_v48 = vsub.f32 %v290_v7, %v9126_v45  ;;  %v294_v25 = vld [vmem:[%s7370_s26 + $0x2b8] sm:$0xff] }
 0x13d   : > { %3857 = vmatprep.mubr.f32.mxu0 %v11633_v39  ;;  %v1156_v1 = vsub.f32 %v9084_v32, %v11634_v12  ;;  %11635 = vst [vmem:[#allocation247_spill] sm:$0xff] %v9140_v29  ;;  %v1855_v39 = vsub.f32 %v11632_v62, %v1854_v2  ;;  %v1866_v56 = vand.u32 4294901760, %v11639_v44  ;;  %v1860_v19 = vand.u32 4294901760, %v11641_v58 }
 0x13e   : > { %11636 = vst [vmem:[#allocation248_spill] sm:$0xff] %v9142_v9  ;;  %v1166_v49 = vsub.f32 %v9089_v41, %v11637_v61  ;;  %11638 = vst [vmem:[#allocation249_spill] sm:$0xff] %v9148_v47  ;;  %v1872_v16 = vand.u32 4294901760, %v11642_v4  ;;  %v11643_v61 = vand.u32 4294901760, %v9018_v35  ;;  %v9161_v10 = vand.u32 4294901760, %v291_v21 }
 0x13f   : > { %11640 = vst [vmem:[#allocation250_spill] sm:$0xff] %v9154_v48  ;;  %1126 = vmatmul.mubr.f32.gmra.mrb[72].mxu1 %v1125_v5  ;;  %v1856_v18 = vand.u32 4294901760, %v1855_v39  ;;  %v1867_v3 = vsub.f32 %v11639_v44, %v1866_v56  ;;  %v6153_v12 = vpack.c.bf16 %v1866_v56, %v1854_v2  ;;  %v11645_v7 = vand.u32 4294901760, %v9049_v15  ;;  %v296_v44 = vld [vmem:[%s7370_s26 + $0x2c8] sm:$0xff] }
 0x140   : > { %3861 = vmatmul.mubr.f32.gmra.mrb[72].mxu0 %v11643_v61  ;;  %11644 = vst [vmem:[#allocation251_spill] sm:$0xff] %v9161_v10  ;;  %1136 = vmatprep.mubr.f32.mxu1 %v1135_v43  ;;  %v9169_v62 = vsub.f32 %v289_v31, %v9142_v9  ;;  %v1861_v5 = vsub.f32 %v11641_v58, %v1860_v19  ;;  %v9176_v39 = vand.u32 4294901760, %v294_v25  ;;  %v11650_v15 = vand.u32 4294901760, %v9056_v17 }
 0x141   : > { %3869 = vmatprep.mubr.f32.mxu0 %v11645_v7  ;;  %v1873_v61 = vsub.f32 %v11642_v4, %v1872_v16  ;;  %v9174_v35 = vsub.f32 %v292_v8, %v9148_v47  ;;  %v1868_v56 = vand.u32 4294901760, %v1867_v3  ;;  %6154 = vmatprep.subr.bf16.mxu0 %v6153_v12  ;;  %v6155_v43 = vpack.c.bf16 %v1872_v16, %v1860_v19 }
 0x142   : > { %11646 = vst [vmem:[#allocation252_spill] sm:$0xff] %v9169_v62  ;;  %11648 = vst [vmem:[#allocation254_spill] sm:$0xff] %v9176_v39  ;;  %v9180_v7 = vand.u32 4294901760, %v293_v6  ;;  %v1862_v31 = vand.u32 4294901760, %v1861_v5  ;;  %v1157_v8 = vand.u32 4294901760, %v1156_v1  ;;  %v11651_v47 = vand.u32 4294901760, %v9117_v34 }
 0x143   : > { %11647 = vst [vmem:[#allocation253_spill] sm:$0xff] %v9174_v35  ;;  %v1874_v45 = vand.u32 4294901760, %v1873_v61  ;;  %1142 = vmatmul.mubr.f32.gmra.mrb[74].mxu1 %v1141_v33  ;;  %v9188_v3 = vsub.f32 %v291_v21, %v9161_v10  ;;  %v5961_v19 = vpack.c.bf16 %v1868_v56, %v1856_v18  ;;  %v11653_v16 = vand.u32 4294901760, %v9059_v0  ;;  %v295_v1 = vld [vmem:[%s7370_s26 + $0x2c0] sm:$0xff]  ;;  %6156 = vmatpush1.bf16.msra.mxu0 %v6155_v43  ;;  %v11671_v0 = vld [vmem:[#allocation58_spill] sm:$0xff] }
 0x144   : > { %11649 = vst [vmem:[#allocation255_spill] sm:$0xff] %v9180_v7  ;;  %3873 = vmatmul.mubr.f32.gmra.mrb[74].mxu0 %v11650_v15  ;;  %v1172_v9 = vsub.f32 %v9117_v34, %v11651_v47  ;;  %1152 = vmatprep.mubr.f32.mxu1 %v1151_v55  ;;  %v1167_v12 = vand.u32 4294901760, %v1166_v49  ;;  %v11654_v33 = vand.u32 4294901760, %v9124_v36  ;;  %v9195_v61 = vand.u32 4294901760, %v296_v44  ;;  %v298_v55 = vld [vmem:[%s7370_s26 + $0x2d8] sm:$0xff] }
 0x145   : > { %11652 = vst [vmem:[#allocation256_spill] sm:$0xff] %v9188_v3  ;;  %3881 = vmatprep.mubr.f32.mxu0 %v11653_v16  ;;  %v5963_v15 = vpack.c.bf16 %v1874_v45, %v1862_v31  ;;  %v11656_v2 = vand.u32 4294901760, %v9140_v29  ;;  %v10959_v21 = vand.u32 4294901760, %v9169_v62  ;;  %5962 = vmatprep.subr.bf16.mxu1 %v5961_v19  ;;  %v11657_v49 = vand.u32 4294901760, %v9154_v48  ;;  %v297_v19 = vld [vmem:[%s7370_s26 + $0x2d0] sm:$0xff] }
 0x146   : > { %v1182_v5 = vsub.f32 %v9124_v36, %v11654_v33  ;;  %11655 = vst [vmem:[#allocation257_spill] sm:$0xff] %v9195_v61  ;;  %v9208_v16 = vsub.f32 %v294_v25, %v9176_v39  ;;  %v9211_v45 = vsub.f32 %v293_v6, %v9180_v7  ;;  %v1173_v31 = vand.u32 4294901760, %v1172_v9 }
 0x147   : > { %v1188_v47 = vsub.f32 %v9140_v29, %v11656_v2  ;;  %v1198_v56 = vsub.f32 %v9154_v48, %v11657_v49  ;;  %5964 = vmatpush1.bf16.msra.mxu1 %v5963_v15  ;;  %v11660_v2 = vand.u32 4294901760, %v9084_v32  ;;  %v9216_v43 = vand.u32 4294901760, %v295_v1  ;;  %v11665_v15 = vld [vmem:[#allocation56_spill] sm:$0xff] }
 0x148   : > { %11658 = vst [vmem:[#allocation258_spill] sm:$0xff] %v9208_v16  ;;  %11659 = vst [vmem:[#allocation259_spill] sm:$0xff] %v9211_v45  ;;  %1158 = vmatmul.mubr.f32.gmra.mrb[76].mxu1 %v1157_v8  ;;  %v11662_v33 = vand.u32 4294901760, %v9089_v41  ;;  %v1183_v25 = vand.u32 4294901760, %v1182_v5  ;;  %v9221_v49 = vsub.f32 %v296_v44, %v9195_v61  ;;  %v9223_v6 = vand.u32 4294901760, %v298_v55  ;;  %v11675_v61 = vld [vmem:[#allocation59_spill] sm:$0xff] }
 0x149   : > { %3885 = vmatmul.mubr.f32.gmra.mrb[76].mxu0 %v11660_v2  ;;  %11661 = vst [vmem:[#allocation260_spill] sm:$0xff] %v9216_v43  ;;  %1168 = vmatprep.mubr.f32.mxu1 %v1167_v12  ;;  %v1878_v8 = vand.u32 4294901760, %v11665_v15  ;;  %v1189_v18 = vand.u32 4294901760, %v1188_v47  ;;  %v1204_v9 = vsub.f32 %v9169_v62, %v10959_v21  ;;  %v11666_v2 = vand.u32 4294901760, %v9174_v35 }
 0x14a   : > { %3893 = vmatprep.mubr.f32.mxu0 %v11662_v33  ;;  %11663 = vst [vmem:[#allocation261_spill] sm:$0xff] %v9221_v49  ;;  %11664 = vst [vmem:[#allocation262_spill] sm:$0xff] %v9223_v6  ;;  %v1199_v33 = vand.u32 4294901760, %v1198_v56  ;;  %v11667_v47 = vand.u32 4294901760, %v9117_v34  ;;  %v11668_v21 = vand.u32 4294901760, %v9188_v3  ;;  %v11670_v56 = vld [vmem:[#allocation57_spill] sm:$0xff] }
 0x14b   : > { %v1214_v12 = vsub.f32 %v9174_v35, %v11666_v2  ;;  %v1879_v41 = vsub.f32 %v11665_v15, %v1878_v8  ;;  %v9244_v2 = vsub.f32 %v295_v1, %v9216_v43  ;;  %v1890_v5 = vand.u32 4294901760, %v11670_v56  ;;  %v299_v1 = vld [vmem:[%s7370_s26 + $0x2e0] sm:$0xff]  ;;  %v302_v43 = vld [vmem:[%s7370_s26 + $0x2f8] sm:$0xff] }
 0x14c   : > { %1174 = vmatmul.mubr.f32.gmra.mrb[78].mxu1 %v1173_v31  ;;  %v9241_v32 = vsub.f32 %v9188_v3, %v11668_v21  ;;  %v1884_v17 = vand.u32 4294901760, %v11671_v0  ;;  %v11672_v44 = vand.u32 4294901760, %v9124_v36  ;;  %v9254_v34 = vand.u32 4294901760, %v297_v19  ;;  %v300_v21 = vld [vmem:[%s7370_s26 + $0x2e8] sm:$0xff] }
 0x14d   : > { %3897 = vmatmul.mubr.f32.gmra.mrb[78].mxu0 %v11667_v47  ;;  %11669 = vst [vmem:[#allocation263_spill] sm:$0xff] %v9244_v2  ;;  %1184 = vmatprep.mubr.f32.mxu1 %v1183_v25  ;;  %v9252_v47 = vsub.f32 %v298_v55, %v9223_v6  ;;  %v1896_v7 = vand.u32 4294901760, %v11675_v61  ;;  %v1880_v39 = vand.u32 4294901760, %v1879_v41  ;;  %v1891_v10 = vsub.f32 %v11670_v56, %v1890_v5 }
 0x14e   : > { %3905 = vmatprep.mubr.f32.mxu0 %v11672_v44  ;;  %11674 = vst [vmem:[#allocation264_spill] sm:$0xff] %v9254_v34  ;;  %v1885_v25 = vsub.f32 %v11671_v0, %v1884_v17  ;;  %v6157_v15 = vpack.c.bf16 %v1890_v5, %v1878_v8  ;;  %v1205_v44 = vand.u32 4294901760, %v1204_v9  ;;  %v1215_v36 = vand.u32 4294901760, %v1214_v12 }
 0x14f   : > { %11673 = vst [vmem:[#allocation57_spill] sm:$0xff] %v9252_v47  ;;  %v1897_v31 = vsub.f32 %v11675_v61, %v1896_v7  ;;  %v6159_v55 = vpack.c.bf16 %v1896_v7, %v1884_v17  ;;  %v11676_v6 = vand.u32 4294901760, %v9140_v29  ;;  %v10982_v4 = vand.u32 4294901760, %v9244_v2  ;;  %v301_v7 = vld [vmem:[%s7370_s26 + $0x2f0] sm:$0xff] }
 0x150   : > { %1190 = vmatmul.mubr.f32.gmra.mrb[80].mxu1 %v1189_v18  ;;  %v9266_v58 = vand.u32 4294901760, %v300_v21  ;;  %v1892_v41 = vand.u32 4294901760, %v1891_v10  ;;  %v1886_v30 = vand.u32 4294901760, %v1885_v25  ;;  %v11678_v0 = vand.u32 4294901760, %v9154_v48  ;;  %6158 = vmatprep.subr.bf16.mxu0 %v6157_v15 }
 0x151   : > { %3909 = vmatmul.mubr.f32.gmra.mrb[80].mxu0 %v11676_v6  ;;  %1200 = vmatprep.mubr.f32.mxu1 %v1199_v33  ;;  %v11679_v8 = vand.u32 4294901760, %v9208_v16  ;;  %v9273_v12 = vand.u32 4294901760, %v299_v1  ;;  %v9275_v17 = vand.u32 4294901760, %v302_v43  ;;  %v1898_v18 = vand.u32 4294901760, %v1897_v31 }
 0x152   : > { %11677 = vst [vmem:[#allocation59_spill] sm:$0xff] %v9266_v58  ;;  %3917 = vmatprep.mubr.f32.mxu0 %v11678_v0  ;;  %v9280_v10 = vsub.f32 %v297_v19, %v9254_v34  ;;  %v5965_v33 = vpack.c.bf16 %v1892_v41, %v1880_v39  ;;  %v1221_v0 = vand.u32 4294901760, %v9241_v32  ;;  %v11683_v5 = vand.u32 4294901760, %v9211_v45  ;;  %6160 = vmatpush1.bf16.msra.mxu0 %v6159_v55  ;;  %v303_v55 = vld [vmem:[%s7370_s26 + $0x300] sm:$0xff] }
 0x153   : > { %v1230_v9 = vsub.f32 %v9208_v16, %v11679_v8  ;;  %11680 = vst [vmem:[#allocation265_spill] sm:$0xff] %v9273_v12  ;;  %11681 = vst [vmem:[#allocation266_spill] sm:$0xff] %v9275_v17  ;;  %v5967_v8 = vpack.c.bf16 %v1898_v18, %v1886_v30  ;;  %v11684_v31 = vand.u32 4294901760, %v9169_v62  ;;  %v11685_v6 = vand.u32 4294901760, %v9221_v49  ;;  %v304_v30 = vld [vmem:[%s7370_s26 + $0x308] sm:$0xff] }
 0x154   : > { %11682 = vst [vmem:[#allocation267_spill] sm:$0xff] %v9280_v10  ;;  %v1236_v25 = vsub.f32 %v9211_v45, %v11683_v5  ;;  %1206 = vmatmul.mubr.f32.gmra.mrb[82].mxu1 %v1205_v44  ;;  %v1252_v39 = vsub.f32 %v9244_v2, %v10982_v4  ;;  %v9295_v32 = vsub.f32 %v300_v21, %v9266_v58  ;;  %v9297_v15 = vand.u32 4294901760, %v301_v7  ;;  %v306_v4 = vld [vmem:[%s7370_s26 + $0x318] sm:$0xff] }
 0x155   : > { %3921 = vmatmul.mubr.f32.gmra.mrb[82].mxu0 %v11684_v31  ;;  %v1246_v19 = vsub.f32 %v9221_v49, %v11685_v6  ;;  %1216 = vmatprep.mubr.f32.mxu1 %v1215_v36  ;;  %v11688_v44 = vand.u32 4294901760, %v9174_v35  ;;  %v1231_v41 = vand.u32 4294901760, %v1230_v9  ;;  %v9304_v18 = vsub.f32 %v299_v1, %v9273_v12  ;;  %v11698_v31 = vld [vmem:[#allocation60_spill] sm:$0xff] }
 0x156   : > { %11686 = vst [vmem:[#allocation268_spill] sm:$0xff] %v9295_v32  ;;  %11687 = vst [vmem:[#allocation269_spill] sm:$0xff] %v9297_v15  ;;  %v9307_v6 = vsub.f32 %v302_v43, %v9275_v17  ;;  %v11691_v5 = vand.u32 4294901760, %v9252_v47  ;;  %5966 = vmatprep.subr.bf16.mxu1 %v5965_v33  ;;  %v1237_v62 = vand.u32 4294901760, %v1236_v25  ;;  %v9314_v36 = vand.u32 4294901760, %v304_v30 }
 0x157   : > { %3929 = vmatprep.mubr.f32.mxu0 %v11688_v44  ;;  %11689 = vst [vmem:[#allocation270_spill] sm:$0xff] %v9304_v18  ;;  %v9316_v35 = vand.u32 4294901760, %v303_v55  ;;  %5968 = vmatpush1.bf16.msra.mxu1 %v5967_v8  ;;  %v11694_v1 = vand.u32 4294901760, %v9188_v3  ;;  %v1247_v43 = vand.u32 4294901760, %v1246_v19  ;;  %v1253_v9 = vand.u32 4294901760, %v1252_v39 }
 0x158   : > { %11690 = vst [vmem:[#allocation271_spill] sm:$0xff] %v9307_v6  ;;  %v1262_v21 = vsub.f32 %v9252_v47, %v11691_v5  ;;  %11692 = vst [vmem:[#allocation272_spill] sm:$0xff] %v9314_v36  ;;  %1222 = vmatmul.mubr.f32.gmra.mrb[84].mxu1 %v1221_v0  ;;  %v9322_v5 = vsub.f32 %v301_v7, %v9297_v15  ;;  %v11696_v33 = vand.u32 4294901760, %v9208_v16  ;;  %v9328_v0 = vand.u32 4294901760, %v306_v4  ;;  %v11700_v7 = vld [vmem:[#allocation63_spill] sm:$0xff]  ;;  %v11704_v16 = vld [vmem:[#allocation65_spill] sm:$0xff] }
 0x159   : > { %11693 = vst [vmem:[#allocation273_spill] sm:$0xff] %v9316_v35  ;;  %3933 = vmatmul.mubr.f32.gmra.mrb[84].mxu0 %v11694_v1  ;;  %1232 = vmatprep.mubr.f32.mxu1 %v1231_v41  ;;  %v1902_v1 = vand.u32 4294901760, %v11698_v31  ;;  %v11699_v39 = vand.u32 4294901760, %v9280_v10  ;;  %v1914_v3 = vand.u32 4294901760, %v11700_v7  ;;  %v11701_v41 = vld [vmem:[#allocation64_spill] sm:$0xff]  ;;  %v9340_v25 = vsub.f32 %v303_v55, %v9316_v35  ;;  %v305_v15 = vld [vmem:[%s7370_s26 + $0x310] sm:$0xff] }
 0x15a   : > { %11695 = vst [vmem:[#allocation274_spill] sm:$0xff] %v9322_v5  ;;  %3941 = vmatprep.mubr.f32.mxu0 %v11696_v33  ;;  %11697 = vst [vmem:[#allocation275_spill] sm:$0xff] %v9328_v0  ;;  %v1263_v19 = vand.u32 4294901760, %v1262_v21  ;;  %v1908_v48 = vand.u32 4294901760, %v11701_v41  ;;  %v9337_v33 = vsub.f32 %v304_v30, %v9314_v36  ;;  %v1920_v29 = vand.u32 4294901760, %v11704_v16 }
 0x15b   : > { %v1268_v44 = vsub.f32 %v9280_v10, %v11699_v39  ;;  %11703 = vst [vmem:[#allocation63_spill] sm:$0xff] %v9340_v25  ;;  %v1903_v8 = vsub.f32 %v11698_v31, %v1902_v1  ;;  %v11705_v21 = vand.u32 4294901760, %v9211_v45  ;;  %v1915_v17 = vsub.f32 %v11700_v7, %v1914_v3 }
 0x15c   : > { %11702 = vst [vmem:[#allocation60_spill] sm:$0xff] %v9337_v33  ;;  %1238 = vmatmul.mubr.f32.gmra.mrb[86].mxu1 %v1237_v62  ;;  %v1909_v30 = vsub.f32 %v11701_v41, %v1908_v48  ;;  %v6161_v36 = vpack.c.bf16 %v1914_v3, %v1902_v1  ;;  %v11706_v55 = vand.u32 4294901760, %v9221_v49  ;;  %v11707_v35 = vand.u32 4294901760, %v9295_v32  ;;  %v307_v3 = vld [vmem:[%s7370_s26 + $0x320] sm:$0xff]  ;;  %v316_v41 = vld [vmem:[%s7370_s26 + $0x368] sm:$0xff] }
 0x15d   : > { %3945 = vmatmul.mubr.f32.gmra.mrb[86].mxu0 %v11705_v21  ;;  %1248 = vmatprep.mubr.f32.mxu1 %v1247_v43  ;;  %v9356_v62 = vsub.f32 %v306_v4, %v9328_v0  ;;  %v308_v21 = vld [vmem:[%s7370_s26 + $0x328] sm:$0xff]  ;;  %v1904_v45 = vand.u32 4294901760, %v1903_v8  ;;  %v1921_v39 = vsub.f32 %v11704_v16, %v1920_v29  ;;  %v11709_v58 = vand.u32 4294901760, %v9304_v18 }
 0x15e   : > { %3953 = vmatprep.mubr.f32.mxu0 %v11706_v55  ;;  %v1278_v12 = vsub.f32 %v9295_v32, %v11707_v35  ;;  %v1916_v43 = vand.u32 4294901760, %v1915_v17  ;;  %v1910_v1 = vand.u32 4294901760, %v1909_v30  ;;  %6162 = vmatprep.subr.bf16.mxu0 %v6161_v36  ;;  %v6163_v55 = vpack.c.bf16 %v1920_v29, %v1908_v48 }
 0x15f   : > { %11708 = vst [vmem:[#allocation276_spill] sm:$0xff] %v9356_v62  ;;  %v1284_v34 = vsub.f32 %v9304_v18, %v11709_v58  ;;  %v11710_v49 = vand.u32 4294901760, %v9307_v6  ;;  %v9368_v0 = vand.u32 4294901760, %v305_v15  ;;  %v1922_v8 = vand.u32 4294901760, %v1921_v39 }
 0x160   : > { %1254 = vmatmul.mubr.f32.gmra.mrb[88].mxu1 %v1253_v9  ;;  %v11712_v16 = vand.u32 4294901760, %v9244_v2  ;;  %v1269_v58 = vand.u32 4294901760, %v1268_v44  ;;  %v11008_v17 = vand.u32 4294901760, %v9340_v25  ;;  %v9373_v30 = vand.u32 4294901760, %v308_v21  ;;  %v310_v9 = vld [vmem:[%s7370_s26 + $0x338] sm:$0xff]  ;;  %6164 = vmatpush1.bf16.msra.mxu0 %v6163_v55 }
 0x161   : > { %v1294_v35 = vsub.f32 %v9307_v6, %v11710_v49  ;;  %11711 = vst [vmem:[#allocation277_spill] sm:$0xff] %v9368_v0  ;;  %v5969_v48 = vpack.c.bf16 %v1916_v43, %v1904_v45  ;;  %1264 = vmatprep.mubr.f32.mxu1 %v1263_v19  ;;  %v11714_v29 = vand.u32 4294901760, %v9252_v47  ;;  %v1279_v49 = vand.u32 4294901760, %v1278_v12  ;;  %v11728_v47 = vld [vmem:[#allocation67_spill] sm:$0xff] }
 0x162   : > { %3957 = vmatmul.mubr.f32.gmra.mrb[88].mxu0 %v11712_v16  ;;  %11713 = vst [vmem:[#allocation278_spill] sm:$0xff] %v9373_v30  ;;  %v11010_v36 = vand.u32 4294901760, %v9356_v62  ;;  %v9378_v4 = vand.u32 4294901760, %v307_v3  ;;  %v5971_v39 = vpack.c.bf16 %v1922_v8, %v1910_v1  ;;  %v11716_v16 = vand.u32 4294901760, %v9322_v5 }
 0x163   : > { %3965 = vmatprep.mubr.f32.mxu0 %v11714_v29  ;;  %5970 = vmatprep.subr.bf16.mxu1 %v5969_v48  ;;  %v11717_v45 = vand.u32 4294901760, %v9337_v33  ;;  %v9388_v43 = vsub.f32 %v305_v15, %v9368_v0  ;;  %v11719_v12 = vand.u32 4294901760, %v9280_v10  ;;  %v1285_v1 = vand.u32 4294901760, %v1284_v34  ;;  %v309_v29 = vld [vmem:[%s7370_s26 + $0x330] sm:$0xff] }
 0x164   : > { %11715 = vst [vmem:[#allocation279_spill] sm:$0xff] %v9378_v4  ;;  %v1300_v44 = vsub.f32 %v9322_v5, %v11716_v16  ;;  %5972 = vmatpush1.bf16.msra.mxu1 %v5971_v39  ;;  %v1316_v8 = vsub.f32 %v9340_v25, %v11008_v17  ;;  %v9396_v55 = vsub.f32 %v308_v21, %v9373_v30  ;;  %v9398_v48 = vand.u32 4294901760, %v310_v9  ;;  %v11724_v16 = vld [vmem:[#allocation66_spill] sm:$0xff] }
 0x165   : > { %v1310_v19 = vsub.f32 %v9337_v33, %v11717_v45  ;;  %11718 = vst [vmem:[#allocation280_spill] sm:$0xff] %v9388_v43  ;;  %1270 = vmatmul.mubr.f32.gmra.mrb[90].mxu1 %v1269_v58  ;;  %v11722_v15 = vand.u32 4294901760, %v9295_v32  ;;  %v1295_v58 = vand.u32 4294901760, %v1294_v35  ;;  %v1326_v34 = vsub.f32 %v9356_v62, %v11010_v36 }
 0x166   : > { %3969 = vmatmul.mubr.f32.gmra.mrb[90].mxu0 %v11719_v12  ;;  %11720 = vst [vmem:[#allocation281_spill] sm:$0xff] %v9396_v55  ;;  %11721 = vst [vmem:[#allocation282_spill] sm:$0xff] %v9398_v48  ;;  %1280 = vmatprep.mubr.f32.mxu1 %v1279_v49  ;;  %v9407_v39 = vsub.f32 %v307_v3, %v9378_v4  ;;  %v1926_v45 = vand.u32 4294901760, %v11724_v16  ;;  %v1301_v21 = vand.u32 4294901760, %v1300_v44  ;;  %v312_v12 = vld [vmem:[%s7370_s26 + $0x348] sm:$0xff]  ;;  %v9412_v49 = vand.u32 4294901760, %v309_v29 }
 0x167   : > { %3977 = vmatprep.mubr.f32.mxu0 %v11722_v15  ;;  %v1311_v17 = vand.u32 4294901760, %v1310_v19  ;;  %v11726_v35 = vand.u32 4294901760, %v9304_v18  ;;  %v1317_v36 = vand.u32 4294901760, %v1316_v8  ;;  %v9419_v32 = vsub.f32 %v310_v9, %v9398_v48  ;;  %v311_v44 = vld [vmem:[%s7370_s26 + $0x340] sm:$0xff]  ;;  %v11731_v18 = vld [vmem:[#allocation69_spill] sm:$0xff]  ;;  %v314_v8 = vld [vmem:[%s7370_s26 + $0x358] sm:$0xff] }
 0x168   : > { %11723 = vst [vmem:[#allocation283_spill] sm:$0xff] %v9407_v39  ;;  %11725 = vst [vmem:[#allocation284_spill] sm:$0xff] %v9412_v49  ;;  %v1927_v15 = vsub.f32 %v11724_v16, %v1926_v45  ;;  %v1938_v19 = vand.u32 4294901760, %v11728_v47  ;;  %v11729_v10 = vand.u32 4294901760, %v9307_v6  ;;  %v1327_v2 = vand.u32 4294901760, %v1326_v34  ;;  %v11732_v9 = vld [vmem:[#allocation71_spill] sm:$0xff] }
 0x169   : > { %1286 = vmatmul.mubr.f32.gmra.mrb[92].mxu1 %v1285_v1  ;;  %11727 = vst [vmem:[#allocation285_spill] sm:$0xff] %v9419_v32  ;;  %v9426_v1 = vand.u32 4294901760, %v312_v12  ;;  %v1944_v48 = vand.u32 4294901760, %v11732_v9  ;;  %v11733_v16 = vand.u32 4294901760, %v9388_v43  ;;  %v9438_v34 = vand.u32 4294901760, %v311_v44 }
 0x16a   : > { %3981 = vmatmul.mubr.f32.gmra.mrb[92].mxu0 %v11726_v35  ;;  %1296 = vmatprep.mubr.f32.mxu1 %v1295_v58  ;;  %v1932_v35 = vand.u32 4294901760, %v11731_v18  ;;  %v1928_v30 = vand.u32 4294901760, %v1927_v15  ;;  %v1939_v3 = vsub.f32 %v11728_v47, %v1938_v19  ;;  %v6165_v0 = vpack.c.bf16 %v1938_v19, %v1926_v45 }
 0x16b   : > { %3989 = vmatprep.mubr.f32.mxu0 %v11729_v10  ;;  %11730 = vst [vmem:[#allocation286_spill] sm:$0xff] %v9426_v1  ;;  %v1332_v58 = vsub.f32 %v9388_v43, %v11733_v16  ;;  %v9436_v10 = vsub.f32 %v309_v29, %v9412_v49  ;;  %11735 = vst [vmem:[#allocation287_spill] sm:$0xff] %v9438_v34  ;;  %v11736_v15 = vand.u32 4294901760, %v9322_v5  ;;  %v11737_v6 = vand.u32 4294901760, %v9396_v55 }
 0x16c   : > { %v1933_v4 = vsub.f32 %v11731_v18, %v1932_v35  ;;  %v1940_v19 = vand.u32 4294901760, %v1939_v3  ;;  %v1945_v47 = vsub.f32 %v11732_v9, %v1944_v48  ;;  %v6167_v16 = vpack.c.bf16 %v1944_v48, %v1932_v35  ;;  %6166 = vmatprep.subr.bf16.mxu0 %v6165_v0 }
 0x16d   : > { %11734 = vst [vmem:[#allocation71_spill] sm:$0xff] %v9436_v10  ;;  %1302 = vmatmul.mubr.f32.gmra.mrb[94].mxu1 %v1301_v21  ;;  %v1342_v45 = vsub.f32 %v9396_v55, %v11737_v6  ;;  %v11738_v29 = vand.u32 4294901760, %v9337_v33  ;;  %v1357_v49 = vand.u32 4294901760, %v9419_v32  ;;  %v9451_v18 = vsub.f32 %v312_v12, %v9426_v1 }
 0x16e   : > { %3993 = vmatmul.mubr.f32.gmra.mrb[94].mxu0 %v11736_v15  ;;  %1312 = vmatprep.mubr.f32.mxu1 %v1311_v17  ;;  %v9453_v21 = vand.u32 4294901760, %v314_v8  ;;  %v313_v15 = vld [vmem:[%s7370_s26 + $0x350] sm:$0xff]  ;;  %v1934_v5 = vand.u32 4294901760, %v1933_v4  ;;  %v5973_v6 = vpack.c.bf16 %v1940_v19, %v1928_v30  ;;  %v1946_v3 = vand.u32 4294901760, %v1945_v47  ;;  %v315_v47 = vld [vmem:[%s7370_s26 + $0x360] sm:$0xff] }
 0x16f   : > { %4001 = vmatprep.mubr.f32.mxu0 %v11738_v29  ;;  %11739 = vst [vmem:[#allocation288_spill] sm:$0xff] %v9451_v18  ;;  %v11741_v48 = vand.u32 4294901760, %v9407_v39  ;;  %v1363_v35 = vand.u32 4294901760, %v9436_v10  ;;  %v9462_v29 = vsub.f32 %v311_v44, %v9438_v34  ;;  %6168 = vmatpush1.bf16.msra.mxu0 %v6167_v16  ;;  %v11743_v12 = vand.u32 4294901760, %v9340_v25 }
 0x170   : > { %11740 = vst [vmem:[#allocation289_spill] sm:$0xff] %v9453_v21  ;;  %v1333_v4 = vand.u32 4294901760, %v1332_v58  ;;  %v1343_v33 = vand.u32 4294901760, %v1342_v45  ;;  %v9466_v30 = vand.u32 4294901760, %v313_v15  ;;  %v5975_v0 = vpack.c.bf16 %v1946_v3, %v1934_v5  ;;  %v318_v58 = vld [vmem:[%s7370_s26 + $0x378] sm:$0xff]  ;;  %5974 = vmatprep.subr.bf16.mxu1 %v5973_v6  ;;  %v11748_v45 = vld [vmem:[#allocation73_spill] sm:$0xff] }
 0x171   : > { %v1348_v17 = vsub.f32 %v9407_v39, %v11741_v48  ;;  %11742 = vst [vmem:[#allocation290_spill] sm:$0xff] %v9462_v29  ;;  %1318 = vmatmul.mubr.f32.gmra.mrb[96].mxu1 %v1317_v36  ;;  %v11745_v19 = vand.u32 4294901760, %v9356_v62  ;;  %v1358_v48 = vsub.f32 %v9419_v32, %v1357_v49  ;;  %v1373_v44 = vand.u32 4294901760, %v9451_v18  ;;  %v11750_v5 = vld [vmem:[#allocation11_spill] sm:$0xff] }
 0x172   : > { %4005 = vmatmul.mubr.f32.gmra.mrb[96].mxu0 %v11743_v12  ;;  %11744 = vst [vmem:[#allocation291_spill] sm:$0xff] %v9466_v30  ;;  %1328 = vmatprep.mubr.f32.mxu1 %v1327_v2  ;;  %v9474_v36 = vsub.f32 %v314_v8, %v9453_v21  ;;  %v9476_v16 = vand.u32 4294901760, %v316_v41  ;;  %v11749_v12 = vld [vmem:[#allocation75_spill] sm:$0xff]  ;;  %v9482_v3 = vand.u32 4294901760, %v315_v47  ;;  %v1364_v8 = vsub.f32 %v9436_v10, %v1363_v35 }
 0x173   : > { %4013 = vmatprep.mubr.f32.mxu0 %v11745_v19  ;;  %v5977_v25 = vpack.c.bf16 %v11749_v12, %v11748_v45  ;;  %6170 = vmatprep.subr.bf16.mxu0 %v11750_v5  ;;  %v1349_v2 = vand.u32 4294901760, %v1348_v17  ;;  %v11752_v19 = vand.u32 4294901760, %v9388_v43  ;;  %v1379_v32 = vand.u32 4294901760, %v9462_v29  ;;  %v317_v45 = vld [vmem:[%s7370_s26 + $0x370] sm:$0xff] }
 0x174   : > { %11746 = vst [vmem:[#allocation292_spill] sm:$0xff] %v9474_v36  ;;  %11747 = vst [vmem:[#allocation293_spill] sm:$0xff] %v9476_v16  ;;  %5976 = vmatpush1.bf16.msra.mxu1 %v5975_v0  ;;  %v9489_v6 = vsub.f32 %v313_v15, %v9466_v30  ;;  %v9491_v62 = vand.u32 4294901760, %v318_v58  ;;  %v11755_v17 = vand.u32 4294901760, %v9396_v55  ;;  %v1359_v12 = vand.u32 4294901760, %v1358_v48 }
 0x175   : > { %11751 = vst [vmem:[#allocation73_spill] sm:$0xff] %v9482_v3  ;;  %1334 = vmatmul.mubr.f32.gmra.mrb[98].mxu1 %v1333_v4  ;;  %v1374_v4 = vsub.f32 %v9451_v18, %v1373_v44  ;;  %v1389_v0 = vand.u32 4294901760, %v9474_v36  ;;  %v9499_v5 = vsub.f32 %v316_v41, %v9476_v16  ;;  %5978 = vmatprep.subr.bf16.mxu1 %v5977_v25  ;;  %v9505_v10 = vand.u32 4294901760, %v317_v45 }
 0x176   : > { %4017 = vmatmul.mubr.f32.gmra.mrb[98].mxu0 %v11752_v19  ;;  %11753 = vst [vmem:[#allocation75_spill] sm:$0xff] %v9489_v6  ;;  %11754 = vst [vmem:[#allocation11_spill] sm:$0xff] %v9491_v62  ;;  %1344 = vmatprep.mubr.f32.mxu1 %v1343_v33  ;;  %v320_v19 = vld [vmem:[%s7370_s26 + $0x388] sm:$0xff]  ;;  %v9503_v15 = vsub.f32 %v315_v47, %v9482_v3  ;;  %v11759_v33 = vand.u32 4294901760, %v9407_v39  ;;  %v1365_v48 = vand.u32 4294901760, %v1364_v8  ;;  %v1395_v18 = vand.u32 4294901760, %v9489_v6 }
 0x177   : > { %4025 = vmatprep.mubr.f32.mxu0 %v11755_v17  ;;  %11756 = vst [vmem:[#allocation294_spill] sm:$0xff] %v9499_v5  ;;  %11758 = vst [vmem:[#allocation296_spill] sm:$0xff] %v9505_v10  ;;  %v1380_v17 = vsub.f32 %v9462_v29, %v1379_v32  ;;  %v9512_v41 = vsub.f32 %v318_v58, %v9491_v62  ;;  %v1375_v25 = vand.u32 4294901760, %v1374_v4  ;;  %v1405_v55 = vand.u32 4294901760, %v9499_v5 }
 0x178   : > { %11757 = vst [vmem:[#allocation295_spill] sm:$0xff] %v9503_v15  ;;  %v1390_v47 = vsub.f32 %v9474_v36, %v1389_v0  ;;  %v9516_v43 = vand.u32 4294901760, %v320_v19  ;;  %v1411_v8 = vand.u32 4294901760, %v9503_v15  ;;  %v9522_v29 = vsub.f32 %v317_v45, %v9505_v10  ;;  %v321_v45 = vld [vmem:[%s7370_s26 + $0x390] sm:$0xff] }
 0x179   : > { %1350 = vmatmul.mubr.f32.gmra.mrb[100].mxu1 %v1349_v2  ;;  %11760 = vst [vmem:[#allocation297_spill] sm:$0xff] %v9512_v41  ;;  %v319_v2 = vld [vmem:[%s7370_s26 + $0x380] sm:$0xff]  ;;  %v1381_v58 = vand.u32 4294901760, %v1380_v17  ;;  %v1406_v39 = vsub.f32 %v9499_v5, %v1405_v55 }
 0x17a   : > { %4029 = vmatmul.mubr.f32.gmra.mrb[100].mxu0 %v11759_v33  ;;  %1360 = vmatprep.mubr.f32.mxu1 %v1359_v12  ;;  %11761 = vst [vmem:[#allocation298_spill] sm:$0xff] %v9516_v43  ;;  %v322_v33 = vld [vmem:[%s7370_s26 + $0x398] sm:$0xff]  ;;  %11762 = vst [vmem:[#allocation299_spill] sm:$0xff] %v9522_v29  ;;  %v1421_v12 = vand.u32 4294901760, %v9512_v41  ;;  %v9526_v4 = vand.u32 4294901760, %v319_v2  ;;  %v1391_v36 = vand.u32 4294901760, %v1390_v47  ;;  %v9530_v62 = vsub.f32 %v320_v19, %v9516_v43 }
 0x17b   : > { %4037 = vmatprep.mubr.f32.mxu0 %v1357_v49  ;;  %v1396_v49 = vsub.f32 %v9489_v6, %v1395_v18  ;;  %v9532_v3 = vand.u32 4294901760, %v322_v33  ;;  %v1427_v17 = vand.u32 4294901760, %v9522_v29  ;;  %v9542_v19 = vand.u32 4294901760, %v321_v45  ;;  %v325_v43 = vld [vmem:[%s7370_s26 + $0x3b0] sm:$0xff] }
 0x17c   : > { %11763 = vst [vmem:[#allocation300_spill] sm:$0xff] %v9526_v4  ;;  %11764 = vst [vmem:[#allocation301_spill] sm:$0xff] %v9530_v62  ;;  %v9540_v47 = vsub.f32 %v319_v2, %v9526_v4  ;;  %v1407_v5 = vand.u32 4294901760, %v1406_v39  ;;  %v1437_v6 = vand.u32 4294901760, %v9530_v62 }
 0x17d   : > { %1366 = vmatmul.mubr.f32.gmra.mrb[102].mxu1 %v1365_v48  ;;  %11765 = vst [vmem:[#allocation302_spill] sm:$0xff] %v9532_v3  ;;  %v1412_v48 = vsub.f32 %v9503_v15, %v1411_v8  ;;  %11767 = vst [vmem:[#allocation304_spill] sm:$0xff] %v9542_v19  ;;  %v9546_v15 = vsub.f32 %v322_v33, %v9532_v3  ;;  %v1428_v2 = vsub.f32 %v9522_v29, %v1427_v17  ;;  %v328_v33 = vld [vmem:[%s7370_s26 + $0x3c8] sm:$0xff] }
 0x17e   : > { %4041 = vmatmul.mubr.f32.gmra.mrb[102].mxu0 %v1363_v35  ;;  %1376 = vmatprep.mubr.f32.mxu1 %v1375_v25  ;;  %v324_v35 = vld [vmem:[%s7370_s26 + $0x3a8] sm:$0xff]  ;;  %v1397_v25 = vand.u32 4294901760, %v1396_v49  ;;  %11766 = vst [vmem:[#allocation303_spill] sm:$0xff] %v9540_v47  ;;  %v326_v49 = vld [vmem:[%s7370_s26 + $0x3b8] sm:$0xff]  ;;  %v1438_v3 = vsub.f32 %v9530_v62, %v1437_v6 }
 0x17f   : > { %4049 = vmatprep.mubr.f32.mxu0 %v1373_v44  ;;  %v1422_v44 = vsub.f32 %v9512_v41, %v1421_v12  ;;  %11768 = vst [vmem:[#allocation305_spill] sm:$0xff] %v9546_v15  ;;  %v1413_v41 = vand.u32 4294901760, %v1412_v48  ;;  %v1453_v48 = vand.u32 4294901760, %v9546_v15 }
 0x181   : > { %1382 = vmatmul.mubr.f32.gmra.mrb[104].mxu1 %v1381_v58  ;;  %v9548_v58 = vand.u32 4294901760, %v324_v35  ;;  %v1423_v4 = vand.u32 4294901760, %v1422_v44  ;;  %v1429_v44 = vand.u32 4294901760, %v1428_v2 }
 0x182   : > { %4053 = vmatmul.mubr.f32.gmra.mrb[104].mxu0 %v1379_v32  ;;  %1392 = vmatprep.mubr.f32.mxu1 %v1391_v36  ;;  %v323_v32 = vld [vmem:[%s7370_s26 + $0x3a0] sm:$0xff]  ;;  %v1443_v36 = vand.u32 4294901760, %v9540_v47 }
 0x183   : > { %4061 = vmatprep.mubr.f32.mxu0 %v1389_v0  ;;  %11769 = vst [vmem:[#allocation306_spill] sm:$0xff] %v9548_v58  ;;  %v9555_v0 = vsub.f32 %v321_v45, %v9542_v19  ;;  %v9557_v39 = vand.u32 4294901760, %v323_v32  ;;  %v9564_v29 = vsub.f32 %v324_v35, %v9548_v58  ;;  %v9570_v45 = vand.u32 4294901760, %v328_v33 }
 0x184   : > { %v1439_v35 = vand.u32 4294901760, %v1438_v3  ;;  %v1454_v58 = vsub.f32 %v9546_v15, %v1453_v48 }
 0x185   : > { %1398 = vmatmul.mubr.f32.gmra.mrb[106].mxu1 %v1397_v25  ;;  %11770 = vst [vmem:[#allocation307_spill] sm:$0xff] %v9555_v0  ;;  %11771 = vst [vmem:[#allocation308_spill] sm:$0xff] %v9557_v39  ;;  %v9568_v25 = vand.u32 4294901760, %v325_v43  ;;  %v9575_v62 = vsub.f32 %v323_v32, %v9557_v39  ;;  %v1469_v19 = vand.u32 4294901760, %v9564_v29  ;;  %v9588_v32 = vsub.f32 %v328_v33, %v9570_v45  ;;  %v329_v33 = vld [vmem:[%s7370_s26 + $0x3d0] sm:$0xff] }
 0x186   : > { %4065 = vmatmul.mubr.f32.gmra.mrb[106].mxu0 %v1395_v18  ;;  %1408 = vmatprep.mubr.f32.mxu1 %v1407_v5  ;;  %11772 = vst [vmem:[#allocation309_spill] sm:$0xff] %v9564_v29  ;;  %v9566_v18 = vand.u32 4294901760, %v326_v49  ;;  %11775 = vst [vmem:[#allocation312_spill] sm:$0xff] %v9570_v45  ;;  %v1459_v5 = vand.u32 4294901760, %v9555_v0 }
 0x187   : > { %4073 = vmatprep.mubr.f32.mxu0 %v1405_v55  ;;  %11774 = vst [vmem:[#allocation311_spill] sm:$0xff] %v9568_v25  ;;  %v1444_v55 = vsub.f32 %v9540_v47, %v1443_v36  ;;  %11776 = vst [vmem:[#allocation313_spill] sm:$0xff] %v9575_v62  ;;  %v9585_v2 = vsub.f32 %v325_v43, %v9568_v25  ;;  %v1470_v47 = vsub.f32 %v9564_v29, %v1469_v19 }
 0x188   : > { %11773 = vst [vmem:[#allocation310_spill] sm:$0xff] %v9566_v18  ;;  %v9580_v10 = vsub.f32 %v326_v49, %v9566_v18  ;;  %11779 = vst [vmem:[#allocation316_spill] sm:$0xff] %v9588_v32  ;;  %v1455_v49 = vand.u32 4294901760, %v1454_v58 }
 0x189   : > { %1414 = vmatmul.mubr.f32.gmra.mrb[108].mxu1 %v1413_v41  ;;  %v327_v41 = vld [vmem:[%s7370_s26 + $0x3c0] sm:$0xff]  ;;  %11778 = vst [vmem:[#allocation315_spill] sm:$0xff] %v9585_v2  ;;  %v1445_v3 = vand.u32 4294901760, %v1444_v55  ;;  %v1501_v55 = vand.u32 4294901760, %v9588_v32  ;;  %v1471_v29 = vand.u32 4294901760, %v1470_v47 }
 0x18a   : > { %4077 = vmatmul.mubr.f32.gmra.mrb[108].mxu0 %v1411_v8  ;;  %1424 = vmatprep.mubr.f32.mxu1 %v1423_v4  ;;  %11777 = vst [vmem:[#allocation314_spill] sm:$0xff] %v9580_v10  ;;  %v330_v8 = vld [vmem:[%s7370_s26 + $0x3d8] sm:$0xff]  ;;  %v1475_v4 = vand.u32 4294901760, %v9575_v62  ;;  %v9592_v15 = vand.u32 4294901760, %v327_v41  ;;  %v1485_v43 = vand.u32 4294901760, %v9580_v10 }
 0x18b   : > { %4085 = vmatprep.mubr.f32.mxu0 %v1421_v12  ;;  %v1460_v12 = vsub.f32 %v9555_v0, %v1459_v5  ;;  %v9596_v25 = vand.u32 4294901760, %v330_v8 }
 0x18c   : > { %v9604_v58 = vsub.f32 %v327_v41, %v9592_v15  ;;  %v1486_v45 = vsub.f32 %v9580_v10, %v1485_v43  ;;  %v1502_v41 = vsub.f32 %v9588_v32, %v1501_v55 }
 0x18d   : > { %1430 = vmatmul.mubr.f32.gmra.mrb[110].mxu1 %v1429_v44  ;;  %11780 = vst [vmem:[#allocation317_spill] sm:$0xff] %v9596_v25  ;;  %v332_v44 = vld [vmem:[%s7370_s26 + $0x3e8] sm:$0xff]  ;;  %v1461_v0 = vand.u32 4294901760, %v1460_v12  ;;  %v9610_v18 = vsub.f32 %v330_v8, %v9596_v25 }
 0x18e   : > { %4089 = vmatmul.mubr.f32.gmra.mrb[110].mxu0 %v1427_v17  ;;  %1440 = vmatprep.mubr.f32.mxu1 %v1439_v35  ;;  %v1491_v17 = vand.u32 4294901760, %v9585_v2  ;;  %11781 = vst [vmem:[#allocation318_spill] sm:$0xff] %v9604_v58  ;;  %v9606_v35 = vand.u32 4294901760, %v329_v33  ;;  %v9612_v39 = vand.u32 4294901760, %v332_v44  ;;  %v1487_v8 = vand.u32 4294901760, %v1486_v45 }
 0x18f   : > { %4097 = vmatprep.mubr.f32.mxu0 %v1437_v6  ;;  %v1476_v6 = vsub.f32 %v9575_v62, %v1475_v4  ;;  %11783 = vst [vmem:[#allocation320_spill] sm:$0xff] %v9610_v18  ;;  %v1517_v10 = vand.u32 4294901760, %v9610_v18 }
 0x190   : > { %11782 = vst [vmem:[#allocation319_spill] sm:$0xff] %v9606_v35  ;;  %11784 = vst [vmem:[#allocation321_spill] sm:$0xff] %v9612_v39  ;;  %v1492_v12 = vsub.f32 %v9585_v2, %v1491_v17  ;;  %v9620_v47 = vsub.f32 %v329_v33, %v9606_v35  ;;  %v9626_v25 = vsub.f32 %v332_v44, %v9612_v39 }
 0x191   : > { %1446 = vmatmul.mubr.f32.gmra.mrb[112].mxu1 %v1445_v3  ;;  %v331_v3 = vld [vmem:[%s7370_s26 + $0x3e0] sm:$0xff]  ;;  %v1477_v62 = vand.u32 4294901760, %v1476_v6  ;;  %v1518_v45 = vsub.f32 %v9610_v18, %v1517_v10  ;;  %v11895_v18 = vld [vmem:[#allocation170_spill] sm:$0xff] }
 0x192   : > { %4101 = vmatmul.mubr.f32.gmra.mrb[112].mxu0 %v1443_v36  ;;  %1456 = vmatprep.mubr.f32.mxu1 %v1455_v49  ;;  %v334_v36 = vld [vmem:[%s7370_s26 + $0x3f8] sm:$0xff]  ;;  %11785 = vst [vmem:[#allocation322_spill] sm:$0xff] %v9620_v47  ;;  %v9622_v49 = vand.u32 4294901760, %v331_v3  ;;  %11787 = vst [vmem:[#allocation324_spill] sm:$0xff] %v9626_v25  ;;  %v1523_v33 = vand.u32 4294901760, %v9620_v47  ;;  %v1533_v44 = vand.u32 4294901760, %v9626_v25 }
 0x193   : > { %4109 = vmatprep.mubr.f32.mxu0 %v1453_v48  ;;  %v1507_v48 = vand.u32 4294901760, %v9604_v58  ;;  %v9628_v2 = vand.u32 4294901760, %v334_v36 }
 0x194   : > { %11786 = vst [vmem:[#allocation323_spill] sm:$0xff] %v9622_v49  ;;  %v9634_v32 = vsub.f32 %v331_v3, %v9622_v49 }
 0x195   : > { %1462 = vmatmul.mubr.f32.gmra.mrb[114].mxu1 %v1461_v0  ;;  %11788 = vst [vmem:[#allocation325_spill] sm:$0xff] %v9628_v2  ;;  %v333_v0 = vld [vmem:[%s7370_s26 + $0x3f0] sm:$0xff]  ;;  %v1508_v6 = vsub.f32 %v9604_v58, %v1507_v48 }
 0x196   : > { %4113 = vmatmul.mubr.f32.gmra.mrb[114].mxu0 %v1459_v5  ;;  %1472 = vmatprep.mubr.f32.mxu1 %v1471_v29  ;;  %v1493_v5 = vand.u32 4294901760, %v1492_v12  ;;  %11789 = vst [vmem:[#allocation326_spill] sm:$0xff] %v9634_v32  ;;  %v9636_v29 = vand.u32 4294901760, %v333_v0  ;;  %v9641_v12 = vsub.f32 %v334_v36, %v9628_v2  ;;  %v1539_v3 = vand.u32 4294901760, %v9634_v32 }
 0x197   : > { %4121 = vmatprep.mubr.f32.mxu0 %v1469_v19  ;;  %v1503_v19 = vand.u32 4294901760, %v1502_v41  ;;  %v1534_v41 = vsub.f32 %v9626_v25, %v1533_v44 }
 0x198   : > { %11790 = vst [vmem:[#allocation327_spill] sm:$0xff] %v9636_v29  ;;  %11791 = vst [vmem:[#allocation328_spill] sm:$0xff] %v9641_v12  ;;  %v9646_v58 = vsub.f32 %v333_v0, %v9636_v29 }
 0x199   : > { %1478 = vmatmul.mubr.f32.gmra.mrb[116].mxu1 %v1477_v62  ;;  %v1509_v62 = vand.u32 4294901760, %v1508_v6  ;;  %v1535_v6 = vand.u32 4294901760, %v1534_v41 }
 0x19a   : > { %4125 = vmatmul.mubr.f32.gmra.mrb[116].mxu0 %v1475_v4  ;;  %1488 = vmatprep.mubr.f32.mxu1 %v1487_v8  ;;  %v1524_v4 = vsub.f32 %v9620_v47, %v1523_v33  ;;  %11792 = vst [vmem:[#allocation329_spill] sm:$0xff] %v9646_v58  ;;  %v1549_v8 = vand.u32 4294901760, %v9641_v12  ;;  %v11894_v47 = vld [vmem:[#allocation169_spill] sm:$0xff] }
 0x19b   : > { %4133 = vmatprep.mubr.f32.mxu0 %v1485_v43  ;;  %v1519_v43 = vand.u32 4294901760, %v1518_v45 }
 0x19c   : > { %v1525_v36 = vand.u32 4294901760, %v1524_v4  ;;  %v1550_v0 = vsub.f32 %v9641_v12, %v1549_v8  ;;  %v11795_v4 = vld [vmem:[#allocation77_spill] sm:$0xff]  ;;  %v11887_v12 = vld [vmem:[#allocation158_spill] sm:$0xff] }
 0x19d   : > { %1494 = vmatmul.mubr.f32.gmra.mrb[118].mxu1 %v1493_v5  ;;  %v1555_v5 = vand.u32 4294901760, %v9646_v58 }
 0x19e   : > { %4137 = vmatmul.mubr.f32.gmra.mrb[118].mxu0 %v1491_v17  ;;  %1504 = vmatprep.mubr.f32.mxu1 %v1503_v19  ;;  %v1540_v17 = vsub.f32 %v9634_v32, %v1539_v3  ;;  %v1551_v45 = vand.u32 4294901760, %v1550_v0  ;;  %v11803_v0 = vld [vmem:[#allocation85_spill] sm:$0xff]  ;;  %v11893_v32 = vld [vmem:[#allocation58_spill] sm:$0xff] }
 0x19f   : > { %4145 = vmatprep.mubr.f32.mxu0 %v1501_v55  ;;  %v1556_v19 = vsub.f32 %v9646_v58, %v1555_v5  ;;  %v11885_v58 = vld [vmem:[#allocation154_spill] sm:$0xff]  ;;  %v6031_v25 = vpack.c.bf16 %v11675_v61, %v11893_v32  ;;  %v11899_v61 = vld [vmem:[#allocation176_spill] sm:$0xff] }
 0x1a0   : > { %v1541_v55 = vand.u32 4294901760, %v1540_v17  ;;  %v11801_v17 = vld [vmem:[#allocation83_spill] sm:$0xff]  ;;  %v11901_v32 = vld [vmem:[#allocation182_spill] sm:$0xff] }
 0x1a1   : > { %1510 = vmatmul.mubr.f32.gmra.mrb[120].mxu1 %v1509_v62  ;;  %v11793_v62 = vld [vmem:[#allocation68_spill] sm:$0xff] }
 0x1a2   : > { %4149 = vmatmul.mubr.f32.gmra.mrb[120].mxu0 %v1507_v48  ;;  %1520 = vmatprep.mubr.f32.mxu1 %v1519_v43  ;;  %v1557_v48 = vand.u32 4294901760, %v1556_v19  ;;  %v11796_v43 = vld [vmem:[#allocation80_spill] sm:$0xff]  ;;  %v11805_v19 = vld [vmem:[#allocation14_spill] sm:$0xff] }
 0x1a3   : > { %4157 = vmatprep.mubr.f32.mxu0 %v1517_v10  ;;  %v11794_v10 = vld [vmem:[#allocation76_spill] sm:$0xff]  ;;  %v5981_v41 = vpack.c.bf16 %v11796_v43, %v7908_v50  ;;  %v5985_v50 = vpack.c.bf16 %v7957_v46, %v7949_v20  ;;  %v5989_v20 = vpack.c.bf16 %v7462_v42, %v7458_v40  ;;  %v11807_v46 = vld [vmem:[#allocation93_spill] sm:$0xff]  ;;  %v5993_v40 = vpack.c.bf16 %v7476_v59, %v7472_v54  ;;  %v11813_v43 = vld [vmem:[#allocation18_spill] sm:$0xff] }
 0x1a4   : > { %v11811_v42 = vld [vmem:[#allocation100_spill] sm:$0xff]  ;;  %v5997_v54 = vpack.c.bf16 %v7496_v37, %v7486_v22  ;;  %v11815_v59 = vld [vmem:[#allocation103_spill] sm:$0xff]  ;;  %v6001_v22 = vpack.c.bf16 %v7518_v51, %v7507_v26 }
 0x1a5   : > { %1526 = vmatmul.mubr.f32.gmra.mrb[122].mxu1 %v1525_v36  ;;  %v11797_v36 = vld [vmem:[#allocation79_spill] sm:$0xff]  ;;  %v11818_v37 = vld [vmem:[#allocation24_spill] sm:$0xff] }
 0x1a6   : > { %4161 = vmatmul.mubr.f32.gmra.mrb[122].mxu0 %v1523_v33  ;;  %1536 = vmatprep.mubr.f32.mxu1 %v1535_v6  ;;  %v5979_v33 = vpack.c.bf16 %v11795_v4, %v11794_v10  ;;  %v11802_v6 = vld [vmem:[#allocation13_spill] sm:$0xff]  ;;  %v11808_v10 = vld [vmem:[#allocation98_spill] sm:$0xff]  ;;  %v11809_v4 = vld [vmem:[#allocation16_spill] sm:$0xff] }
 0x1a7   : > { %4169 = vmatprep.mubr.f32.mxu0 %v1533_v44  ;;  %v11798_v44 = vld [vmem:[#allocation84_spill] sm:$0xff] }
 0x1a8   : > { %v11823_v51 = vld [vmem:[#allocation108_spill] sm:$0xff] }
 0x1a9   : > { %1542 = vmatmul.mubr.f32.gmra.mrb[124].mxu1 %v1541_v55  ;;  %v11804_v55 = vld [vmem:[#allocation90_spill] sm:$0xff] }
 0x1aa   : > { %4173 = vmatmul.mubr.f32.gmra.mrb[124].mxu0 %v1539_v3  ;;  %1552 = vmatprep.mubr.f32.mxu1 %v1551_v45  ;;  %v11799_v3 = vld [vmem:[#allocation12_spill] sm:$0xff]  ;;  %v5987_v45 = vpack.c.bf16 %v7967_v14, %v7962_v13  ;;  %v5991_v13 = vpack.c.bf16 %v7470_v53, %v7468_v52  ;;  %v11810_v14 = vld [vmem:[#allocation17_spill] sm:$0xff]  ;;  %v5995_v52 = vpack.c.bf16 %v7484_v63, %v7478_v60  ;;  %v11814_v53 = vld [vmem:[#allocation19_spill] sm:$0xff] }
 0x1ab   : > { %4181 = vmatprep.mubr.f32.mxu0 %v1549_v8  ;;  %v11800_v8 = vld [vmem:[#allocation81_spill] sm:$0xff]  ;;  %v5999_v60 = vpack.c.bf16 %v7505_v27, %v7498_v38  ;;  %v11817_v63 = vld [vmem:[#allocation22_spill] sm:$0xff]  ;;  %v11820_v38 = vld [vmem:[#allocation28_spill] sm:$0xff] }
 0x1ad   : > { %1558 = vmatmul.mubr.f32.gmra.mrb[126].mxu1 %v1557_v48  ;;  %v11806_v48 = vld [vmem:[#allocation15_spill] sm:$0xff] }
 0x1ae   : > { %4185 = vmatmul.mubr.f32.gmra.mrb[126].mxu0 %v1555_v5  ;;  %1949 = vmatprep.mubr.f32.mxu1 %v11793_v62  ;;  %v5983_v5 = vpack.c.bf16 %v11801_v17, %v11800_v8  ;;  %v11821_v8 = vld [vmem:[#allocation25_spill] sm:$0xff]  ;;  %v11822_v17 = vld [vmem:[#allocation26_spill] sm:$0xff] }
 0x1af   : > { %4448 = vmatprep.mubr.f32.mxu0 %v11793_v62  ;;  %v6005_v26 = vpack.c.bf16 %v11822_v17, %v11821_v8  ;;  %v11844_v17 = vld [vmem:[#allocation53_spill] sm:$0xff] }
 0x1b1   : > { %1951 = vmatmul.mubr.f32.vlgmr.msra.gmra.mrb[0].mxu1 %v11797_v36 }
 0x1b2   : > { %4450 = vmatmul.mubr.f32.vlgmr.msra.gmra.mrb[0].mxu0 %v11797_v36  ;;  %5980 = vmatpush1.bf16.msra.mxu1 %v5979_v33  ;;  %v11812_v33 = vld [vmem:[#allocation102_spill] sm:$0xff] }
 0x1b3   : > { %1957 = vmatprep.mubr.f32.mxu1 %v11798_v44  ;;  %4456 = vmatprep.mubr.f32.mxu0 %v11798_v44 }
 0x1b4   : > { %6172 = vmatpush1.bf16.msra.mxu0 %v11799_v3  ;;  %5982 = vmatprep.subr.bf16.mxu1 %v5981_v41  ;;  %v11816_v41 = vld [vmem:[#allocation20_spill] sm:$0xff]  ;;  %v11819_v3 = vld [vmem:[#allocation23_spill] sm:$0xff] }
 0x1b5   : > { %6174 = vmatprep.subr.bf16.mxu0 %v11802_v6  ;;  %1959 = vmatmul.mubr.f32.gmra.mrb[2].mxu1 %v11803_v0  ;;  %v6003_v27 = vpack.c.bf16 %v11819_v3, %v11457_v24  ;;  %v11825_v6 = vld [vmem:[#allocation34_spill] sm:$0xff]  ;;  %v11841_v3 = vld [vmem:[#allocation49_spill] sm:$0xff] }
 0x1b6   : > { %4458 = vmatmul.mubr.f32.gmra.mrb[2].mxu0 %v11803_v0  ;;  %1965 = vmatprep.mubr.f32.mxu1 %v11804_v55 }
 0x1b7   : > { %4464 = vmatprep.mubr.f32.mxu0 %v11804_v55  ;;  %5984 = vmatpush1.bf16.msra.mxu1 %v5983_v5  ;;  %v11824_v5 = vld [vmem:[#allocation109_spill] sm:$0xff] }
 0x1b8   : > { %6176 = vmatpush1.bf16.msra.mxu0 %v11805_v19  ;;  %5986 = vmatprep.subr.bf16.mxu1 %v5985_v50  ;;  %v11826_v50 = vld [vmem:[#allocation27_spill] sm:$0xff]  ;;  %v11827_v19 = vld [vmem:[#allocation29_spill] sm:$0xff] }
 0x1b9   : > { %6178 = vmatprep.subr.bf16.mxu0 %v11806_v48  ;;  %1967 = vmatmul.mubr.f32.gmra.mrb[4].mxu1 %v11807_v46  ;;  %v6007_v24 = vpack.c.bf16 %v11827_v19, %v11826_v50  ;;  %v11829_v48 = vld [vmem:[#allocation30_spill] sm:$0xff]  ;;  %v11847_v19 = vld [vmem:[#allocation123_spill] sm:$0xff] }
 0x1ba   : > { %4466 = vmatmul.mubr.f32.gmra.mrb[4].mxu0 %v11807_v46  ;;  %1973 = vmatprep.mubr.f32.mxu1 %v11808_v10 }
 0x1bb   : > { %4472 = vmatprep.mubr.f32.mxu0 %v11808_v10  ;;  %5988 = vmatpush1.bf16.msra.mxu1 %v5987_v45  ;;  %v11828_v45 = vld [vmem:[#allocation37_spill] sm:$0xff] }
 0x1bc   : > { %6180 = vmatpush1.bf16.msra.mxu0 %v11809_v4  ;;  %5990 = vmatprep.subr.bf16.mxu1 %v5989_v20  ;;  %v11830_v20 = vld [vmem:[#allocation31_spill] sm:$0xff] }
 0x1bd   : > { %6182 = vmatprep.subr.bf16.mxu0 %v11810_v14  ;;  %1975 = vmatmul.mubr.f32.gmra.mrb[6].mxu1 %v11811_v42  ;;  %v6009_v4 = vpack.c.bf16 %v11830_v20, %v11829_v48  ;;  %v11832_v14 = vld [vmem:[#allocation117_spill] sm:$0xff]  ;;  %v11850_v48 = vld [vmem:[#allocation42_spill] sm:$0xff]  ;;  %v11851_v20 = vld [vmem:[#allocation43_spill] sm:$0xff] }
 0x1be   : > { %4474 = vmatmul.mubr.f32.gmra.mrb[6].mxu0 %v11811_v42  ;;  %1981 = vmatprep.mubr.f32.mxu1 %v11812_v33 }
 0x1bf   : > { %4480 = vmatprep.mubr.f32.mxu0 %v11812_v33  ;;  %5992 = vmatpush1.bf16.msra.mxu1 %v5991_v13  ;;  %v11831_v13 = vld [vmem:[#allocation113_spill] sm:$0xff] }
 0x1c0   : > { %6184 = vmatpush1.bf16.msra.mxu0 %v11813_v43  ;;  %5994 = vmatprep.subr.bf16.mxu1 %v5993_v40  ;;  %v11833_v40 = vld [vmem:[#allocation45_spill] sm:$0xff]  ;;  %v11834_v43 = vld [vmem:[#allocation32_spill] sm:$0xff] }
 0x1c1   : > { %6186 = vmatprep.subr.bf16.mxu0 %v11814_v53  ;;  %1983 = vmatmul.mubr.f32.gmra.mrb[8].mxu1 %v11815_v59 }
 0x1c2   : > { %4482 = vmatmul.mubr.f32.gmra.mrb[8].mxu0 %v11815_v59  ;;  %1989 = vmatprep.mubr.f32.mxu1 %v8137_v11 }
 0x1c3   : > { %4488 = vmatprep.mubr.f32.mxu0 %v8137_v11  ;;  %5996 = vmatpush1.bf16.msra.mxu1 %v5995_v52  ;;  %v11835_v52 = vld [vmem:[#allocation33_spill] sm:$0xff] }
 0x1c4   : > { %6188 = vmatpush1.bf16.msra.mxu0 %v11816_v41  ;;  %5998 = vmatprep.subr.bf16.mxu1 %v5997_v54  ;;  %v6011_v53 = vpack.c.bf16 %v11835_v52, %v11834_v43  ;;  %v11836_v54 = vld [vmem:[#allocation48_spill] sm:$0xff]  ;;  %v11837_v41 = vld [vmem:[#allocation35_spill] sm:$0xff]  ;;  %v11853_v43 = vld [vmem:[#allocation126_spill] sm:$0xff] }
 0x1c5   : > { %6190 = vmatprep.subr.bf16.mxu0 %v11817_v63  ;;  %1991 = vmatmul.mubr.f32.gmra.mrb[10].mxu1 %v8139_v23  ;;  %v11854_v52 = vld [vmem:[#allocation128_spill] sm:$0xff] }
 0x1c6   : > { %4490 = vmatmul.mubr.f32.gmra.mrb[10].mxu0 %v8139_v23  ;;  %1997 = vmatprep.mubr.f32.mxu1 %v8141_v57 }
 0x1c7   : > { %4496 = vmatprep.mubr.f32.mxu0 %v8141_v57  ;;  %6000 = vmatpush1.bf16.msra.mxu1 %v5999_v60  ;;  %v11838_v60 = vld [vmem:[#allocation36_spill] sm:$0xff] }
 0x1c8   : > { %6192 = vmatpush1.bf16.msra.mxu0 %v11818_v37  ;;  %6002 = vmatprep.subr.bf16.mxu1 %v6001_v22  ;;  %v6013_v63 = vpack.c.bf16 %v11838_v60, %v11837_v41  ;;  %v11839_v22 = vld [vmem:[#allocation118_spill] sm:$0xff]  ;;  %v11840_v37 = vld [vmem:[#allocation119_spill] sm:$0xff]  ;;  %v11857_v41 = vld [vmem:[#allocation129_spill] sm:$0xff] }
 0x1c9   : > { %6194 = vmatprep.subr.bf16.mxu0 %v11820_v38  ;;  %1999 = vmatmul.mubr.f32.gmra.mrb[12].mxu1 %v11823_v51  ;;  %v11843_v38 = vld [vmem:[#allocation39_spill] sm:$0xff]  ;;  %v11858_v60 = vld [vmem:[#allocation130_spill] sm:$0xff] }
 0x1ca   : > { %4498 = vmatmul.mubr.f32.gmra.mrb[12].mxu0 %v11823_v51  ;;  %2005 = vmatprep.mubr.f32.mxu1 %v11824_v5 }
 0x1cb   : > { %4504 = vmatprep.mubr.f32.mxu0 %v11824_v5  ;;  %6004 = vmatpush1.bf16.msra.mxu1 %v6003_v27  ;;  %v11842_v27 = vld [vmem:[#allocation38_spill] sm:$0xff] }
 0x1cc   : > { %6196 = vmatpush1.bf16.msra.mxu0 %v11825_v6  ;;  %6006 = vmatprep.subr.bf16.mxu1 %v6005_v26  ;;  %v6015_v8 = vpack.c.bf16 %v11843_v38, %v11842_v27  ;;  %v11845_v26 = vld [vmem:[#allocation40_spill] sm:$0xff]  ;;  %v11846_v6 = vld [vmem:[#allocation41_spill] sm:$0xff]  ;;  %v11861_v27 = vld [vmem:[#allocation135_spill] sm:$0xff] }
 0x1cd   : > { %6198 = vmatprep.subr.bf16.mxu0 %v11828_v45  ;;  %2007 = vmatmul.mubr.f32.gmra.mrb[14].mxu1 %v11831_v13  ;;  %v6017_v50 = vpack.c.bf16 %v11846_v6, %v11845_v26  ;;  %v11849_v45 = vld [vmem:[#allocation61_spill] sm:$0xff]  ;;  %v11862_v38 = vld [vmem:[#allocation44_spill] sm:$0xff]  ;;  %v11864_v26 = vld [vmem:[#allocation50_spill] sm:$0xff] }
 0x1ce   : > { %4506 = vmatmul.mubr.f32.gmra.mrb[14].mxu0 %v11831_v13  ;;  %2013 = vmatprep.mubr.f32.mxu1 %v11832_v14  ;;  %v6023_v6 = vpack.c.bf16 %v11864_v26, %v11612_v28  ;;  %v11871_v28 = vld [vmem:[#allocation91_spill] sm:$0xff]  ;;  %v11879_v26 = vld [vmem:[#allocation150_spill] sm:$0xff] }
 0x1cf   : > { %4512 = vmatprep.mubr.f32.mxu0 %v11832_v14  ;;  %6008 = vmatpush1.bf16.msra.mxu1 %v6007_v24  ;;  %v11848_v24 = vld [vmem:[#allocation124_spill] sm:$0xff] }
 0x1d0   : > { %6200 = vmatpush1.bf16.msra.mxu0 %v11833_v40  ;;  %6010 = vmatprep.subr.bf16.mxu1 %v6009_v4  ;;  %v6019_v4 = vpack.c.bf16 %v11851_v20, %v11850_v48  ;;  %v11852_v40 = vld [vmem:[#allocation62_spill] sm:$0xff]  ;;  %v11867_v48 = vld [vmem:[#allocation88_spill] sm:$0xff]  ;;  %v11868_v20 = vld [vmem:[#allocation137_spill] sm:$0xff] }
 0x1d1   : > { %6202 = vmatprep.subr.bf16.mxu0 %v11836_v54  ;;  %2015 = vmatmul.mubr.f32.gmra.mrb[16].mxu1 %v11839_v22  ;;  %v11856_v54 = vld [vmem:[#allocation74_spill] sm:$0xff] }
 0x1d2   : > { %4514 = vmatmul.mubr.f32.gmra.mrb[16].mxu0 %v11839_v22  ;;  %2021 = vmatprep.mubr.f32.mxu1 %v11840_v37 }
 0x1d3   : > { %4520 = vmatprep.mubr.f32.mxu0 %v11840_v37  ;;  %6012 = vmatpush1.bf16.msra.mxu1 %v6011_v53  ;;  %v11855_v53 = vld [vmem:[#allocation70_spill] sm:$0xff] }
 0x1d4   : > { %6204 = vmatpush1.bf16.msra.mxu0 %v11841_v3  ;;  %6014 = vmatprep.subr.bf16.mxu1 %v6013_v63  ;;  %v11859_v63 = vld [vmem:[#allocation78_spill] sm:$0xff] }
 0x1d5   : > { %6206 = vmatprep.subr.bf16.mxu0 %v11844_v17  ;;  %2023 = vmatmul.mubr.f32.gmra.mrb[18].mxu1 %v11847_v19  ;;  %v11860_v3 = vld [vmem:[#allocation82_spill] sm:$0xff] }
 0x1d6   : > { %4522 = vmatmul.mubr.f32.gmra.mrb[18].mxu0 %v11847_v19  ;;  %2029 = vmatprep.mubr.f32.mxu1 %v11848_v24 }
 0x1d7   : > { %4528 = vmatprep.mubr.f32.mxu0 %v11848_v24  ;;  %6016 = vmatpush1.bf16.msra.mxu1 %v6015_v8  ;;  %v11863_v8 = vld [vmem:[#allocation46_spill] sm:$0xff] }
 0x1d8   : > { %6208 = vmatpush1.bf16.msra.mxu0 %v11849_v45  ;;  %6018 = vmatprep.subr.bf16.mxu1 %v6017_v50  ;;  %v6021_v17 = vpack.c.bf16 %v11863_v8, %v11862_v38  ;;  %v11865_v50 = vld [vmem:[#allocation136_spill] sm:$0xff]  ;;  %v11866_v45 = vld [vmem:[#allocation86_spill] sm:$0xff] }
 0x1d9   : > { %6210 = vmatprep.subr.bf16.mxu0 %v11852_v40  ;;  %2031 = vmatmul.mubr.f32.gmra.mrb[20].mxu1 %v11853_v43  ;;  %v11870_v40 = vld [vmem:[#allocation89_spill] sm:$0xff]  ;;  %v11876_v38 = vld [vmem:[#allocation146_spill] sm:$0xff]  ;;  %v11877_v8 = vld [vmem:[#allocation148_spill] sm:$0xff] }
 0x1da   : > { %4530 = vmatmul.mubr.f32.gmra.mrb[20].mxu0 %v11853_v43  ;;  %2037 = vmatprep.mubr.f32.mxu1 %v11854_v52 }
 0x1db   : > { %4536 = vmatprep.mubr.f32.mxu0 %v11854_v52  ;;  %6020 = vmatpush1.bf16.msra.mxu1 %v6019_v4  ;;  %v11869_v4 = vld [vmem:[#allocation138_spill] sm:$0xff] }
 0x1dc   : > { %6212 = vmatpush1.bf16.msra.mxu0 %v11855_v53  ;;  %6022 = vmatprep.subr.bf16.mxu1 %v6021_v17  ;;  %v11872_v53 = vld [vmem:[#allocation143_spill] sm:$0xff]  ;;  %v11878_v17 = vld [vmem:[#allocation96_spill] sm:$0xff] }
 0x1dd   : > { %6214 = vmatprep.subr.bf16.mxu0 %v11856_v54  ;;  %2039 = vmatmul.mubr.f32.gmra.mrb[22].mxu1 %v11857_v41  ;;  %v11873_v54 = vld [vmem:[#allocation144_spill] sm:$0xff] }
 0x1de   : > { %4538 = vmatmul.mubr.f32.gmra.mrb[22].mxu0 %v11857_v41  ;;  %2045 = vmatprep.mubr.f32.mxu1 %v11858_v60 }
 0x1df   : > { %4544 = vmatprep.mubr.f32.mxu0 %v11858_v60  ;;  %6024 = vmatpush1.bf16.msra.mxu1 %v6023_v6  ;;  %v11880_v6 = vld [vmem:[#allocation51_spill] sm:$0xff] }
 0x1e0   : > { %6216 = vmatpush1.bf16.msra.mxu0 %v11859_v63  ;;  %v11874_v63 = vld [vmem:[#allocation94_spill] sm:$0xff] }
 0x1e1   : > { %6218 = vmatprep.subr.bf16.mxu0 %v11860_v3  ;;  %2047 = vmatmul.mubr.f32.gmra.mrb[24].mxu1 %v11861_v27  ;;  %v11875_v3 = vld [vmem:[#allocation95_spill] sm:$0xff] }
 0x1e2   : > { %4546 = vmatmul.mubr.f32.gmra.mrb[24].mxu0 %v11861_v27  ;;  %2053 = vmatprep.mubr.f32.mxu1 %v11865_v50 }
 0x1e3   : > { %4552 = vmatprep.mubr.f32.mxu0 %v11865_v50 }
 0x1e4   : > { %6220 = vmatpush1.bf16.msra.mxu0 %v11866_v45  ;;  %v11881_v45 = vld [vmem:[#allocation52_spill] sm:$0xff] }
 0x1e5   : > { %6222 = vmatprep.subr.bf16.mxu0 %v11867_v48  ;;  %2055 = vmatmul.mubr.f32.gmra.mrb[26].mxu1 %v11868_v20  ;;  %v6025_v48 = vpack.c.bf16 %v11881_v45, %v11880_v6  ;;  %v11888_v6 = vld [vmem:[#allocation160_spill] sm:$0xff]  ;;  %v11889_v45 = vld [vmem:[#allocation161_spill] sm:$0xff] }
 0x1e6   : > { %4554 = vmatmul.mubr.f32.gmra.mrb[26].mxu0 %v11868_v20  ;;  %2061 = vmatprep.mubr.f32.mxu1 %v11869_v4 }
 0x1e7   : > { %4560 = vmatprep.mubr.f32.mxu0 %v11869_v4  ;;  %6026 = vmatprep.subr.bf16.mxu1 %v6025_v48  ;;  %v11890_v48 = vld [vmem:[#allocation163_spill] sm:$0xff] }
 0x1e8   : > { %6224 = vmatpush1.bf16.msra.mxu0 %v11870_v40  ;;  %v11882_v40 = vld [vmem:[#allocation54_spill] sm:$0xff] }
 0x1e9   : > { %6226 = vmatprep.subr.bf16.mxu0 %v11871_v28  ;;  %2063 = vmatmul.mubr.f32.gmra.mrb[28].mxu1 %v11872_v53  ;;  %v11883_v28 = vld [vmem:[#allocation55_spill] sm:$0xff] }
 0x1ea   : > { %4562 = vmatmul.mubr.f32.gmra.mrb[28].mxu0 %v11872_v53  ;;  %2069 = vmatprep.mubr.f32.mxu1 %v11873_v54 }
 0x1eb   : > { %4568 = vmatprep.mubr.f32.mxu0 %v11873_v54 }
 0x1ec   : > { %6228 = vmatpush1.bf16.msra.mxu0 %v11874_v63  ;;  %v6027_v63 = vpack.c.bf16 %v11883_v28, %v11882_v40  ;;  %v11891_v40 = vld [vmem:[#allocation164_spill] sm:$0xff] }
 0x1ed   : > { %6230 = vmatprep.subr.bf16.mxu0 %v11875_v3  ;;  %2071 = vmatmul.mubr.f32.gmra.mrb[30].mxu1 %v11876_v38  ;;  %v11884_v3 = vld [vmem:[#allocation153_spill] sm:$0xff]  ;;  %v11892_v28 = vld [vmem:[#allocation56_spill] sm:$0xff] }
 0x1ee   : > { %4570 = vmatmul.mubr.f32.gmra.mrb[30].mxu0 %v11876_v38  ;;  %2077 = vmatprep.mubr.f32.mxu1 %v11877_v8 }
 0x1ef   : > { %4576 = vmatprep.mubr.f32.mxu0 %v11877_v8  ;;  %6028 = vmatpush1.bf16.msra.mxu1 %v6027_v63  ;;  %v6029_v63 = vpack.c.bf16 %v11670_v56, %v11892_v28  ;;  %v11898_v56 = vld [vmem:[#allocation173_spill] sm:$0xff]  ;;  %v6033_v28 = vpack.c.bf16 %v11700_v7, %v11698_v31  ;;  %v11909_v7 = vld [vmem:[#allocation192_spill] sm:$0xff] }
 0x1f0   : > { %6232 = vmatpush1.bf16.msra.mxu0 %v11878_v17  ;;  %v11886_v17 = vld [vmem:[#allocation155_spill] sm:$0xff]  ;;  %v11908_v31 = vld [vmem:[#allocation189_spill] sm:$0xff] }
 0x1f1   : > { %2079 = vmatmul.mubr.f32.gmra.mrb[32].mxu1 %v11879_v26  ;;  %6030 = vmatprep.subr.bf16.mxu1 %v6029_v63  ;;  %v11902_v63 = vld [vmem:[#allocation64_spill] sm:$0xff] }
 0x1f2   : > { %4578 = vmatmul.mubr.f32.gmra.mrb[32].mxu0 %v11879_v26  ;;  %2085 = vmatprep.mubr.f32.mxu1 %v11884_v3 }
 0x1f3   : > { %4584 = vmatprep.mubr.f32.mxu0 %v11884_v3  ;;  %6032 = vmatpush1.bf16.msra.mxu1 %v6031_v25  ;;  %v11900_v25 = vld [vmem:[#allocation177_spill] sm:$0xff] }
 0x1f4   : > { %6034 = vmatprep.subr.bf16.mxu1 %v6033_v28  ;;  %v11912_v28 = vld [vmem:[#allocation66_spill] sm:$0xff] }
 0x1f5   : > { %2087 = vmatmul.mubr.f32.gmra.mrb[34].mxu1 %v11885_v58 }
 0x1f6   : > { %4586 = vmatmul.mubr.f32.gmra.mrb[34].mxu0 %v11885_v58  ;;  %2093 = vmatprep.mubr.f32.mxu1 %v11886_v17 }
 0x1f7   : > { %4592 = vmatprep.mubr.f32.mxu0 %v11886_v17 }
 0x1f9   : > { %2095 = vmatmul.mubr.f32.gmra.mrb[36].mxu1 %v11887_v12 }
 0x1fa   : > { %4594 = vmatmul.mubr.f32.gmra.mrb[36].mxu0 %v11887_v12  ;;  %2101 = vmatprep.mubr.f32.mxu1 %v11888_v6 }
 0x1fb   : > { %4600 = vmatprep.mubr.f32.mxu0 %v11888_v6 }
 0x1fd   : > { %2103 = vmatmul.mubr.f32.gmra.mrb[38].mxu1 %v11889_v45 }
 0x1fe   : > { %4602 = vmatmul.mubr.f32.gmra.mrb[38].mxu0 %v11889_v45  ;;  %2109 = vmatprep.mubr.f32.mxu1 %v11890_v48 }
 0x1ff   : > { %4608 = vmatprep.mubr.f32.mxu0 %v11890_v48  ;;  %v11896_v48 = vld [vmem:[#allocation171_spill] sm:$0xff] }
 0x201   : > { %2111 = vmatmul.mubr.f32.gmra.mrb[40].mxu1 %v11891_v40 }
 0x202   : > { %4610 = vmatmul.mubr.f32.gmra.mrb[40].mxu0 %v11891_v40  ;;  %2117 = vmatprep.mubr.f32.mxu1 %v11894_v47  ;;  %v11897_v40 = vld [vmem:[#allocation172_spill] sm:$0xff] }
 0x203   : > { %4616 = vmatprep.mubr.f32.mxu0 %v11894_v47 }
 0x205   : > { %2119 = vmatmul.mubr.f32.gmra.mrb[42].mxu1 %v11895_v18 }
 0x206   : > { %4618 = vmatmul.mubr.f32.gmra.mrb[42].mxu0 %v11895_v18  ;;  %2125 = vmatprep.mubr.f32.mxu1 %v11896_v48  ;;  %v11904_v18 = vld [vmem:[#allocation183_spill] sm:$0xff] }
 0x207   : > { %4624 = vmatprep.mubr.f32.mxu0 %v11896_v48 }
 0x209   : > { %2127 = vmatmul.mubr.f32.gmra.mrb[44].mxu1 %v11897_v40 }
 0x20a   : > { %4626 = vmatmul.mubr.f32.gmra.mrb[44].mxu0 %v11897_v40  ;;  %2133 = vmatprep.mubr.f32.mxu1 %v11898_v56  ;;  %v11903_v40 = vld [vmem:[#allocation65_spill] sm:$0xff] }
 0x20b   : > { %4632 = vmatprep.mubr.f32.mxu0 %v11898_v56  ;;  %v6035_v48 = vpack.c.bf16 %v11903_v40, %v11902_v63  ;;  %v11911_v40 = vld [vmem:[#allocation197_spill] sm:$0xff]  ;;  %v11913_v63 = vld [vmem:[#allocation67_spill] sm:$0xff] }
 0x20d   : > { %2135 = vmatmul.mubr.f32.gmra.mrb[46].mxu1 %v11899_v61 }
 0x20e   : > { %4634 = vmatmul.mubr.f32.gmra.mrb[46].mxu0 %v11899_v61  ;;  %2141 = vmatprep.mubr.f32.mxu1 %v11900_v25  ;;  %v11905_v61 = vld [vmem:[#allocation186_spill] sm:$0xff] }
 0x20f   : > { %4640 = vmatprep.mubr.f32.mxu0 %v11900_v25  ;;  %6036 = vmatpush1.bf16.msra.mxu1 %v6035_v48  ;;  %v11906_v25 = vld [vmem:[#allocation187_spill] sm:$0xff] }
 0x210   : > { %v11910_v48 = vld [vmem:[#allocation195_spill] sm:$0xff] }
 0x211   : > { %2143 = vmatmul.mubr.f32.gmra.mrb[48].mxu1 %v11901_v32 }
 0x212   : > { %4642 = vmatmul.mubr.f32.gmra.mrb[48].mxu0 %v11901_v32  ;;  %2149 = vmatprep.mubr.f32.mxu1 %v11904_v18  ;;  %v11907_v32 = vld [vmem:[#allocation188_spill] sm:$0xff] }
 0x213   : > { %4648 = vmatprep.mubr.f32.mxu0 %v11904_v18  ;;  %v11915_v18 = vld [vmem:[#allocation200_spill] sm:$0xff] }
 0x215   : > { %2151 = vmatmul.mubr.f32.gmra.mrb[50].mxu1 %v11905_v61 }
 0x216   : > { %4650 = vmatmul.mubr.f32.gmra.mrb[50].mxu0 %v11905_v61  ;;  %2157 = vmatprep.mubr.f32.mxu1 %v11906_v25 }
 0x217   : > { %4656 = vmatprep.mubr.f32.mxu0 %v11906_v25  ;;  %v6037_v25 = vpack.c.bf16 %v11913_v63, %v11912_v28  ;;  %v11919_v28 = vld [vmem:[#allocation204_spill] sm:$0xff]  ;;  %v11924_v63 = vld [vmem:[#allocation217_spill] sm:$0xff] }
 0x219   : > { %2159 = vmatmul.mubr.f32.gmra.mrb[52].mxu1 %v11907_v32  ;;  %6038 = vmatprep.subr.bf16.mxu1 %v6037_v25  ;;  %v11922_v25 = vld [vmem:[#allocation213_spill] sm:$0xff] }
 0x21a   : > { %4658 = vmatmul.mubr.f32.gmra.mrb[52].mxu0 %v11907_v32  ;;  %2165 = vmatprep.mubr.f32.mxu1 %v11908_v31  ;;  %v11914_v32 = vld [vmem:[#allocation69_spill] sm:$0xff] }
 0x21b   : > { %4664 = vmatprep.mubr.f32.mxu0 %v11908_v31  ;;  %v6039_v61 = vpack.c.bf16 %v11732_v9, %v11914_v32  ;;  %v11920_v9 = vld [vmem:[#allocation210_spill] sm:$0xff]  ;;  %v11923_v32 = vld [vmem:[#allocation216_spill] sm:$0xff] }
 0x21d   : > { %2167 = vmatmul.mubr.f32.gmra.mrb[54].mxu1 %v11909_v7 }
 0x21e   : > { %4666 = vmatmul.mubr.f32.gmra.mrb[54].mxu0 %v11909_v7  ;;  %2173 = vmatprep.mubr.f32.mxu1 %v11910_v48  ;;  %v11916_v7 = vld [vmem:[#allocation201_spill] sm:$0xff] }
 0x21f   : > { %4672 = vmatprep.mubr.f32.mxu0 %v11910_v48  ;;  %6040 = vmatpush1.bf16.msra.mxu1 %v6039_v61  ;;  %v11917_v48 = vld [vmem:[#allocation202_spill] sm:$0xff]  ;;  %v11921_v61 = vld [vmem:[#allocation211_spill] sm:$0xff] }
 0x221   : > { %2175 = vmatmul.mubr.f32.gmra.mrb[56].mxu1 %v11911_v40 }
 0x222   : > { %4674 = vmatmul.mubr.f32.gmra.mrb[56].mxu0 %v11911_v40  ;;  %2181 = vmatprep.mubr.f32.mxu1 %v11915_v18  ;;  %v11918_v40 = vld [vmem:[#allocation203_spill] sm:$0xff] }
 0x223   : > { %4680 = vmatprep.mubr.f32.mxu0 %v11915_v18 }
 0x225   : > { %2183 = vmatmul.mubr.f32.gmra.mrb[58].mxu1 %v11916_v7 }
 0x226   : > { %4682 = vmatmul.mubr.f32.gmra.mrb[58].mxu0 %v11916_v7  ;;  %2189 = vmatprep.mubr.f32.mxu1 %v11917_v48 }
 0x227   : > { %4688 = vmatprep.mubr.f32.mxu0 %v11917_v48 }
 0x229   : > { %2191 = vmatmul.mubr.f32.gmra.mrb[60].mxu1 %v11918_v40 }
 0x22a   : > { %4690 = vmatmul.mubr.f32.gmra.mrb[60].mxu0 %v11918_v40  ;;  %2197 = vmatprep.mubr.f32.mxu1 %v11919_v28 }
 0x22b   : > { %4696 = vmatprep.mubr.f32.mxu0 %v11919_v28  ;;  %v11925_v28 = vld [vmem:[#allocation218_spill] sm:$0xff] }
 0x22d   : > { %2199 = vmatmul.mubr.f32.gmra.mrb[62].mxu1 %v11920_v9 }
 0x22e   : > { %4698 = vmatmul.mubr.f32.gmra.mrb[62].mxu0 %v11920_v9  ;;  %2205 = vmatprep.mubr.f32.mxu1 %v11921_v61  ;;  %v11926_v9 = vld [vmem:[#allocation221_spill] sm:$0xff] }
 0x22f   : > { %4704 = vmatprep.mubr.f32.mxu0 %v11921_v61  ;;  %v11927_v61 = vld [vmem:[#allocation223_spill] sm:$0xff] }
 0x231   : > { %2207 = vmatmul.mubr.f32.gmra.mrb[64].mxu1 %v11922_v25 }
 0x232   : > { %4706 = vmatmul.mubr.f32.gmra.mrb[64].mxu0 %v11922_v25  ;;  %2213 = vmatprep.mubr.f32.mxu1 %v11923_v32  ;;  %v11928_v25 = vld [vmem:[#allocation224_spill] sm:$0xff] }
 0x233   : > { %4712 = vmatprep.mubr.f32.mxu0 %v11923_v32  ;;  %v11929_v32 = vld [vmem:[#allocation225_spill] sm:$0xff] }
 0x235   : > { %2215 = vmatmul.mubr.f32.gmra.mrb[66].mxu1 %v11924_v63 }
 0x236   : > { %4714 = vmatmul.mubr.f32.gmra.mrb[66].mxu0 %v11924_v63  ;;  %2221 = vmatprep.mubr.f32.mxu1 %v11925_v28  ;;  %v11930_v63 = vld [vmem:[#allocation230_spill] sm:$0xff] }
 0x237   : > { %4720 = vmatprep.mubr.f32.mxu0 %v11925_v28  ;;  %v11931_v28 = vld [vmem:[#allocation232_spill] sm:$0xff] }
 0x239   : > { %2223 = vmatmul.mubr.f32.gmra.mrb[68].mxu1 %v11926_v9 }
 0x23a   : > { %4722 = vmatmul.mubr.f32.gmra.mrb[68].mxu0 %v11926_v9  ;;  %2229 = vmatprep.mubr.f32.mxu1 %v11927_v61  ;;  %v11932_v9 = vld [vmem:[#allocation233_spill] sm:$0xff] }
 0x23b   : > { %4728 = vmatprep.mubr.f32.mxu0 %v11927_v61  ;;  %v11933_v61 = vld [vmem:[#allocation234_spill] sm:$0xff] }
 0x23d   : > { %2231 = vmatmul.mubr.f32.gmra.mrb[70].mxu1 %v11928_v25 }
 0x23e   : > { %4730 = vmatmul.mubr.f32.gmra.mrb[70].mxu0 %v11928_v25  ;;  %2237 = vmatprep.mubr.f32.mxu1 %v11929_v32  ;;  %v11934_v25 = vld [vmem:[#allocation47_spill] sm:$0xff] }
 0x23f   : > { %4736 = vmatprep.mubr.f32.mxu0 %v11929_v32  ;;  %v11935_v32 = vld [vmem:[#allocation238_spill] sm:$0xff] }
 0x241   : > { %2239 = vmatmul.mubr.f32.gmra.mrb[72].mxu1 %v11930_v63 }
 0x242   : > { %4738 = vmatmul.mubr.f32.gmra.mrb[72].mxu0 %v11930_v63  ;;  %2245 = vmatprep.mubr.f32.mxu1 %v11931_v28  ;;  %v11936_v63 = vld [vmem:[#allocation240_spill] sm:$0xff] }
 0x243   : > { %4744 = vmatprep.mubr.f32.mxu0 %v11931_v28  ;;  %v11937_v28 = vld [vmem:[#allocation242_spill] sm:$0xff] }
 0x245   : > { %2247 = vmatmul.mubr.f32.gmra.mrb[74].mxu1 %v11932_v9 }
 0x246   : > { %4746 = vmatmul.mubr.f32.gmra.mrb[74].mxu0 %v11932_v9  ;;  %2253 = vmatprep.mubr.f32.mxu1 %v11933_v61  ;;  %v11938_v9 = vld [vmem:[#allocation244_spill] sm:$0xff] }
 0x247   : > { %4752 = vmatprep.mubr.f32.mxu0 %v11933_v61  ;;  %v11939_v61 = vld [vmem:[#allocation246_spill] sm:$0xff] }
 0x249   : > { %2255 = vmatmul.mubr.f32.gmra.mrb[76].mxu1 %v11934_v25 }
 0x24a   : > { %4754 = vmatmul.mubr.f32.gmra.mrb[76].mxu0 %v11934_v25  ;;  %2261 = vmatprep.mubr.f32.mxu1 %v11935_v32  ;;  %v11940_v25 = vld [vmem:[#allocation248_spill] sm:$0xff] }
 0x24b   : > { %4760 = vmatprep.mubr.f32.mxu0 %v11935_v32  ;;  %v11941_v32 = vld [vmem:[#allocation249_spill] sm:$0xff] }
 0x24d   : > { %2263 = vmatmul.mubr.f32.gmra.mrb[78].mxu1 %v11936_v63 }
 0x24e   : > { %4762 = vmatmul.mubr.f32.gmra.mrb[78].mxu0 %v11936_v63  ;;  %2269 = vmatprep.mubr.f32.mxu1 %v11937_v28  ;;  %v11942_v63 = vld [vmem:[#allocation251_spill] sm:$0xff] }
 0x24f   : > { %4768 = vmatprep.mubr.f32.mxu0 %v11937_v28  ;;  %v11943_v28 = vld [vmem:[#allocation254_spill] sm:$0xff] }
 0x251   : > { %2271 = vmatmul.mubr.f32.gmra.mrb[80].mxu1 %v11938_v9 }
 0x252   : > { %4770 = vmatmul.mubr.f32.gmra.mrb[80].mxu0 %v11938_v9  ;;  %2277 = vmatprep.mubr.f32.mxu1 %v11939_v61  ;;  %v11944_v9 = vld [vmem:[#allocation255_spill] sm:$0xff] }
 0x253   : > { %4776 = vmatprep.mubr.f32.mxu0 %v11939_v61  ;;  %v11945_v61 = vld [vmem:[#allocation257_spill] sm:$0xff] }
 0x255   : > { %2279 = vmatmul.mubr.f32.gmra.mrb[82].mxu1 %v11940_v25 }
 0x256   : > { %4778 = vmatmul.mubr.f32.gmra.mrb[82].mxu0 %v11940_v25  ;;  %2285 = vmatprep.mubr.f32.mxu1 %v11941_v32  ;;  %v11946_v25 = vld [vmem:[#allocation260_spill] sm:$0xff] }
 0x257   : > { %4784 = vmatprep.mubr.f32.mxu0 %v11941_v32  ;;  %v11947_v32 = vld [vmem:[#allocation262_spill] sm:$0xff] }
 0x259   : > { %2287 = vmatmul.mubr.f32.gmra.mrb[84].mxu1 %v11942_v63 }
 0x25a   : > { %4786 = vmatmul.mubr.f32.gmra.mrb[84].mxu0 %v11942_v63  ;;  %2293 = vmatprep.mubr.f32.mxu1 %v11943_v28  ;;  %v11948_v63 = vld [vmem:[#allocation264_spill] sm:$0xff] }
 0x25b   : > { %4792 = vmatprep.mubr.f32.mxu0 %v11943_v28  ;;  %v11949_v28 = vld [vmem:[#allocation59_spill] sm:$0xff] }
 0x25d   : > { %2295 = vmatmul.mubr.f32.gmra.mrb[86].mxu1 %v11944_v9 }
 0x25e   : > { %4794 = vmatmul.mubr.f32.gmra.mrb[86].mxu0 %v11944_v9  ;;  %2301 = vmatprep.mubr.f32.mxu1 %v11945_v61  ;;  %v11950_v9 = vld [vmem:[#allocation265_spill] sm:$0xff] }
 0x25f   : > { %4800 = vmatprep.mubr.f32.mxu0 %v11945_v61  ;;  %v11951_v61 = vld [vmem:[#allocation266_spill] sm:$0xff] }
 0x261   : > { %2303 = vmatmul.mubr.f32.gmra.mrb[88].mxu1 %v11946_v25 }
 0x262   : > { %4802 = vmatmul.mubr.f32.gmra.mrb[88].mxu0 %v11946_v25  ;;  %2309 = vmatprep.mubr.f32.mxu1 %v11947_v32  ;;  %v11952_v25 = vld [vmem:[#allocation269_spill] sm:$0xff] }
 0x263   : > { %4808 = vmatprep.mubr.f32.mxu0 %v11947_v32  ;;  %v11953_v32 = vld [vmem:[#allocation272_spill] sm:$0xff] }
 0x265   : > { %2311 = vmatmul.mubr.f32.gmra.mrb[90].mxu1 %v11948_v63 }
 0x266   : > { %4810 = vmatmul.mubr.f32.gmra.mrb[90].mxu0 %v11948_v63  ;;  %2317 = vmatprep.mubr.f32.mxu1 %v11949_v28  ;;  %v11954_v63 = vld [vmem:[#allocation273_spill] sm:$0xff] }
 0x267   : > { %4816 = vmatprep.mubr.f32.mxu0 %v11949_v28  ;;  %v11955_v28 = vld [vmem:[#allocation275_spill] sm:$0xff] }
 0x269   : > { %2319 = vmatmul.mubr.f32.gmra.mrb[92].mxu1 %v11950_v9 }
 0x26a   : > { %4818 = vmatmul.mubr.f32.gmra.mrb[92].mxu0 %v11950_v9  ;;  %2325 = vmatprep.mubr.f32.mxu1 %v11951_v61  ;;  %v11956_v9 = vld [vmem:[#allocation277_spill] sm:$0xff] }
 0x26b   : > { %4824 = vmatprep.mubr.f32.mxu0 %v11951_v61  ;;  %v11957_v61 = vld [vmem:[#allocation278_spill] sm:$0xff] }
 0x26d   : > { %2327 = vmatmul.mubr.f32.gmra.mrb[94].mxu1 %v11952_v25 }
 0x26e   : > { %4826 = vmatmul.mubr.f32.gmra.mrb[94].mxu0 %v11952_v25  ;;  %2333 = vmatprep.mubr.f32.mxu1 %v11953_v32  ;;  %v11958_v25 = vld [vmem:[#allocation279_spill] sm:$0xff] }
 0x26f   : > { %4832 = vmatprep.mubr.f32.mxu0 %v11953_v32  ;;  %v11959_v32 = vld [vmem:[#allocation282_spill] sm:$0xff] }
 0x271   : > { %2335 = vmatmul.mubr.f32.gmra.mrb[96].mxu1 %v11954_v63 }
 0x272   : > { %4834 = vmatmul.mubr.f32.gmra.mrb[96].mxu0 %v11954_v63  ;;  %2341 = vmatprep.mubr.f32.mxu1 %v11955_v28  ;;  %v11960_v63 = vld [vmem:[#allocation284_spill] sm:$0xff] }
 0x273   : > { %4840 = vmatprep.mubr.f32.mxu0 %v11955_v28 }
 0x275   : > { %2343 = vmatmul.mubr.f32.gmra.mrb[98].mxu1 %v11956_v9 }
 0x276   : > { %4842 = vmatmul.mubr.f32.gmra.mrb[98].mxu0 %v11956_v9  ;;  %2349 = vmatprep.mubr.f32.mxu1 %v11957_v61 }
 0x277   : > { %4848 = vmatprep.mubr.f32.mxu0 %v11957_v61 }
 0x279   : > { %2351 = vmatmul.mubr.f32.gmra.mrb[100].mxu1 %v11958_v25 }
 0x27a   : > { %4850 = vmatmul.mubr.f32.gmra.mrb[100].mxu0 %v11958_v25  ;;  %2357 = vmatprep.mubr.f32.mxu1 %v11959_v32 }
 0x27b   : > { %4856 = vmatprep.mubr.f32.mxu0 %v11959_v32 }
 0x27d   : > { %2359 = vmatmul.mubr.f32.gmra.mrb[102].mxu1 %v11960_v63 }
 0x27e   : > { %4858 = vmatmul.mubr.f32.gmra.mrb[102].mxu0 %v11960_v63  ;;  %2365 = vmatprep.mubr.f32.mxu1 %v9426_v1  ;;  %v11961_v63 = vld [vmem:[#allocation73_spill] sm:$0xff] }
 0x27f   : > { %4864 = vmatprep.mubr.f32.mxu0 %v9426_v1  ;;  %v11962_v1 = vld [vmem:[#allocation11_spill] sm:$0xff] }
 0x281   : > { %2367 = vmatmul.mubr.f32.gmra.mrb[104].mxu1 %v9438_v34 }
 0x282   : > { %4866 = vmatmul.mubr.f32.gmra.mrb[104].mxu0 %v9438_v34  ;;  %2373 = vmatprep.mubr.f32.mxu1 %v9453_v21  ;;  %v11963_v34 = vld [vmem:[#allocation296_spill] sm:$0xff] }
 0x283   : > { %4872 = vmatprep.mubr.f32.mxu0 %v9453_v21  ;;  %v11964_v21 = vld [vmem:[#allocation298_spill] sm:$0xff] }
 0x285   : > { %2375 = vmatmul.mubr.f32.gmra.mrb[106].mxu1 %v9466_v30 }
 0x286   : > { %4874 = vmatmul.mubr.f32.gmra.mrb[106].mxu0 %v9466_v30  ;;  %2381 = vmatprep.mubr.f32.mxu1 %v9476_v16  ;;  %v11965_v30 = vld [vmem:[#allocation300_spill] sm:$0xff] }
 0x287   : > { %4880 = vmatprep.mubr.f32.mxu0 %v9476_v16  ;;  %v11966_v16 = vld [vmem:[#allocation302_spill] sm:$0xff] }
 0x289   : > { %2383 = vmatmul.mubr.f32.gmra.mrb[108].mxu1 %v11961_v63 }
 0x28a   : > { %4882 = vmatmul.mubr.f32.gmra.mrb[108].mxu0 %v11961_v63  ;;  %2389 = vmatprep.mubr.f32.mxu1 %v11962_v1  ;;  %v11967_v63 = vld [vmem:[#allocation304_spill] sm:$0xff] }
 0x28b   : > { %4888 = vmatprep.mubr.f32.mxu0 %v11962_v1  ;;  %v11968_v1 = vld [vmem:[#allocation306_spill] sm:$0xff] }
 0x28d   : > { %2391 = vmatmul.mubr.f32.gmra.mrb[110].mxu1 %v11963_v34 }
 0x28e   : > { %4890 = vmatmul.mubr.f32.gmra.mrb[110].mxu0 %v11963_v34  ;;  %2397 = vmatprep.mubr.f32.mxu1 %v11964_v21  ;;  %v11969_v34 = vld [vmem:[#allocation308_spill] sm:$0xff] }
 0x28f   : > { %4896 = vmatprep.mubr.f32.mxu0 %v11964_v21  ;;  %v11970_v21 = vld [vmem:[#allocation310_spill] sm:$0xff] }
 0x291   : > { %2399 = vmatmul.mubr.f32.gmra.mrb[112].mxu1 %v11965_v30 }
 0x292   : > { %4898 = vmatmul.mubr.f32.gmra.mrb[112].mxu0 %v11965_v30  ;;  %2405 = vmatprep.mubr.f32.mxu1 %v11966_v16  ;;  %v11971_v30 = vld [vmem:[#allocation311_spill] sm:$0xff] }
 0x293   : > { %4904 = vmatprep.mubr.f32.mxu0 %v11966_v16  ;;  %v11972_v16 = vld [vmem:[#allocation312_spill] sm:$0xff] }
 0x295   : > { %2407 = vmatmul.mubr.f32.gmra.mrb[114].mxu1 %v11967_v63 }
 0x296   : > { %4906 = vmatmul.mubr.f32.gmra.mrb[114].mxu0 %v11967_v63  ;;  %2413 = vmatprep.mubr.f32.mxu1 %v11968_v1 }
 0x297   : > { %4912 = vmatprep.mubr.f32.mxu0 %v11968_v1  ;;  %v11973_v1 = vld [vmem:[#allocation317_spill] sm:$0xff] }
 0x299   : > { %2415 = vmatmul.mubr.f32.gmra.mrb[116].mxu1 %v11969_v34 }
 0x29a   : > { %4914 = vmatmul.mubr.f32.gmra.mrb[116].mxu0 %v11969_v34  ;;  %2421 = vmatprep.mubr.f32.mxu1 %v11970_v21 }
 0x29b   : > { %4920 = vmatprep.mubr.f32.mxu0 %v11970_v21 }
 0x29d   : > { %2423 = vmatmul.mubr.f32.gmra.mrb[118].mxu1 %v11971_v30 }
 0x29e   : > { %4922 = vmatmul.mubr.f32.gmra.mrb[118].mxu0 %v11971_v30  ;;  %2429 = vmatprep.mubr.f32.mxu1 %v11972_v16 }
 0x29f   : > { %4928 = vmatprep.mubr.f32.mxu0 %v11972_v16 }
 0x2a1   : > { %2431 = vmatmul.mubr.f32.gmra.mrb[120].mxu1 %v9592_v15 }
 0x2a2   : > { %4930 = vmatmul.mubr.f32.gmra.mrb[120].mxu0 %v9592_v15  ;;  %2437 = vmatprep.mubr.f32.mxu1 %v11973_v1 }
 0x2a3   : > { %4936 = vmatprep.mubr.f32.mxu0 %v11973_v1  ;;  %v11974_v1 = vld [vmem:[#allocation72_spill] sm:$0xff] }
 0x2a5   : > { %2439 = vmatmul.mubr.f32.gmra.mrb[122].mxu1 %v9606_v35 }
 0x2a6   : > { %4938 = vmatmul.mubr.f32.gmra.mrb[122].mxu0 %v9606_v35  ;;  %2445 = vmatprep.mubr.f32.mxu1 %v9612_v39  ;;  %v11975_v35 = vld [vmem:[#allocation87_spill] sm:$0xff] }
 0x2a7   : > { %4944 = vmatprep.mubr.f32.mxu0 %v9612_v39  ;;  %v11976_v39 = vld [vmem:[#allocation92_spill] sm:$0xff] }
 0x2a9   : > { %2447 = vmatmul.mubr.f32.gmra.mrb[124].mxu1 %v9622_v49 }
 0x2aa   : > { %4946 = vmatmul.mubr.f32.gmra.mrb[124].mxu0 %v9622_v49  ;;  %2453 = vmatprep.mubr.f32.mxu1 %v9628_v2  ;;  %v11977_v49 = vld [vmem:[#allocation97_spill] sm:$0xff] }
 0x2ab   : > { %4952 = vmatprep.mubr.f32.mxu0 %v9628_v2  ;;  %v11978_v2 = vld [vmem:[#allocation99_spill] sm:$0xff] }
 0x2ad   : > { %2455 = vmatmul.mubr.f32.gmra.mrb[126].mxu1 %v9636_v29 }
 0x2ae   : > { %4954 = vmatmul.mubr.f32.gmra.mrb[126].mxu0 %v9636_v29  ;;  %2655 = vmatprep.mubr.f32.mxu1 %v11974_v1  ;;  %v11979_v29 = vld [vmem:[#allocation101_spill] sm:$0xff]  ;;  %v11980_v1 = vld [vmem:[#allocation104_spill] sm:$0xff] }
 0x2af   : > { %5089 = vmatprep.mubr.f32.mxu0 %v11793_v62  ;;  %v11986_v62 = vld [vmem:[#allocation112_spill] sm:$0xff] }
 0x2b1   : > { %2658 = vmatmul.mubr.f32.vlgmr.msra.gmra.mrb[0].mxu1 %v11975_v35  ;;  %v11981_v35 = vld [vmem:[#allocation105_spill] sm:$0xff] }
 0x2b2   : > { %5091 = vmatmul.mubr.f32.vlgmr.msra.gmra.mrb[0].mxu0 %v11797_v36  ;;  %2665 = vmatprep.mubr.f32.mxu1 %v11976_v39  ;;  %v11982_v39 = vld [vmem:[#allocation106_spill] sm:$0xff] }
 0x2b3   : > { %5097 = vmatprep.mubr.f32.mxu0 %v11798_v44  ;;  %v11987_v36 = vld [vmem:[#allocation114_spill] sm:$0xff]  ;;  %v11988_v44 = vld [vmem:[#allocation115_spill] sm:$0xff] }
 0x2b5   : > { %2668 = vmatmul.mubr.f32.gmra.mrb[2].mxu1 %v11977_v49  ;;  %v11983_v49 = vld [vmem:[#allocation107_spill] sm:$0xff] }
 0x2b6   : > { %5099 = vmatmul.mubr.f32.gmra.mrb[2].mxu0 %v11803_v0  ;;  %2675 = vmatprep.mubr.f32.mxu1 %v11978_v2  ;;  %v11984_v2 = vld [vmem:[#allocation110_spill] sm:$0xff]  ;;  %v11989_v0 = vld [vmem:[#allocation116_spill] sm:$0xff] }
 0x2b7   : > { %5105 = vmatprep.mubr.f32.mxu0 %v11804_v55  ;;  %v11993_v55 = vld [vmem:[#allocation125_spill] sm:$0xff] }
 0x2b9   : > { %2678 = vmatmul.mubr.f32.gmra.mrb[4].mxu1 %v11979_v29  ;;  %v11985_v29 = vld [vmem:[#allocation111_spill] sm:$0xff] }
 0x2ba   : > { %5107 = vmatmul.mubr.f32.gmra.mrb[4].mxu0 %v11807_v46  ;;  %2685 = vmatprep.mubr.f32.mxu1 %v11980_v1  ;;  %v11994_v46 = vld [vmem:[#allocation127_spill] sm:$0xff]  ;;  %v12026_v1 = vld [vmem:[#allocation180_spill] sm:$0xff] }
 0x2bb   : > { %5113 = vmatprep.mubr.f32.mxu0 %v11808_v10  ;;  %v11995_v10 = vld [vmem:[#allocation131_spill] sm:$0xff] }
 0x2bd   : > { %2688 = vmatmul.mubr.f32.gmra.mrb[6].mxu1 %v11981_v35  ;;  %v12027_v35 = vld [vmem:[#allocation176_spill] sm:$0xff] }
 0x2be   : > { %5115 = vmatmul.mubr.f32.gmra.mrb[6].mxu0 %v11811_v42  ;;  %2695 = vmatprep.mubr.f32.mxu1 %v11982_v39  ;;  %v11996_v42 = vld [vmem:[#allocation132_spill] sm:$0xff]  ;;  %v12029_v39 = vld [vmem:[#allocation177_spill] sm:$0xff] }
 0x2bf   : > { %5121 = vmatprep.mubr.f32.mxu0 %v11812_v33  ;;  %v11997_v33 = vld [vmem:[#allocation133_spill] sm:$0xff] }
 0x2c1   : > { %2698 = vmatmul.mubr.f32.gmra.mrb[8].mxu1 %v11983_v49  ;;  %v12030_v49 = vld [vmem:[#allocation184_spill] sm:$0xff] }
 0x2c2   : > { %5123 = vmatmul.mubr.f32.gmra.mrb[8].mxu0 %v11815_v59  ;;  %2705 = vmatprep.mubr.f32.mxu1 %v11984_v2  ;;  %v11998_v59 = vld [vmem:[#allocation134_spill] sm:$0xff] }
 0x2c3   : > { %5129 = vmatprep.mubr.f32.mxu0 %v8137_v11  ;;  %v11990_v11 = vld [vmem:[#allocation120_spill] sm:$0xff]  ;;  %v12031_v2 = vld [vmem:[#allocation182_spill] sm:$0xff] }
 0x2c5   : > { %2708 = vmatmul.mubr.f32.gmra.mrb[10].mxu1 %v11985_v29  ;;  %v12032_v29 = vld [vmem:[#allocation185_spill] sm:$0xff] }
 0x2c6   : > { %5131 = vmatmul.mubr.f32.gmra.mrb[10].mxu0 %v8139_v23  ;;  %2715 = vmatprep.mubr.f32.mxu1 %v11986_v62  ;;  %v11991_v23 = vld [vmem:[#allocation121_spill] sm:$0xff]  ;;  %v12033_v62 = vld [vmem:[#allocation183_spill] sm:$0xff] }
 0x2c7   : > { %5137 = vmatprep.mubr.f32.mxu0 %v8141_v57  ;;  %v11992_v57 = vld [vmem:[#allocation122_spill] sm:$0xff] }
 0x2c9   : > { %2718 = vmatmul.mubr.f32.gmra.mrb[12].mxu1 %v11987_v36  ;;  %v12034_v36 = vld [vmem:[#allocation190_spill] sm:$0xff] }
 0x2ca   : > { %5139 = vmatmul.mubr.f32.gmra.mrb[12].mxu0 %v11823_v51  ;;  %2725 = vmatprep.mubr.f32.mxu1 %v11988_v44  ;;  %v11999_v51 = vld [vmem:[#allocation139_spill] sm:$0xff]  ;;  %v12035_v44 = vld [vmem:[#allocation186_spill] sm:$0xff] }
 0x2cb   : > { %5145 = vmatprep.mubr.f32.mxu0 %v11824_v5  ;;  %v12000_v5 = vld [vmem:[#allocation140_spill] sm:$0xff] }
 0x2cd   : > { %2728 = vmatmul.mubr.f32.gmra.mrb[14].mxu1 %v11989_v0  ;;  %v12037_v0 = vld [vmem:[#allocation187_spill] sm:$0xff] }
 0x2ce   : > { %5147 = vmatmul.mubr.f32.gmra.mrb[14].mxu0 %v11831_v13  ;;  %2735 = vmatprep.mubr.f32.mxu1 %v11990_v11  ;;  %v12001_v13 = vld [vmem:[#allocation141_spill] sm:$0xff] }
 0x2cf   : > { %5153 = vmatprep.mubr.f32.mxu0 %v11832_v14  ;;  %v12002_v14 = vld [vmem:[#allocation142_spill] sm:$0xff]  ;;  %v12038_v11 = vld [vmem:[#allocation193_spill] sm:$0xff] }
 0x2d1   : > { %2738 = vmatmul.mubr.f32.gmra.mrb[16].mxu1 %v11991_v23  ;;  %v12039_v23 = vld [vmem:[#allocation188_spill] sm:$0xff] }
 0x2d2   : > { %5155 = vmatmul.mubr.f32.gmra.mrb[16].mxu0 %v11839_v22  ;;  %2745 = vmatprep.mubr.f32.mxu1 %v11992_v57  ;;  %v12003_v22 = vld [vmem:[#allocation145_spill] sm:$0xff]  ;;  %v12040_v57 = vld [vmem:[#allocation194_spill] sm:$0xff] }
 0x2d3   : > { %5161 = vmatprep.mubr.f32.mxu0 %v11840_v37  ;;  %v12004_v37 = vld [vmem:[#allocation147_spill] sm:$0xff] }
 0x2d5   : > { %2748 = vmatmul.mubr.f32.gmra.mrb[18].mxu1 %v11993_v55  ;;  %v12041_v55 = vld [vmem:[#allocation196_spill] sm:$0xff] }
 0x2d6   : > { %5163 = vmatmul.mubr.f32.gmra.mrb[18].mxu0 %v11847_v19  ;;  %2755 = vmatprep.mubr.f32.mxu1 %v11994_v46  ;;  %v12005_v19 = vld [vmem:[#allocation149_spill] sm:$0xff]  ;;  %v12042_v46 = vld [vmem:[#allocation192_spill] sm:$0xff] }
 0x2d7   : > { %5169 = vmatprep.mubr.f32.mxu0 %v11848_v24  ;;  %v12006_v24 = vld [vmem:[#allocation151_spill] sm:$0xff] }
 0x2d9   : > { %2758 = vmatmul.mubr.f32.gmra.mrb[20].mxu1 %v11995_v10  ;;  %v12043_v10 = vld [vmem:[#allocation198_spill] sm:$0xff] }
 0x2da   : > { %5171 = vmatmul.mubr.f32.gmra.mrb[20].mxu0 %v11853_v43  ;;  %2765 = vmatprep.mubr.f32.mxu1 %v11996_v42  ;;  %v12007_v43 = vld [vmem:[#allocation152_spill] sm:$0xff]  ;;  %v12044_v42 = vld [vmem:[#allocation195_spill] sm:$0xff] }
 0x2db   : > { %5177 = vmatprep.mubr.f32.mxu0 %v11854_v52  ;;  %v12008_v52 = vld [vmem:[#allocation156_spill] sm:$0xff] }
 0x2dd   : > { %2768 = vmatmul.mubr.f32.gmra.mrb[22].mxu1 %v11997_v33  ;;  %v12045_v33 = vld [vmem:[#allocation199_spill] sm:$0xff] }
 0x2de   : > { %5179 = vmatmul.mubr.f32.gmra.mrb[22].mxu0 %v11857_v41  ;;  %2775 = vmatprep.mubr.f32.mxu1 %v11998_v59  ;;  %v12009_v41 = vld [vmem:[#allocation157_spill] sm:$0xff] }
 0x2df   : > { %5185 = vmatprep.mubr.f32.mxu0 %v11858_v60  ;;  %v12010_v60 = vld [vmem:[#allocation159_spill] sm:$0xff]  ;;  %v12046_v59 = vld [vmem:[#allocation197_spill] sm:$0xff] }
 0x2e1   : > { %2778 = vmatmul.mubr.f32.gmra.mrb[24].mxu1 %v11999_v51  ;;  %v12047_v51 = vld [vmem:[#allocation205_spill] sm:$0xff] }
 0x2e2   : > { %5187 = vmatmul.mubr.f32.gmra.mrb[24].mxu0 %v11861_v27  ;;  %2785 = vmatprep.mubr.f32.mxu1 %v12000_v5  ;;  %v12011_v27 = vld [vmem:[#allocation162_spill] sm:$0xff] }
 0x2e3   : > { %5193 = vmatprep.mubr.f32.mxu0 %v11865_v50  ;;  %v12012_v50 = vld [vmem:[#allocation165_spill] sm:$0xff]  ;;  %v12048_v5 = vld [vmem:[#allocation206_spill] sm:$0xff] }
 0x2e5   : > { %2788 = vmatmul.mubr.f32.gmra.mrb[26].mxu1 %v12001_v13  ;;  %v12050_v13 = vld [vmem:[#allocation208_spill] sm:$0xff] }
 0x2e6   : > { %5195 = vmatmul.mubr.f32.gmra.mrb[26].mxu0 %v11868_v20  ;;  %2795 = vmatprep.mubr.f32.mxu1 %v12002_v14  ;;  %v12013_v20 = vld [vmem:[#allocation166_spill] sm:$0xff]  ;;  %v12051_v14 = vld [vmem:[#allocation209_spill] sm:$0xff] }
 0x2e7   : > { %5201 = vmatprep.mubr.f32.mxu0 %v11869_v4  ;;  %v12014_v4 = vld [vmem:[#allocation167_spill] sm:$0xff] }
 0x2e9   : > { %2798 = vmatmul.mubr.f32.gmra.mrb[28].mxu1 %v12003_v22  ;;  %v12052_v22 = vld [vmem:[#allocation204_spill] sm:$0xff] }
 0x2ea   : > { %5203 = vmatmul.mubr.f32.gmra.mrb[28].mxu0 %v11872_v53  ;;  %2805 = vmatprep.mubr.f32.mxu1 %v12004_v37  ;;  %v12015_v53 = vld [vmem:[#allocation163_spill] sm:$0xff]  ;;  %v12053_v37 = vld [vmem:[#allocation212_spill] sm:$0xff] }
 0x2eb   : > { %5209 = vmatprep.mubr.f32.mxu0 %v11873_v54  ;;  %v12017_v54 = vld [vmem:[#allocation164_spill] sm:$0xff] }
 0x2ed   : > { %2808 = vmatmul.mubr.f32.gmra.mrb[30].mxu1 %v12005_v19  ;;  %v12054_v19 = vld [vmem:[#allocation210_spill] sm:$0xff] }
 0x2ee   : > { %5211 = vmatmul.mubr.f32.gmra.mrb[30].mxu0 %v11876_v38  ;;  %2815 = vmatprep.mubr.f32.mxu1 %v12006_v24  ;;  %v12018_v38 = vld [vmem:[#allocation21_spill] sm:$0xff]  ;;  %v12056_v24 = vld [vmem:[#allocation211_spill] sm:$0xff] }
 0x2ef   : > { %5217 = vmatprep.mubr.f32.mxu0 %v11877_v8  ;;  %v12020_v8 = vld [vmem:[#allocation170_spill] sm:$0xff] }
 0x2f1   : > { %2818 = vmatmul.mubr.f32.gmra.mrb[32].mxu1 %v12007_v43  ;;  %v12058_v43 = vld [vmem:[#allocation213_spill] sm:$0xff] }
 0x2f2   : > { %5219 = vmatmul.mubr.f32.gmra.mrb[32].mxu0 %v11879_v26  ;;  %2825 = vmatprep.mubr.f32.mxu1 %v12008_v52  ;;  %v12021_v26 = vld [vmem:[#allocation175_spill] sm:$0xff]  ;;  %v12060_v52 = vld [vmem:[#allocation216_spill] sm:$0xff] }
 0x2f3   : > { %5225 = vmatprep.mubr.f32.mxu0 %v11884_v3  ;;  %v12022_v3 = vld [vmem:[#allocation171_spill] sm:$0xff] }
 0x2f5   : > { %2828 = vmatmul.mubr.f32.gmra.mrb[34].mxu1 %v12009_v41  ;;  %v12062_v41 = vld [vmem:[#allocation217_spill] sm:$0xff] }
 0x2f6   : > { %5227 = vmatmul.mubr.f32.gmra.mrb[34].mxu0 %v11885_v58  ;;  %2835 = vmatprep.mubr.f32.mxu1 %v12010_v60  ;;  %v12016_v58 = vld [vmem:[#allocation168_spill] sm:$0xff]  ;;  %v12063_v60 = vld [vmem:[#allocation222_spill] sm:$0xff] }
 0x2f7   : > { %5233 = vmatprep.mubr.f32.mxu0 %v11886_v17  ;;  %v12023_v17 = vld [vmem:[#allocation178_spill] sm:$0xff] }
 0x2f9   : > { %2838 = vmatmul.mubr.f32.gmra.mrb[36].mxu1 %v12011_v27  ;;  %v12064_v27 = vld [vmem:[#allocation218_spill] sm:$0xff] }
 0x2fa   : > { %5235 = vmatmul.mubr.f32.gmra.mrb[36].mxu0 %v11887_v12  ;;  %2845 = vmatprep.mubr.f32.mxu1 %v12012_v50  ;;  %v12019_v12 = vld [vmem:[#allocation174_spill] sm:$0xff] }
 0x2fb   : > { %5241 = vmatprep.mubr.f32.mxu0 %v11888_v6  ;;  %v12024_v6 = vld [vmem:[#allocation172_spill] sm:$0xff]  ;;  %v12065_v50 = vld [vmem:[#allocation226_spill] sm:$0xff] }
 0x2fd   : > { %2848 = vmatmul.mubr.f32.gmra.mrb[38].mxu1 %v12013_v20  ;;  %v12066_v20 = vld [vmem:[#allocation221_spill] sm:$0xff] }
 0x2fe   : > { %5243 = vmatmul.mubr.f32.gmra.mrb[38].mxu0 %v11889_v45  ;;  %2855 = vmatprep.mubr.f32.mxu1 %v12014_v4  ;;  %v12025_v45 = vld [vmem:[#allocation179_spill] sm:$0xff] }
 0x2ff   : > { %5249 = vmatprep.mubr.f32.mxu0 %v12015_v53  ;;  %v12067_v4 = vld [vmem:[#allocation227_spill] sm:$0xff] }
 0x300   : > { %v12068_v53 = vld [vmem:[#allocation223_spill] sm:$0xff] }
 0x301   : > { %2858 = vmatmul.mubr.f32.gmra.mrb[40].mxu1 %v12016_v58  ;;  %v12069_v58 = vld [vmem:[#allocation228_spill] sm:$0xff] }
 0x302   : > { %5251 = vmatmul.mubr.f32.gmra.mrb[40].mxu0 %v12017_v54  ;;  %2865 = vmatprep.mubr.f32.mxu1 %v12018_v38  ;;  %v12070_v54 = vld [vmem:[#allocation224_spill] sm:$0xff]  ;;  %v12071_v38 = vld [vmem:[#allocation229_spill] sm:$0xff] }
 0x303   : > { %5257 = vmatprep.mubr.f32.mxu0 %v11894_v47  ;;  %v12028_v47 = vld [vmem:[#allocation181_spill] sm:$0xff] }
 0x305   : > { %2868 = vmatmul.mubr.f32.gmra.mrb[42].mxu1 %v12019_v12  ;;  %v12072_v12 = vld [vmem:[#allocation225_spill] sm:$0xff] }
 0x306   : > { %5259 = vmatmul.mubr.f32.gmra.mrb[42].mxu0 %v12020_v8  ;;  %2875 = vmatprep.mubr.f32.mxu1 %v12021_v26  ;;  %v12073_v8 = vld [vmem:[#allocation231_spill] sm:$0xff]  ;;  %v12074_v26 = vld [vmem:[#allocation230_spill] sm:$0xff] }
 0x307   : > { %5265 = vmatprep.mubr.f32.mxu0 %v12022_v3  ;;  %v12075_v3 = vld [vmem:[#allocation235_spill] sm:$0xff] }
 0x309   : > { %2878 = vmatmul.mubr.f32.gmra.mrb[44].mxu1 %v12023_v17  ;;  %v12076_v17 = vld [vmem:[#allocation232_spill] sm:$0xff] }
 0x30a   : > { %5267 = vmatmul.mubr.f32.gmra.mrb[44].mxu0 %v12024_v6  ;;  %2885 = vmatprep.mubr.f32.mxu1 %v12025_v45  ;;  %v12077_v6 = vld [vmem:[#allocation236_spill] sm:$0xff]  ;;  %v12078_v45 = vld [vmem:[#allocation233_spill] sm:$0xff] }
 0x30b   : > { %5273 = vmatprep.mubr.f32.mxu0 %v11898_v56  ;;  %v12036_v56 = vld [vmem:[#allocation191_spill] sm:$0xff] }
 0x30d   : > { %2888 = vmatmul.mubr.f32.gmra.mrb[46].mxu1 %v12026_v1  ;;  %v12079_v1 = vld [vmem:[#allocation237_spill] sm:$0xff] }
 0x30e   : > { %5275 = vmatmul.mubr.f32.gmra.mrb[46].mxu0 %v12027_v35  ;;  %2895 = vmatprep.mubr.f32.mxu1 %v12028_v47  ;;  %v12080_v35 = vld [vmem:[#allocation234_spill] sm:$0xff]  ;;  %v12081_v47 = vld [vmem:[#allocation239_spill] sm:$0xff] }
 0x30f   : > { %5281 = vmatprep.mubr.f32.mxu0 %v12029_v39  ;;  %v12082_v39 = vld [vmem:[#allocation47_spill] sm:$0xff] }
 0x311   : > { %2898 = vmatmul.mubr.f32.gmra.mrb[48].mxu1 %v12030_v49  ;;  %v12083_v49 = vld [vmem:[#allocation241_spill] sm:$0xff] }
 0x312   : > { %5283 = vmatmul.mubr.f32.gmra.mrb[48].mxu0 %v12031_v2  ;;  %2905 = vmatprep.mubr.f32.mxu1 %v12032_v29  ;;  %v12084_v2 = vld [vmem:[#allocation238_spill] sm:$0xff]  ;;  %v12085_v29 = vld [vmem:[#allocation243_spill] sm:$0xff] }
 0x313   : > { %5289 = vmatprep.mubr.f32.mxu0 %v12033_v62  ;;  %v12086_v62 = vld [vmem:[#allocation240_spill] sm:$0xff] }
 0x315   : > { %2908 = vmatmul.mubr.f32.gmra.mrb[50].mxu1 %v12034_v36  ;;  %v12087_v36 = vld [vmem:[#allocation245_spill] sm:$0xff] }
 0x316   : > { %5291 = vmatmul.mubr.f32.gmra.mrb[50].mxu0 %v12035_v44  ;;  %2915 = vmatprep.mubr.f32.mxu1 %v12036_v56  ;;  %v12088_v44 = vld [vmem:[#allocation242_spill] sm:$0xff]  ;;  %v12089_v56 = vld [vmem:[#allocation247_spill] sm:$0xff] }
 0x317   : > { %5297 = vmatprep.mubr.f32.mxu0 %v12037_v0  ;;  %v12090_v0 = vld [vmem:[#allocation244_spill] sm:$0xff] }
 0x319   : > { %2918 = vmatmul.mubr.f32.gmra.mrb[52].mxu1 %v12038_v11  ;;  %v12091_v11 = vld [vmem:[#allocation250_spill] sm:$0xff] }
 0x31a   : > { %5299 = vmatmul.mubr.f32.gmra.mrb[52].mxu0 %v12039_v23  ;;  %2925 = vmatprep.mubr.f32.mxu1 %v12040_v57  ;;  %v12092_v23 = vld [vmem:[#allocation246_spill] sm:$0xff]  ;;  %v12093_v57 = vld [vmem:[#allocation252_spill] sm:$0xff] }
 0x31b   : > { %5305 = vmatprep.mubr.f32.mxu0 %v11908_v31  ;;  %v12049_v31 = vld [vmem:[#allocation207_spill] sm:$0xff] }
 0x31d   : > { %2928 = vmatmul.mubr.f32.gmra.mrb[54].mxu1 %v12041_v55  ;;  %v12094_v55 = vld [vmem:[#allocation248_spill] sm:$0xff] }
 0x31e   : > { %5307 = vmatmul.mubr.f32.gmra.mrb[54].mxu0 %v12042_v46  ;;  %2935 = vmatprep.mubr.f32.mxu1 %v12043_v10  ;;  %v12095_v46 = vld [vmem:[#allocation253_spill] sm:$0xff] }
 0x31f   : > { %5313 = vmatprep.mubr.f32.mxu0 %v12044_v42  ;;  %v12096_v10 = vld [vmem:[#allocation249_spill] sm:$0xff]  ;;  %v12097_v42 = vld [vmem:[#allocation256_spill] sm:$0xff] }
 0x321   : > { %2938 = vmatmul.mubr.f32.gmra.mrb[56].mxu1 %v12045_v33  ;;  %v12098_v33 = vld [vmem:[#allocation251_spill] sm:$0xff] }
 0x322   : > { %5315 = vmatmul.mubr.f32.gmra.mrb[56].mxu0 %v12046_v59  ;;  %2945 = vmatprep.mubr.f32.mxu1 %v12047_v51  ;;  %v12099_v59 = vld [vmem:[#allocation258_spill] sm:$0xff] }
 0x323   : > { %5321 = vmatprep.mubr.f32.mxu0 %v11915_v18  ;;  %v12055_v18 = vld [vmem:[#allocation214_spill] sm:$0xff] }
 0x324   : > { %v12100_v51 = vld [vmem:[#allocation254_spill] sm:$0xff] }
 0x325   : > { %2948 = vmatmul.mubr.f32.gmra.mrb[58].mxu1 %v12048_v5  ;;  %v12101_v5 = vld [vmem:[#allocation259_spill] sm:$0xff] }
 0x326   : > { %5323 = vmatmul.mubr.f32.gmra.mrb[58].mxu0 %v11916_v7  ;;  %2955 = vmatprep.mubr.f32.mxu1 %v12049_v31  ;;  %v12057_v7 = vld [vmem:[#allocation215_spill] sm:$0xff] }
 0x327   : > { %5329 = vmatprep.mubr.f32.mxu0 %v11917_v48  ;;  %v12059_v48 = vld [vmem:[#allocation219_spill] sm:$0xff] }
 0x328   : > { %v12102_v31 = vld [vmem:[#allocation255_spill] sm:$0xff] }
 0x329   : > { %2958 = vmatmul.mubr.f32.gmra.mrb[60].mxu1 %v12050_v13  ;;  %v12103_v13 = vld [vmem:[#allocation261_spill] sm:$0xff] }
 0x32a   : > { %5331 = vmatmul.mubr.f32.gmra.mrb[60].mxu0 %v11918_v40  ;;  %2965 = vmatprep.mubr.f32.mxu1 %v12051_v14  ;;  %v12061_v40 = vld [vmem:[#allocation220_spill] sm:$0xff]  ;;  %v12104_v14 = vld [vmem:[#allocation257_spill] sm:$0xff] }
 0x32b   : > { %5337 = vmatprep.mubr.f32.mxu0 %v12052_v22  ;;  %v12105_v22 = vld [vmem:[#allocation263_spill] sm:$0xff] }
 0x32d   : > { %2968 = vmatmul.mubr.f32.gmra.mrb[62].mxu1 %v12053_v37  ;;  %v12106_v37 = vld [vmem:[#allocation260_spill] sm:$0xff] }
 0x32e   : > { %5339 = vmatmul.mubr.f32.gmra.mrb[62].mxu0 %v12054_v19  ;;  %2975 = vmatprep.mubr.f32.mxu1 %v12055_v18  ;;  %v12107_v19 = vld [vmem:[#allocation57_spill] sm:$0xff]  ;;  %v12108_v18 = vld [vmem:[#allocation262_spill] sm:$0xff] }
 0x32f   : > { %5345 = vmatprep.mubr.f32.mxu0 %v12056_v24  ;;  %v12109_v24 = vld [vmem:[#allocation267_spill] sm:$0xff] }
 0x331   : > { %2978 = vmatmul.mubr.f32.gmra.mrb[64].mxu1 %v12057_v7  ;;  %v12110_v7 = vld [vmem:[#allocation264_spill] sm:$0xff] }
 0x332   : > { %5347 = vmatmul.mubr.f32.gmra.mrb[64].mxu0 %v12058_v43  ;;  %2985 = vmatprep.mubr.f32.mxu1 %v12059_v48  ;;  %v12111_v43 = vld [vmem:[#allocation268_spill] sm:$0xff]  ;;  %v12112_v48 = vld [vmem:[#allocation59_spill] sm:$0xff] }
 0x333   : > { %5353 = vmatprep.mubr.f32.mxu0 %v12060_v52  ;;  %v12113_v52 = vld [vmem:[#allocation270_spill] sm:$0xff] }
 0x335   : > { %2988 = vmatmul.mubr.f32.gmra.mrb[66].mxu1 %v12061_v40  ;;  %v12114_v40 = vld [vmem:[#allocation265_spill] sm:$0xff] }
 0x336   : > { %5355 = vmatmul.mubr.f32.gmra.mrb[66].mxu0 %v12062_v41  ;;  %2995 = vmatprep.mubr.f32.mxu1 %v12063_v60  ;;  %v12115_v41 = vld [vmem:[#allocation271_spill] sm:$0xff]  ;;  %v12116_v60 = vld [vmem:[#allocation266_spill] sm:$0xff] }
 0x337   : > { %5361 = vmatprep.mubr.f32.mxu0 %v12064_v27  ;;  %v12117_v27 = vld [vmem:[#allocation274_spill] sm:$0xff] }
 0x339   : > { %2998 = vmatmul.mubr.f32.gmra.mrb[68].mxu1 %v12065_v50  ;;  %v12118_v50 = vld [vmem:[#allocation269_spill] sm:$0xff] }
 0x33a   : > { %5363 = vmatmul.mubr.f32.gmra.mrb[68].mxu0 %v12066_v20  ;;  %3005 = vmatprep.mubr.f32.mxu1 %v12067_v4  ;;  %v12119_v20 = vld [vmem:[#allocation60_spill] sm:$0xff] }
 0x33b   : > { %5369 = vmatprep.mubr.f32.mxu0 %v12068_v53  ;;  %v12120_v4 = vld [vmem:[#allocation272_spill] sm:$0xff]  ;;  %v12121_v53 = vld [vmem:[#allocation63_spill] sm:$0xff] }
 0x33d   : > { %3008 = vmatmul.mubr.f32.gmra.mrb[70].mxu1 %v12069_v58  ;;  %v12122_v58 = vld [vmem:[#allocation273_spill] sm:$0xff] }
 0x33e   : > { %5371 = vmatmul.mubr.f32.gmra.mrb[70].mxu0 %v12070_v54  ;;  %3015 = vmatprep.mubr.f32.mxu1 %v12071_v38  ;;  %v12123_v54 = vld [vmem:[#allocation276_spill] sm:$0xff] }
 0x33f   : > { %5377 = vmatprep.mubr.f32.mxu0 %v12072_v12  ;;  %v12124_v38 = vld [vmem:[#allocation280_spill] sm:$0xff]  ;;  %v401_v12 = vlaneseq }
 0x341   : > { %3018 = vmatmul.mubr.f32.gmra.mrb[72].mxu1 %v12073_v8  ;;  %v12125_v8 = vld [vmem:[#allocation281_spill] sm:$0xff] }
 0x342   : > { %5379 = vmatmul.mubr.f32.gmra.mrb[72].mxu0 %v12074_v26  ;;  %3025 = vmatprep.mubr.f32.mxu1 %v12075_v3  ;;  %v12126_v26 = vld [vmem:[#allocation283_spill] sm:$0xff]  ;;  %v402_v3 = vshrl.u32 %v401_v12, 7 }
 0x343   : > { %5385 = vmatprep.mubr.f32.mxu0 %v12076_v17  ;;  %v12127_v17 = vld [vmem:[#allocation285_spill] sm:$0xff]  ;;  %v12148_v12 = vld [vmem:[#allocation303_spill] sm:$0xff] }
 0x345   : > { %3028 = vmatmul.mubr.f32.gmra.mrb[74].mxu1 %v12077_v6  ;;  %v12128_v6 = vld [vmem:[#allocation71_spill] sm:$0xff] }
 0x346   : > { %5387 = vmatmul.mubr.f32.gmra.mrb[74].mxu0 %v12078_v45  ;;  %3035 = vmatprep.mubr.f32.mxu1 %v12079_v1  ;;  %v403_v45 = vsub.s32 0, %v402_v3  ;;  %v12131_v1 = vld [vmem:[#allocation286_spill] sm:$0xff] }
 0x347   : > { %5393 = vmatprep.mubr.f32.mxu0 %v12080_v35  ;;  %v407_v35 = vsub.s32 1, %v402_v3 }
 0x349   : > { %3038 = vmatmul.mubr.f32.gmra.mrb[76].mxu1 %v12081_v47  ;;  %v12133_v47 = vld [vmem:[#allocation287_spill] sm:$0xff] }
 0x34a   : > { %5395 = vmatmul.mubr.f32.gmra.mrb[76].mxu0 %v12082_v39  ;;  %3045 = vmatprep.mubr.f32.mxu1 %v12083_v49  ;;  %v12135_v49 = vld [vmem:[#allocation289_spill] sm:$0xff] }
 0x34b   : > { %5401 = vmatprep.mubr.f32.mxu0 %v12084_v2 }
 0x34d   : > { %3048 = vmatmul.mubr.f32.gmra.mrb[78].mxu1 %v12085_v29 }
 0x34e   : > { %5403 = vmatmul.mubr.f32.gmra.mrb[78].mxu0 %v12086_v62  ;;  %3055 = vmatprep.mubr.f32.mxu1 %v12087_v36 }
 0x34f   : > { %5409 = vmatprep.mubr.f32.mxu0 %v12088_v44 }
 0x351   : > { %3058 = vmatmul.mubr.f32.gmra.mrb[80].mxu1 %v12089_v56  ;;  %v12136_v56 = vld [vmem:[#allocation75_spill] sm:$0xff] }
 0x352   : > { %5411 = vmatmul.mubr.f32.gmra.mrb[80].mxu0 %v12090_v0  ;;  %3065 = vmatprep.mubr.f32.mxu1 %v12091_v11  ;;  %v12137_v11 = vld [vmem:[#allocation291_spill] sm:$0xff] }
 0x353   : > { %5417 = vmatprep.mubr.f32.mxu0 %v12092_v23 }
 0x355   : > { %3068 = vmatmul.mubr.f32.gmra.mrb[82].mxu1 %v12093_v57  ;;  %v12138_v57 = vld [vmem:[#allocation294_spill] sm:$0xff] }
 0x356   : > { %5419 = vmatmul.mubr.f32.gmra.mrb[82].mxu0 %v12094_v55  ;;  %3075 = vmatprep.mubr.f32.mxu1 %v12095_v46  ;;  %v12139_v55 = vld [vmem:[#allocation293_spill] sm:$0xff] }
 0x357   : > { %5425 = vmatprep.mubr.f32.mxu0 %v12096_v10 }
 0x359   : > { %3078 = vmatmul.mubr.f32.gmra.mrb[84].mxu1 %v12097_v42 }
 0x35a   : > { %5427 = vmatmul.mubr.f32.gmra.mrb[84].mxu0 %v12098_v33  ;;  %3085 = vmatprep.mubr.f32.mxu1 %v12099_v59 }
 0x35b   : > { %5433 = vmatprep.mubr.f32.mxu0 %v12100_v51 }
 0x35d   : > { %3088 = vmatmul.mubr.f32.gmra.mrb[86].mxu1 %v12101_v5  ;;  %v12140_v5 = vld [vmem:[#allocation295_spill] sm:$0xff] }
 0x35e   : > { %5435 = vmatmul.mubr.f32.gmra.mrb[86].mxu0 %v12102_v31  ;;  %3095 = vmatprep.mubr.f32.mxu1 %v12103_v13  ;;  %v12141_v13 = vld [vmem:[#allocation73_spill] sm:$0xff] }
 0x35f   : > { %5441 = vmatprep.mubr.f32.mxu0 %v12104_v14 }
 0x361   : > { %3098 = vmatmul.mubr.f32.gmra.mrb[88].mxu1 %v12105_v22  ;;  %v12142_v22 = vld [vmem:[#allocation297_spill] sm:$0xff] }
 0x362   : > { %5443 = vmatmul.mubr.f32.gmra.mrb[88].mxu0 %v12106_v37  ;;  %3105 = vmatprep.mubr.f32.mxu1 %v12107_v19  ;;  %v12143_v37 = vld [vmem:[#allocation11_spill] sm:$0xff] }
 0x363   : > { %5449 = vmatprep.mubr.f32.mxu0 %v12108_v18 }
 0x365   : > { %3108 = vmatmul.mubr.f32.gmra.mrb[90].mxu1 %v12109_v24 }
 0x366   : > { %5451 = vmatmul.mubr.f32.gmra.mrb[90].mxu0 %v12110_v7  ;;  %3115 = vmatprep.mubr.f32.mxu1 %v12111_v43 }
 0x367   : > { %5457 = vmatprep.mubr.f32.mxu0 %v12112_v48 }
 0x369   : > { %3118 = vmatmul.mubr.f32.gmra.mrb[92].mxu1 %v12113_v52  ;;  %v12144_v52 = vld [vmem:[#allocation299_spill] sm:$0xff] }
 0x36a   : > { %5459 = vmatmul.mubr.f32.gmra.mrb[92].mxu0 %v12114_v40  ;;  %3125 = vmatprep.mubr.f32.mxu1 %v12115_v41  ;;  %v12145_v41 = vld [vmem:[#allocation296_spill] sm:$0xff] }
 0x36b   : > { %5465 = vmatprep.mubr.f32.mxu0 %v12116_v60 }
 0x36d   : > { %3128 = vmatmul.mubr.f32.gmra.mrb[94].mxu1 %v12117_v27  ;;  %v12146_v27 = vld [vmem:[#allocation301_spill] sm:$0xff] }
 0x36e   : > { %5467 = vmatmul.mubr.f32.gmra.mrb[94].mxu0 %v12118_v50  ;;  %3135 = vmatprep.mubr.f32.mxu1 %v12119_v20  ;;  %v12147_v50 = vld [vmem:[#allocation298_spill] sm:$0xff] }
 0x36f   : > { %5473 = vmatprep.mubr.f32.mxu0 %v12120_v4 }
 0x371   : > { %3138 = vmatmul.mubr.f32.gmra.mrb[96].mxu1 %v12121_v53 }
 0x372   : > { %5475 = vmatmul.mubr.f32.gmra.mrb[96].mxu0 %v12122_v58  ;;  %3145 = vmatprep.mubr.f32.mxu1 %v12123_v54 }
 0x373   : > { %5481 = vmatprep.mubr.f32.mxu0 %v11955_v28  ;;  %v12129_v28 = vld [vmem:[#allocation284_spill] sm:$0xff] }
 0x375   : > { %3148 = vmatmul.mubr.f32.gmra.mrb[98].mxu1 %v12124_v38 }
 0x376   : > { %5483 = vmatmul.mubr.f32.gmra.mrb[98].mxu0 %v11956_v9  ;;  %3155 = vmatprep.mubr.f32.mxu1 %v12125_v8  ;;  %v12130_v9 = vld [vmem:[#allocation288_spill] sm:$0xff] }
 0x377   : > { %5489 = vmatprep.mubr.f32.mxu0 %v11957_v61  ;;  %v399_v61 = vld [vmem:[%s10579_s2] sm:$0x3] }
 0x378   : > { %v10218_v39 = vrot.slane %v399_v61, %v403_v45  ;;  %v10222_v2 = vrot.slane %v399_v61, %v407_v35 }
 0x379   : > { %3158 = vmatmul.mubr.f32.gmra.mrb[100].mxu1 %v12126_v26  ;;  %v12149_v26 = vld [vmem:[#allocation300_spill] sm:$0xff] }
 0x37a   : > { %5491 = vmatmul.mubr.f32.gmra.mrb[100].mxu0 %v11958_v25  ;;  %3165 = vmatprep.mubr.f32.mxu1 %v12127_v17  ;;  %v12132_v25 = vld [vmem:[#allocation290_spill] sm:$0xff]  ;;  %v12150_v17 = vld [vmem:[#allocation305_spill] sm:$0xff] }
 0x37b   : > { %5497 = vmatprep.mubr.f32.mxu0 %v11959_v32  ;;  %v12134_v32 = vld [vmem:[#allocation292_spill] sm:$0xff] }
 0x37d   : > { %3168 = vmatmul.mubr.f32.gmra.mrb[102].mxu1 %v12128_v6  ;;  %v12151_v6 = vld [vmem:[#allocation302_spill] sm:$0xff] }
 0x37e   : > { %5499 = vmatmul.mubr.f32.gmra.mrb[102].mxu0 %v12129_v28  ;;  %3175 = vmatprep.mubr.f32.mxu1 %v12130_v9 }
 0x37f   : > { %5505 = vmatprep.mubr.f32.mxu0 %v12131_v1 }
 0x381   : > { %3178 = vmatmul.mubr.f32.gmra.mrb[104].mxu1 %v12132_v25  ;;  %v12152_v25 = vld [vmem:[#allocation307_spill] sm:$0xff] }
 0x382   : > { %5507 = vmatmul.mubr.f32.gmra.mrb[104].mxu0 %v12133_v47  ;;  %3185 = vmatprep.mubr.f32.mxu1 %v12134_v32 }
 0x383   : > { %5513 = vmatprep.mubr.f32.mxu0 %v12135_v49  ;;  %v12153_v49 = vld [vmem:[#allocation309_spill] sm:$0xff] }
 0x384   : > { %v2659_v29 = vpop.f32.mrb[0].mxu1 }
 0x385   : > { %v5092_v62 = vpop.f32.mrb[0].mxu0  ;;  %v6233_v36 = vadd.f32 %v2659_v29, %v10218_v39  ;;  %v2661_v44 = vpop.f32.mrb[1].mxu1  ;;  %3188 = vmatmul.mubr.f32.gmra.mrb[106].mxu1 %v12136_v56  ;;  %v12154_v29 = vld [vmem:[#allocation306_spill] sm:$0xff] }
 0x386   : > { %v5094_v0 = vpop.f32.mrb[1].mxu0  ;;  %5515 = vmatmul.mubr.f32.gmra.mrb[106].mxu0 %v12137_v11  ;;  %v6235_v23 = vadd.f32 %v2661_v44, %v10222_v2  ;;  %3195 = vmatprep.mubr.f32.mxu1 %v12138_v57 }
 0x387   : > { %5521 = vmatprep.mubr.f32.mxu0 %v12139_v55  ;;  %v6234_v46 = vadd.f32 %v6233_v36, %v5092_v62  ;;  %v12156_v55 = vld [vmem:[#allocation314_spill] sm:$0xff] }
 0x388   : > { %v6236_v10 = vadd.f32 %v6235_v23, %v5094_v0  ;;  %v2669_v42 = vpop.f32.mrb[2].mxu1  ;;  %v12155_v23 = vld [vmem:[#allocation313_spill] sm:$0xff] }
 0x389   : > { %v5100_v33 = vpop.f32.mrb[2].mxu0  ;;  %5601 = vst [vmem:[%s10232_s8] sm:$0xff] %v6234_v46  ;;  %v6237_v59 = vadd.f32 %v2669_v42, %v10218_v39  ;;  %v2671_v51 = vpop.f32.mrb[3].mxu1  ;;  %3198 = vmatmul.mubr.f32.gmra.mrb[108].mxu1 %v12140_v5  ;;  %v12157_v5 = vld [vmem:[#allocation315_spill] sm:$0xff] }
 0x38a   : > { %v5102_v31 = vpop.f32.mrb[3].mxu0  ;;  %5523 = vmatmul.mubr.f32.gmra.mrb[108].mxu0 %v12141_v13  ;;  %5602 = vst [vmem:[%s10232_s8 + $0x8] sm:$0xff] %v6236_v10  ;;  %v6239_v14 = vadd.f32 %v2671_v51, %v10222_v2  ;;  %3205 = vmatprep.mubr.f32.mxu1 %v12142_v22  ;;  %v12158_v13 = vld [vmem:[#allocation316_spill] sm:$0xff] }
 0x38b   : > { %5529 = vmatprep.mubr.f32.mxu0 %v12143_v37  ;;  %v6238_v19 = vadd.f32 %v6237_v59, %v5100_v33 }
 0x38c   : > { %v6240_v18 = vadd.f32 %v6239_v14, %v5102_v31  ;;  %v2679_v24 = vpop.f32.mrb[4].mxu1 }
 0x38d   : > { %v5108_v7 = vpop.f32.mrb[4].mxu0  ;;  %5603 = vst [vmem:[%s10232_s8 + $0x10] sm:$0xff] %v6238_v19  ;;  %v6241_v43 = vadd.f32 %v2679_v24, %v10218_v39  ;;  %v2681_v48 = vpop.f32.mrb[5].mxu1  ;;  %3208 = vmatmul.mubr.f32.gmra.mrb[110].mxu1 %v12144_v52  ;;  %v12159_v24 = vld [vmem:[#allocation318_spill] sm:$0xff] }
 0x38e   : > { %v5110_v40 = vpop.f32.mrb[5].mxu0  ;;  %5531 = vmatmul.mubr.f32.gmra.mrb[110].mxu0 %v12145_v41  ;;  %5604 = vst [vmem:[%s10232_s8 + $0x18] sm:$0xff] %v6240_v18  ;;  %v6243_v60 = vadd.f32 %v2681_v48, %v10222_v2  ;;  %3215 = vmatprep.mubr.f32.mxu1 %v12146_v27 }
 0x38f   : > { %5537 = vmatprep.mubr.f32.mxu0 %v12147_v50  ;;  %v6242_v20 = vadd.f32 %v6241_v43, %v5108_v7  ;;  %v12160_v43 = vld [vmem:[#allocation320_spill] sm:$0xff]  ;;  %v12162_v50 = vld [vmem:[#allocation322_spill] sm:$0xff] }
 0x390   : > { %v6244_v4 = vadd.f32 %v6243_v60, %v5110_v40  ;;  %v2689_v53 = vpop.f32.mrb[6].mxu1 }
 0x391   : > { %v5116_v58 = vpop.f32.mrb[6].mxu0  ;;  %5605 = vst [vmem:[%s10232_s8 + $0x20] sm:$0xff] %v6242_v20  ;;  %v6245_v54 = vadd.f32 %v2689_v53, %v10218_v39  ;;  %v2691_v38 = vpop.f32.mrb[7].mxu1  ;;  %3218 = vmatmul.mubr.f32.gmra.mrb[112].mxu1 %v12148_v12  ;;  %v12164_v53 = vld [vmem:[#allocation324_spill] sm:$0xff] }
 0x392   : > { %v5118_v8 = vpop.f32.mrb[7].mxu0  ;;  %5539 = vmatmul.mubr.f32.gmra.mrb[112].mxu0 %v12149_v26  ;;  %5606 = vst [vmem:[%s10232_s8 + $0x28] sm:$0xff] %v6244_v4  ;;  %v6247_v3 = vadd.f32 %v2691_v38, %v10222_v2  ;;  %3225 = vmatprep.mubr.f32.mxu1 %v12150_v17  ;;  %v12166_v17 = vld [vmem:[#allocation326_spill] sm:$0xff] }
 0x393   : > { %5545 = vmatprep.mubr.f32.mxu0 %v12151_v6  ;;  %v6246_v28 = vadd.f32 %v6245_v54, %v5116_v58  ;;  %v12165_v58 = vld [vmem:[#allocation321_spill] sm:$0xff] }
 0x394   : > { %v6248_v45 = vadd.f32 %v6247_v3, %v5118_v8  ;;  %v2699_v9 = vpop.f32.mrb[8].mxu1 }
 0x395   : > { %v5124_v1 = vpop.f32.mrb[8].mxu0  ;;  %5607 = vst [vmem:[%s10232_s8 + $0x30] sm:$0xff] %v6246_v28  ;;  %v6249_v61 = vadd.f32 %v2699_v9, %v10218_v39  ;;  %v2701_v35 = vpop.f32.mrb[9].mxu1  ;;  %3228 = vmatmul.mubr.f32.gmra.mrb[114].mxu1 %v12152_v25  ;;  %v12167_v28 = vld [vmem:[#allocation323_spill] sm:$0xff]  ;;  %v12168_v9 = vld [vmem:[#allocation328_spill] sm:$0xff] }
 0x396   : > { %v5126_v47 = vpop.f32.mrb[9].mxu0  ;;  %5547 = vmatmul.mubr.f32.gmra.mrb[114].mxu0 %v11967_v63  ;;  %5608 = vst [vmem:[%s10232_s8 + $0x38] sm:$0xff] %v6248_v45  ;;  %v6251_v32 = vadd.f32 %v2701_v35, %v10222_v2  ;;  %3235 = vmatprep.mubr.f32.mxu1 %v12153_v49 }
 0x397   : > { %5553 = vmatprep.mubr.f32.mxu0 %v12154_v29  ;;  %v6250_v62 = vadd.f32 %v6249_v61, %v5124_v1  ;;  %v12169_v1 = vld [vmem:[#allocation325_spill] sm:$0xff] }
 0x398   : > { %v6252_v36 = vadd.f32 %v6251_v32, %v5126_v47  ;;  %v2709_v44 = vpop.f32.mrb[10].mxu1  ;;  %v12170_v29 = vld [vmem:[#allocation329_spill] sm:$0xff] }
 0x399   : > { %v5132_v56 = vpop.f32.mrb[10].mxu0  ;;  %5609 = vst [vmem:[%s10232_s8 + $0x40] sm:$0xff] %v6250_v62  ;;  %v6253_v0 = vadd.f32 %v2709_v44, %v10218_v39  ;;  %v2711_v11 = vpop.f32.mrb[11].mxu1  ;;  %3238 = vmatmul.mubr.f32.gmra.mrb[116].mxu1 %v12155_v23 }
 0x39a   : > { %v5134_v57 = vpop.f32.mrb[11].mxu0  ;;  %5555 = vmatmul.mubr.f32.gmra.mrb[116].mxu0 %v11969_v34  ;;  %5610 = vst [vmem:[%s10232_s8 + $0x48] sm:$0xff] %v6252_v36  ;;  %v6255_v63 = vadd.f32 %v2711_v11, %v10222_v2  ;;  %3245 = vmatprep.mubr.f32.mxu1 %v12156_v55  ;;  %v12171_v36 = vld [vmem:[#allocation327_spill] sm:$0xff] }
 0x39b   : > { %5561 = vmatprep.mubr.f32.mxu0 %v11970_v21  ;;  %v6254_v46 = vadd.f32 %v6253_v0, %v5132_v56 }
 0x39c   : > { %v6256_v10 = vadd.f32 %v6255_v63, %v5134_v57  ;;  %v2719_v42 = vpop.f32.mrb[12].mxu1 }
 0x39d   : > { %v5140_v33 = vpop.f32.mrb[12].mxu0  ;;  %5611 = vst [vmem:[%s10232_s8 + $0x50] sm:$0xff] %v6254_v46  ;;  %v6257_v59 = vadd.f32 %v2719_v42, %v10218_v39  ;;  %v2721_v51 = vpop.f32.mrb[13].mxu1  ;;  %3248 = vmatmul.mubr.f32.gmra.mrb[118].mxu1 %v12157_v5 }
 0x39e   : > { %v5142_v31 = vpop.f32.mrb[13].mxu0  ;;  %5563 = vmatmul.mubr.f32.gmra.mrb[118].mxu0 %v11971_v30  ;;  %5612 = vst [vmem:[%s10232_s8 + $0x58] sm:$0xff] %v6256_v10  ;;  %v6259_v34 = vadd.f32 %v2721_v51, %v10222_v2  ;;  %3255 = vmatprep.mubr.f32.mxu1 %v12158_v13 }
 0x39f   : > { %5569 = vmatprep.mubr.f32.mxu0 %v11972_v16  ;;  %v6258_v21 = vadd.f32 %v6257_v59, %v5140_v33  ;;  %v12161_v16 = vld [vmem:[#allocation317_spill] sm:$0xff] }
 0x3a0   : > { %v6260_v14 = vadd.f32 %v6259_v34, %v5142_v31  ;;  %v2729_v22 = vpop.f32.mrb[14].mxu1 }
 0x3a1   : > { %v5148_v37 = vpop.f32.mrb[14].mxu0  ;;  %5613 = vst [vmem:[%s10232_s8 + $0x60] sm:$0xff] %v6258_v21  ;;  %v6261_v19 = vadd.f32 %v2729_v22, %v10218_v39  ;;  %v2731_v18 = vpop.f32.mrb[15].mxu1  ;;  %3258 = vmatmul.mubr.f32.gmra.mrb[120].mxu1 %v12159_v24 }
 0x3a2   : > { %v5150_v7 = vpop.f32.mrb[15].mxu0  ;;  %5571 = vmatmul.mubr.f32.gmra.mrb[120].mxu0 %v9592_v15  ;;  %5614 = vst [vmem:[%s10232_s8 + $0x68] sm:$0xff] %v6260_v14  ;;  %v6263_v30 = vadd.f32 %v2731_v18, %v10222_v2  ;;  %3265 = vmatprep.mubr.f32.mxu1 %v12160_v43  ;;  %v12163_v15 = vld [vmem:[#allocation319_spill] sm:$0xff] }
 0x3a3   : > { %5577 = vmatprep.mubr.f32.mxu0 %v12161_v16  ;;  %v6262_v48 = vadd.f32 %v6261_v19, %v5148_v37 }
 0x3a4   : > { %v6264_v52 = vadd.f32 %v6263_v30, %v5150_v7  ;;  %v2739_v40 = vpop.f32.mrb[16].mxu1 }
 0x3a5   : > { %v5156_v41 = vpop.f32.mrb[16].mxu0  ;;  %5615 = vst [vmem:[%s10232_s8 + $0x70] sm:$0xff] %v6262_v48  ;;  %v6265_v60 = vadd.f32 %v2739_v40, %v10218_v39  ;;  %v2741_v27 = vpop.f32.mrb[17].mxu1  ;;  %3268 = vmatmul.mubr.f32.gmra.mrb[122].mxu1 %v12162_v50 }
 0x3a6   : > { %v5158_v20 = vpop.f32.mrb[17].mxu0  ;;  %5579 = vmatmul.mubr.f32.gmra.mrb[122].mxu0 %v12163_v15  ;;  %5616 = vst [vmem:[%s10232_s8 + $0x78] sm:$0xff] %v6264_v52  ;;  %v6267_v4 = vadd.f32 %v2741_v27, %v10222_v2  ;;  %3275 = vmatprep.mubr.f32.mxu1 %v12164_v53 }
 0x3a7   : > { %5585 = vmatprep.mubr.f32.mxu0 %v12165_v58  ;;  %v6266_v54 = vadd.f32 %v6265_v60, %v5156_v41 }
 0x3a8   : > { %v6268_v38 = vadd.f32 %v6267_v4, %v5158_v20  ;;  %v2749_v12 = vpop.f32.mrb[18].mxu1 }
 0x3a9   : > { %v5164_v8 = vpop.f32.mrb[18].mxu0  ;;  %5617 = vst [vmem:[%s10232_s8 + $0x80] sm:$0xff] %v6266_v54  ;;  %v6269_v26 = vadd.f32 %v2749_v12, %v10218_v39  ;;  %v2751_v3 = vpop.f32.mrb[19].mxu1  ;;  %3278 = vmatmul.mubr.f32.gmra.mrb[124].mxu1 %v12166_v17 }
 0x3aa   : > { %v5166_v6 = vpop.f32.mrb[19].mxu0  ;;  %5587 = vmatmul.mubr.f32.gmra.mrb[124].mxu0 %v12167_v28  ;;  %5618 = vst [vmem:[%s10232_s8 + $0x88] sm:$0xff] %v6268_v38  ;;  %v6271_v45 = vadd.f32 %v2751_v3, %v10222_v2  ;;  %3285 = vmatprep.mubr.f32.mxu1 %v12168_v9 }
 0x3ab   : > { %5593 = vmatprep.mubr.f32.mxu0 %v12169_v1  ;;  %v6270_v61 = vadd.f32 %v6269_v26, %v5164_v8 }
 0x3ac   : > { %v6272_v35 = vadd.f32 %v6271_v45, %v5166_v6  ;;  %v2759_v25 = vpop.f32.mrb[20].mxu1 }
 0x3ad   : > { %v5172_v47 = vpop.f32.mrb[20].mxu0  ;;  %5619 = vst [vmem:[%s10232_s8 + $0x90] sm:$0xff] %v6270_v61  ;;  %v6273_v32 = vadd.f32 %v2759_v25, %v10218_v39  ;;  %v2761_v49 = vpop.f32.mrb[21].mxu1  ;;  %3288 = vmatmul.mubr.f32.gmra.mrb[126].mxu1 %v12170_v29 }
 0x3ae   : > { %v5174_v62 = vpop.f32.mrb[21].mxu0  ;;  %5595 = vmatmul.mubr.f32.gmra.mrb[126].mxu0 %v12171_v36  ;;  %5620 = vst [vmem:[%s10232_s8 + $0x98] sm:$0xff] %v6272_v35  ;;  %v6275_v44 = vadd.f32 %v2761_v49, %v10222_v2 }
 0x3af   : > { %v6274_v56 = vadd.f32 %v6273_v32, %v5172_v47 }
 0x3b0   : > { %v6276_v0 = vadd.f32 %v6275_v44, %v5174_v62  ;;  %v2769_v11 = vpop.f32.mrb[22].mxu1 }
 0x3b1   : > { %v5180_v23 = vpop.f32.mrb[22].mxu0  ;;  %5621 = vst [vmem:[%s10232_s8 + $0xa0] sm:$0xff] %v6274_v56  ;;  %v6277_v57 = vadd.f32 %v2769_v11, %v10218_v39  ;;  %v2771_v63 = vpop.f32.mrb[23].mxu1 }
 0x3b2   : > { %v5182_v55 = vpop.f32.mrb[23].mxu0  ;;  %5622 = vst [vmem:[%s10232_s8 + $0xa8] sm:$0xff] %v6276_v0  ;;  %v6279_v46 = vadd.f32 %v2771_v63, %v10222_v2 }
 0x3b3   : > { %v6278_v10 = vadd.f32 %v6277_v57, %v5180_v23 }
 0x3b4   : > { %v6280_v42 = vadd.f32 %v6279_v46, %v5182_v55  ;;  %v2779_v33 = vpop.f32.mrb[24].mxu1 }
 0x3b5   : > { %v5188_v59 = vpop.f32.mrb[24].mxu0  ;;  %5623 = vst [vmem:[%s10232_s8 + $0xb0] sm:$0xff] %v6278_v10  ;;  %v6281_v51 = vadd.f32 %v2779_v33, %v10218_v39  ;;  %v2781_v5 = vpop.f32.mrb[25].mxu1 }
 0x3b6   : > { %v5190_v31 = vpop.f32.mrb[25].mxu0  ;;  %5624 = vst [vmem:[%s10232_s8 + $0xb8] sm:$0xff] %v6280_v42  ;;  %v6283_v34 = vadd.f32 %v2781_v5, %v10222_v2 }
 0x3b7   : > { %v6282_v13 = vadd.f32 %v6281_v51, %v5188_v59 }
 0x3b8   : > { %v6284_v21 = vadd.f32 %v6283_v34, %v5190_v31  ;;  %v2789_v14 = vpop.f32.mrb[26].mxu1 }
 0x3b9   : > { %v5196_v22 = vpop.f32.mrb[26].mxu0  ;;  %5625 = vst [vmem:[%s10232_s8 + $0xc0] sm:$0xff] %v6282_v13  ;;  %v6285_v37 = vadd.f32 %v2789_v14, %v10218_v39  ;;  %v2791_v19 = vpop.f32.mrb[27].mxu1 }
 0x3ba   : > { %v5198_v18 = vpop.f32.mrb[27].mxu0  ;;  %5626 = vst [vmem:[%s10232_s8 + $0xc8] sm:$0xff] %v6284_v21  ;;  %v6287_v24 = vadd.f32 %v2791_v19, %v10222_v2 }
 0x3bb   : > { %v6286_v7 = vadd.f32 %v6285_v37, %v5196_v22 }
 0x3bc   : > { %v6288_v30 = vadd.f32 %v6287_v24, %v5198_v18  ;;  %v2799_v43 = vpop.f32.mrb[28].mxu1 }
 0x3bd   : > { %v5204_v16 = vpop.f32.mrb[28].mxu0  ;;  %5627 = vst [vmem:[%s10232_s8 + $0xd0] sm:$0xff] %v6286_v7  ;;  %v6289_v48 = vadd.f32 %v2799_v43, %v10218_v39  ;;  %v2801_v52 = vpop.f32.mrb[29].mxu1 }
 0x3be   : > { %v5206_v40 = vpop.f32.mrb[29].mxu0  ;;  %5628 = vst [vmem:[%s10232_s8 + $0xd8] sm:$0xff] %v6288_v30  ;;  %v6291_v41 = vadd.f32 %v2801_v52, %v10222_v2 }
 0x3bf   : > { %v6290_v60 = vadd.f32 %v6289_v48, %v5204_v16 }
 0x3c0   : > { %v6292_v27 = vadd.f32 %v6291_v41, %v5206_v40  ;;  %v2809_v50 = vpop.f32.mrb[30].mxu1 }
 0x3c1   : > { %v5212_v20 = vpop.f32.mrb[30].mxu0  ;;  %5629 = vst [vmem:[%s10232_s8 + $0xe0] sm:$0xff] %v6290_v60  ;;  %v6293_v15 = vadd.f32 %v2809_v50, %v10218_v39  ;;  %v2811_v4 = vpop.f32.mrb[31].mxu1 }
 0x3c2   : > { %v5214_v53 = vpop.f32.mrb[31].mxu0  ;;  %5630 = vst [vmem:[%s10232_s8 + $0xe8] sm:$0xff] %v6292_v27  ;;  %v6295_v58 = vadd.f32 %v2811_v4, %v10222_v2 }
 0x3c3   : > { %v6294_v54 = vadd.f32 %v6293_v15, %v5212_v20 }
 0x3c4   : > { %v6296_v38 = vadd.f32 %v6295_v58, %v5214_v53  ;;  %v2819_v12 = vpop.f32.mrb[32].mxu1 }
 0x3c5   : > { %v5220_v8 = vpop.f32.mrb[32].mxu0  ;;  %5631 = vst [vmem:[%s10232_s8 + $0xf0] sm:$0xff] %v6294_v54  ;;  %v6297_v26 = vadd.f32 %v2819_v12, %v10218_v39  ;;  %v2821_v3 = vpop.f32.mrb[33].mxu1 }
 0x3c6   : > { %v5222_v17 = vpop.f32.mrb[33].mxu0  ;;  %5632 = vst [vmem:[%s10232_s8 + $0xf8] sm:$0xff] %v6296_v38  ;;  %v6299_v6 = vadd.f32 %v2821_v3, %v10222_v2 }
 0x3c7   : > { %v6298_v28 = vadd.f32 %v6297_v26, %v5220_v8 }
 0x3c8   : > { %v6300_v45 = vadd.f32 %v6299_v6, %v5222_v17  ;;  %v2829_v9 = vpop.f32.mrb[34].mxu1 }
 0x3c9   : > { %v5228_v1 = vpop.f32.mrb[34].mxu0  ;;  %5633 = vst [vmem:[%s10232_s8 + $0x100] sm:$0xff] %v6298_v28  ;;  %v6301_v61 = vadd.f32 %v2829_v9, %v10218_v39  ;;  %v2831_v35 = vpop.f32.mrb[35].mxu1 }
 0x3ca   : > { %v5230_v25 = vpop.f32.mrb[35].mxu0  ;;  %5634 = vst [vmem:[%s10232_s8 + $0x108] sm:$0xff] %v6300_v45  ;;  %v6303_v47 = vadd.f32 %v2831_v35, %v10222_v2 }
 0x3cb   : > { %v6302_v32 = vadd.f32 %v6301_v61, %v5228_v1 }
 0x3cc   : > { %v6304_v49 = vadd.f32 %v6303_v47, %v5230_v25  ;;  %v2839_v29 = vpop.f32.mrb[36].mxu1 }
 0x3cd   : > { %v5236_v62 = vpop.f32.mrb[36].mxu0  ;;  %5635 = vst [vmem:[%s10232_s8 + $0x110] sm:$0xff] %v6302_v32  ;;  %v6305_v36 = vadd.f32 %v2839_v29, %v10218_v39  ;;  %v2841_v44 = vpop.f32.mrb[37].mxu1 }
 0x3ce   : > { %v5238_v56 = vpop.f32.mrb[37].mxu0  ;;  %5636 = vst [vmem:[%s10232_s8 + $0x118] sm:$0xff] %v6304_v49  ;;  %v6307_v0 = vadd.f32 %v2841_v44, %v10222_v2 }
 0x3cf   : > { %v6306_v11 = vadd.f32 %v6305_v36, %v5236_v62 }
 0x3d0   : > { %v6308_v23 = vadd.f32 %v6307_v0, %v5238_v56  ;;  %v2849_v57 = vpop.f32.mrb[38].mxu1 }
 0x3d1   : > { %v5244_v63 = vpop.f32.mrb[38].mxu0  ;;  %5637 = vst [vmem:[%s10232_s8 + $0x120] sm:$0xff] %v6306_v11  ;;  %v6309_v55 = vadd.f32 %v2849_v57, %v10218_v39  ;;  %v2851_v46 = vpop.f32.mrb[39].mxu1 }
 0x3d2   : > { %v5246_v10 = vpop.f32.mrb[39].mxu0  ;;  %5638 = vst [vmem:[%s10232_s8 + $0x128] sm:$0xff] %v6308_v23  ;;  %v6311_v42 = vadd.f32 %v2851_v46, %v10222_v2 }
 0x3d3   : > { %v6310_v33 = vadd.f32 %v6309_v55, %v5244_v63 }
 0x3d4   : > { %v6312_v59 = vadd.f32 %v6311_v42, %v5246_v10  ;;  %v2859_v51 = vpop.f32.mrb[40].mxu1 }
 0x3d5   : > { %v5252_v5 = vpop.f32.mrb[40].mxu0  ;;  %5639 = vst [vmem:[%s10232_s8 + $0x130] sm:$0xff] %v6310_v33  ;;  %v6313_v31 = vadd.f32 %v2859_v51, %v10218_v39  ;;  %v2861_v34 = vpop.f32.mrb[41].mxu1 }
 0x3d6   : > { %v5254_v13 = vpop.f32.mrb[41].mxu0  ;;  %5640 = vst [vmem:[%s10232_s8 + $0x138] sm:$0xff] %v6312_v59  ;;  %v6315_v21 = vadd.f32 %v2861_v34, %v10222_v2 }
 0x3d7   : > { %v6314_v14 = vadd.f32 %v6313_v31, %v5252_v5 }
 0x3d8   : > { %v6316_v22 = vadd.f32 %v6315_v21, %v5254_v13  ;;  %v2869_v37 = vpop.f32.mrb[42].mxu1 }
 0x3d9   : > { %v5260_v19 = vpop.f32.mrb[42].mxu0  ;;  %5641 = vst [vmem:[%s10232_s8 + $0x140] sm:$0xff] %v6314_v14  ;;  %v6317_v18 = vadd.f32 %v2869_v37, %v10218_v39  ;;  %v2871_v24 = vpop.f32.mrb[43].mxu1 }
 0x3da   : > { %v5262_v7 = vpop.f32.mrb[43].mxu0  ;;  %5642 = vst [vmem:[%s10232_s8 + $0x148] sm:$0xff] %v6316_v22  ;;  %v6319_v30 = vadd.f32 %v2871_v24, %v10222_v2 }
 0x3db   : > { %v6318_v43 = vadd.f32 %v6317_v18, %v5260_v19 }
 0x3dc   : > { %v6320_v16 = vadd.f32 %v6319_v30, %v5262_v7  ;;  %v2879_v48 = vpop.f32.mrb[44].mxu1 }
 0x3dd   : > { %v5268_v52 = vpop.f32.mrb[44].mxu0  ;;  %5643 = vst [vmem:[%s10232_s8 + $0x150] sm:$0xff] %v6318_v43  ;;  %v6321_v40 = vadd.f32 %v2879_v48, %v10218_v39  ;;  %v2881_v41 = vpop.f32.mrb[45].mxu1 }
 0x3de   : > { %v5270_v60 = vpop.f32.mrb[45].mxu0  ;;  %5644 = vst [vmem:[%s10232_s8 + $0x158] sm:$0xff] %v6320_v16  ;;  %v6323_v27 = vadd.f32 %v2881_v41, %v10222_v2 }
 0x3df   : > { %v6322_v50 = vadd.f32 %v6321_v40, %v5268_v52 }
 0x3e0   : > { %v6324_v20 = vadd.f32 %v6323_v27, %v5270_v60  ;;  %v2889_v15 = vpop.f32.mrb[46].mxu1 }
 0x3e1   : > { %v5276_v4 = vpop.f32.mrb[46].mxu0  ;;  %5645 = vst [vmem:[%s10232_s8 + $0x160] sm:$0xff] %v6322_v50  ;;  %v6325_v53 = vadd.f32 %v2889_v15, %v10218_v39  ;;  %v2891_v58 = vpop.f32.mrb[47].mxu1 }
 0x3e2   : > { %v5278_v54 = vpop.f32.mrb[47].mxu0  ;;  %5646 = vst [vmem:[%s10232_s8 + $0x168] sm:$0xff] %v6324_v20  ;;  %v6327_v38 = vadd.f32 %v2891_v58, %v10222_v2 }
 0x3e3   : > { %v6326_v12 = vadd.f32 %v6325_v53, %v5276_v4 }
 0x3e4   : > { %v6328_v8 = vadd.f32 %v6327_v38, %v5278_v54  ;;  %v2899_v26 = vpop.f32.mrb[48].mxu1 }
 0x3e5   : > { %v5284_v3 = vpop.f32.mrb[48].mxu0  ;;  %5647 = vst [vmem:[%s10232_s8 + $0x170] sm:$0xff] %v6326_v12  ;;  %v6329_v17 = vadd.f32 %v2899_v26, %v10218_v39  ;;  %v2901_v6 = vpop.f32.mrb[49].mxu1 }
 0x3e6   : > { %v5286_v28 = vpop.f32.mrb[49].mxu0  ;;  %5648 = vst [vmem:[%s10232_s8 + $0x178] sm:$0xff] %v6328_v8  ;;  %v6331_v45 = vadd.f32 %v2901_v6, %v10222_v2 }
 0x3e7   : > { %v6330_v9 = vadd.f32 %v6329_v17, %v5284_v3 }
 0x3e8   : > { %v6332_v1 = vadd.f32 %v6331_v45, %v5286_v28  ;;  %v2909_v61 = vpop.f32.mrb[50].mxu1 }
 0x3e9   : > { %v5292_v35 = vpop.f32.mrb[50].mxu0  ;;  %5649 = vst [vmem:[%s10232_s8 + $0x180] sm:$0xff] %v6330_v9  ;;  %v6333_v25 = vadd.f32 %v2909_v61, %v10218_v39  ;;  %v2911_v47 = vpop.f32.mrb[51].mxu1 }
 0x3ea   : > { %v5294_v32 = vpop.f32.mrb[51].mxu0  ;;  %5650 = vst [vmem:[%s10232_s8 + $0x188] sm:$0xff] %v6332_v1  ;;  %v6335_v49 = vadd.f32 %v2911_v47, %v10222_v2 }
 0x3eb   : > { %v6334_v29 = vadd.f32 %v6333_v25, %v5292_v35 }
 0x3ec   : > { %v6336_v62 = vadd.f32 %v6335_v49, %v5294_v32  ;;  %v2919_v36 = vpop.f32.mrb[52].mxu1 }
 0x3ed   : > { %v5300_v44 = vpop.f32.mrb[52].mxu0  ;;  %5651 = vst [vmem:[%s10232_s8 + $0x190] sm:$0xff] %v6334_v29  ;;  %v6337_v56 = vadd.f32 %v2919_v36, %v10218_v39  ;;  %v2921_v0 = vpop.f32.mrb[53].mxu1 }
 0x3ee   : > { %v5302_v11 = vpop.f32.mrb[53].mxu0  ;;  %5652 = vst [vmem:[%s10232_s8 + $0x198] sm:$0xff] %v6336_v62  ;;  %v6339_v23 = vadd.f32 %v2921_v0, %v10222_v2 }
 0x3ef   : > { %v6338_v57 = vadd.f32 %v6337_v56, %v5300_v44 }
 0x3f0   : > { %v6340_v63 = vadd.f32 %v6339_v23, %v5302_v11  ;;  %v2929_v55 = vpop.f32.mrb[54].mxu1 }
 0x3f1   : > { %v5308_v46 = vpop.f32.mrb[54].mxu0  ;;  %5653 = vst [vmem:[%s10232_s8 + $0x1a0] sm:$0xff] %v6338_v57  ;;  %v6341_v10 = vadd.f32 %v2929_v55, %v10218_v39  ;;  %v2931_v42 = vpop.f32.mrb[55].mxu1 }
 0x3f2   : > { %v5310_v33 = vpop.f32.mrb[55].mxu0  ;;  %5654 = vst [vmem:[%s10232_s8 + $0x1a8] sm:$0xff] %v6340_v63  ;;  %v6343_v59 = vadd.f32 %v2931_v42, %v10222_v2 }
 0x3f3   : > { %v6342_v51 = vadd.f32 %v6341_v10, %v5308_v46 }
 0x3f4   : > { %v6344_v5 = vadd.f32 %v6343_v59, %v5310_v33  ;;  %v2939_v31 = vpop.f32.mrb[56].mxu1 }
 0x3f5   : > { %v5316_v34 = vpop.f32.mrb[56].mxu0  ;;  %5655 = vst [vmem:[%s10232_s8 + $0x1b0] sm:$0xff] %v6342_v51  ;;  %v6345_v13 = vadd.f32 %v2939_v31, %v10218_v39  ;;  %v2941_v21 = vpop.f32.mrb[57].mxu1 }
 0x3f6   : > { %v5318_v14 = vpop.f32.mrb[57].mxu0  ;;  %5656 = vst [vmem:[%s10232_s8 + $0x1b8] sm:$0xff] %v6344_v5  ;;  %v6347_v22 = vadd.f32 %v2941_v21, %v10222_v2 }
 0x3f7   : > { %v6346_v37 = vadd.f32 %v6345_v13, %v5316_v34 }
 0x3f8   : > { %v6348_v19 = vadd.f32 %v6347_v22, %v5318_v14  ;;  %v2949_v18 = vpop.f32.mrb[58].mxu1 }
 0x3f9   : > { %v5324_v24 = vpop.f32.mrb[58].mxu0  ;;  %5657 = vst [vmem:[%s10232_s8 + $0x1c0] sm:$0xff] %v6346_v37  ;;  %v6349_v7 = vadd.f32 %v2949_v18, %v10218_v39  ;;  %v2951_v30 = vpop.f32.mrb[59].mxu1 }
 0x3fa   : > { %v5326_v43 = vpop.f32.mrb[59].mxu0  ;;  %5658 = vst [vmem:[%s10232_s8 + $0x1c8] sm:$0xff] %v6348_v19  ;;  %v6351_v16 = vadd.f32 %v2951_v30, %v10222_v2 }
 0x3fb   : > { %v6350_v48 = vadd.f32 %v6349_v7, %v5324_v24 }
 0x3fc   : > { %v6352_v52 = vadd.f32 %v6351_v16, %v5326_v43  ;;  %v2959_v40 = vpop.f32.mrb[60].mxu1 }
 0x3fd   : > { %v5332_v41 = vpop.f32.mrb[60].mxu0  ;;  %5659 = vst [vmem:[%s10232_s8 + $0x1d0] sm:$0xff] %v6350_v48  ;;  %v6353_v60 = vadd.f32 %v2959_v40, %v10218_v39  ;;  %v2961_v27 = vpop.f32.mrb[61].mxu1 }
 0x3fe   : > { %v5334_v50 = vpop.f32.mrb[61].mxu0  ;;  %5660 = vst [vmem:[%s10232_s8 + $0x1d8] sm:$0xff] %v6352_v52  ;;  %v6355_v20 = vadd.f32 %v2961_v27, %v10222_v2 }
 0x3ff   : > { %v6354_v15 = vadd.f32 %v6353_v60, %v5332_v41 }
 0x400   : > { %v6356_v4 = vadd.f32 %v6355_v20, %v5334_v50  ;;  %v2969_v53 = vpop.f32.mrb[62].mxu1 }
 0x401   : > { %v5340_v58 = vpop.f32.mrb[62].mxu0  ;;  %5661 = vst [vmem:[%s10232_s8 + $0x1e0] sm:$0xff] %v6354_v15  ;;  %v6357_v54 = vadd.f32 %v2969_v53, %v10218_v39  ;;  %v2971_v38 = vpop.f32.mrb[63].mxu1 }
 0x402   : > { %v5342_v12 = vpop.f32.mrb[63].mxu0  ;;  %5662 = vst [vmem:[%s10232_s8 + $0x1e8] sm:$0xff] %v6356_v4  ;;  %v6359_v8 = vadd.f32 %v2971_v38, %v10222_v2 }
 0x403   : > { %v6358_v26 = vadd.f32 %v6357_v54, %v5340_v58 }
 0x404   : > { %v6360_v3 = vadd.f32 %v6359_v8, %v5342_v12  ;;  %v2979_v17 = vpop.f32.mrb[64].mxu1 }
 0x405   : > { %v5348_v6 = vpop.f32.mrb[64].mxu0  ;;  %5663 = vst [vmem:[%s10232_s8 + $0x1f0] sm:$0xff] %v6358_v26  ;;  %v6361_v28 = vadd.f32 %v2979_v17, %v10218_v39  ;;  %v2981_v45 = vpop.f32.mrb[65].mxu1 }
 0x406   : > { %v5350_v9 = vpop.f32.mrb[65].mxu0  ;;  %5664 = vst [vmem:[%s10232_s8 + $0x1f8] sm:$0xff] %v6360_v3  ;;  %v6363_v1 = vadd.f32 %v2981_v45, %v10222_v2 }
 0x407   : > { %v6362_v61 = vadd.f32 %v6361_v28, %v5348_v6 }
 0x408   : > { %v6364_v35 = vadd.f32 %v6363_v1, %v5350_v9  ;;  %v2989_v25 = vpop.f32.mrb[66].mxu1 }
 0x409   : > { %v5356_v47 = vpop.f32.mrb[66].mxu0  ;;  %5665 = vst [vmem:[%s10232_s8 + $0x200] sm:$0xff] %v6362_v61  ;;  %v6365_v32 = vadd.f32 %v2989_v25, %v10218_v39  ;;  %v2991_v49 = vpop.f32.mrb[67].mxu1 }
 0x40a   : > { %v5358_v29 = vpop.f32.mrb[67].mxu0  ;;  %5666 = vst [vmem:[%s10232_s8 + $0x208] sm:$0xff] %v6364_v35  ;;  %v6367_v62 = vadd.f32 %v2991_v49, %v10222_v2 }
 0x40b   : > { %v6366_v36 = vadd.f32 %v6365_v32, %v5356_v47 }
 0x40c   : > { %v6368_v44 = vadd.f32 %v6367_v62, %v5358_v29  ;;  %v2999_v56 = vpop.f32.mrb[68].mxu1 }
 0x40d   : > { %v5364_v0 = vpop.f32.mrb[68].mxu0  ;;  %5667 = vst [vmem:[%s10232_s8 + $0x210] sm:$0xff] %v6366_v36  ;;  %v6369_v11 = vadd.f32 %v2999_v56, %v10218_v39  ;;  %v3001_v23 = vpop.f32.mrb[69].mxu1 }
 0x40e   : > { %v5366_v57 = vpop.f32.mrb[69].mxu0  ;;  %5668 = vst [vmem:[%s10232_s8 + $0x218] sm:$0xff] %v6368_v44  ;;  %v6371_v63 = vadd.f32 %v3001_v23, %v10222_v2 }
 0x40f   : > { %v6370_v55 = vadd.f32 %v6369_v11, %v5364_v0 }
 0x410   : > { %v6372_v46 = vadd.f32 %v6371_v63, %v5366_v57  ;;  %v3009_v10 = vpop.f32.mrb[70].mxu1 }
 0x411   : > { %v5372_v42 = vpop.f32.mrb[70].mxu0  ;;  %5669 = vst [vmem:[%s10232_s8 + $0x220] sm:$0xff] %v6370_v55  ;;  %v6373_v33 = vadd.f32 %v3009_v10, %v10218_v39  ;;  %v3011_v59 = vpop.f32.mrb[71].mxu1 }
 0x412   : > { %v5374_v51 = vpop.f32.mrb[71].mxu0  ;;  %5670 = vst [vmem:[%s10232_s8 + $0x228] sm:$0xff] %v6372_v46  ;;  %v6375_v5 = vadd.f32 %v3011_v59, %v10222_v2 }
 0x413   : > { %v6374_v31 = vadd.f32 %v6373_v33, %v5372_v42 }
 0x414   : > { %v6376_v34 = vadd.f32 %v6375_v5, %v5374_v51  ;;  %v3019_v13 = vpop.f32.mrb[72].mxu1 }
 0x415   : > { %v5380_v21 = vpop.f32.mrb[72].mxu0  ;;  %5671 = vst [vmem:[%s10232_s8 + $0x230] sm:$0xff] %v6374_v31  ;;  %v6377_v14 = vadd.f32 %v3019_v13, %v10218_v39  ;;  %v3021_v22 = vpop.f32.mrb[73].mxu1 }
 0x416   : > { %v5382_v37 = vpop.f32.mrb[73].mxu0  ;;  %5672 = vst [vmem:[%s10232_s8 + $0x238] sm:$0xff] %v6376_v34  ;;  %v6379_v19 = vadd.f32 %v3021_v22, %v10222_v2 }
 0x417   : > { %v6378_v18 = vadd.f32 %v6377_v14, %v5380_v21 }
 0x418   : > { %v6380_v24 = vadd.f32 %v6379_v19, %v5382_v37  ;;  %v3029_v7 = vpop.f32.mrb[74].mxu1 }
 0x419   : > { %v5388_v30 = vpop.f32.mrb[74].mxu0  ;;  %5673 = vst [vmem:[%s10232_s8 + $0x240] sm:$0xff] %v6378_v18  ;;  %v6381_v43 = vadd.f32 %v3029_v7, %v10218_v39  ;;  %v3031_v16 = vpop.f32.mrb[75].mxu1 }
 0x41a   : > { %v5390_v48 = vpop.f32.mrb[75].mxu0  ;;  %5674 = vst [vmem:[%s10232_s8 + $0x248] sm:$0xff] %v6380_v24  ;;  %v6383_v52 = vadd.f32 %v3031_v16, %v10222_v2 }
 0x41b   : > { %v6382_v40 = vadd.f32 %v6381_v43, %v5388_v30 }
 0x41c   : > { %v6384_v41 = vadd.f32 %v6383_v52, %v5390_v48  ;;  %v3039_v60 = vpop.f32.mrb[76].mxu1 }
 0x41d   : > { %v5396_v27 = vpop.f32.mrb[76].mxu0  ;;  %5675 = vst [vmem:[%s10232_s8 + $0x250] sm:$0xff] %v6382_v40  ;;  %v6385_v50 = vadd.f32 %v3039_v60, %v10218_v39  ;;  %v3041_v20 = vpop.f32.mrb[77].mxu1 }
 0x41e   : > { %v5398_v15 = vpop.f32.mrb[77].mxu0  ;;  %5676 = vst [vmem:[%s10232_s8 + $0x258] sm:$0xff] %v6384_v41  ;;  %v6387_v4 = vadd.f32 %v3041_v20, %v10222_v2 }
 0x41f   : > { %v6386_v53 = vadd.f32 %v6385_v50, %v5396_v27 }
 0x420   : > { %v6388_v58 = vadd.f32 %v6387_v4, %v5398_v15  ;;  %v3049_v54 = vpop.f32.mrb[78].mxu1 }
 0x421   : > { %v5404_v38 = vpop.f32.mrb[78].mxu0  ;;  %5677 = vst [vmem:[%s10232_s8 + $0x260] sm:$0xff] %v6386_v53  ;;  %v6389_v12 = vadd.f32 %v3049_v54, %v10218_v39  ;;  %v3051_v8 = vpop.f32.mrb[79].mxu1 }
 0x422   : > { %v5406_v26 = vpop.f32.mrb[79].mxu0  ;;  %5678 = vst [vmem:[%s10232_s8 + $0x268] sm:$0xff] %v6388_v58  ;;  %v6391_v3 = vadd.f32 %v3051_v8, %v10222_v2 }
 0x423   : > { %v6390_v17 = vadd.f32 %v6389_v12, %v5404_v38 }
 0x424   : > { %v6392_v6 = vadd.f32 %v6391_v3, %v5406_v26  ;;  %v3059_v28 = vpop.f32.mrb[80].mxu1 }
 0x425   : > { %v5412_v45 = vpop.f32.mrb[80].mxu0  ;;  %5679 = vst [vmem:[%s10232_s8 + $0x270] sm:$0xff] %v6390_v17  ;;  %v6393_v9 = vadd.f32 %v3059_v28, %v10218_v39  ;;  %v3061_v1 = vpop.f32.mrb[81].mxu1 }
 0x426   : > { %v5414_v61 = vpop.f32.mrb[81].mxu0  ;;  %5680 = vst [vmem:[%s10232_s8 + $0x278] sm:$0xff] %v6392_v6  ;;  %v6395_v35 = vadd.f32 %v3061_v1, %v10222_v2 }
 0x427   : > { %v6394_v25 = vadd.f32 %v6393_v9, %v5412_v45 }
 0x428   : > { %v6396_v47 = vadd.f32 %v6395_v35, %v5414_v61  ;;  %v3069_v32 = vpop.f32.mrb[82].mxu1 }
 0x429   : > { %v5420_v49 = vpop.f32.mrb[82].mxu0  ;;  %5681 = vst [vmem:[%s10232_s8 + $0x280] sm:$0xff] %v6394_v25  ;;  %v6397_v29 = vadd.f32 %v3069_v32, %v10218_v39  ;;  %v3071_v62 = vpop.f32.mrb[83].mxu1 }
 0x42a   : > { %v5422_v36 = vpop.f32.mrb[83].mxu0  ;;  %5682 = vst [vmem:[%s10232_s8 + $0x288] sm:$0xff] %v6396_v47  ;;  %v6399_v44 = vadd.f32 %v3071_v62, %v10222_v2 }
 0x42b   : > { %v6398_v56 = vadd.f32 %v6397_v29, %v5420_v49 }
 0x42c   : > { %v6400_v0 = vadd.f32 %v6399_v44, %v5422_v36  ;;  %v3079_v11 = vpop.f32.mrb[84].mxu1 }
 0x42d   : > { %v5428_v23 = vpop.f32.mrb[84].mxu0  ;;  %5683 = vst [vmem:[%s10232_s8 + $0x290] sm:$0xff] %v6398_v56  ;;  %v6401_v57 = vadd.f32 %v3079_v11, %v10218_v39  ;;  %v3081_v63 = vpop.f32.mrb[85].mxu1 }
 0x42e   : > { %v5430_v55 = vpop.f32.mrb[85].mxu0  ;;  %5684 = vst [vmem:[%s10232_s8 + $0x298] sm:$0xff] %v6400_v0  ;;  %v6403_v46 = vadd.f32 %v3081_v63, %v10222_v2 }
 0x42f   : > { %v6402_v10 = vadd.f32 %v6401_v57, %v5428_v23 }
 0x430   : > { %v6404_v42 = vadd.f32 %v6403_v46, %v5430_v55  ;;  %v3089_v33 = vpop.f32.mrb[86].mxu1 }
 0x431   : > { %v5436_v59 = vpop.f32.mrb[86].mxu0  ;;  %5685 = vst [vmem:[%s10232_s8 + $0x2a0] sm:$0xff] %v6402_v10  ;;  %v6405_v51 = vadd.f32 %v3089_v33, %v10218_v39  ;;  %v3091_v5 = vpop.f32.mrb[87].mxu1 }
 0x432   : > { %v5438_v31 = vpop.f32.mrb[87].mxu0  ;;  %5686 = vst [vmem:[%s10232_s8 + $0x2a8] sm:$0xff] %v6404_v42  ;;  %v6407_v34 = vadd.f32 %v3091_v5, %v10222_v2 }
 0x433   : > { %v6406_v13 = vadd.f32 %v6405_v51, %v5436_v59 }
 0x434   : > { %v6408_v21 = vadd.f32 %v6407_v34, %v5438_v31  ;;  %v3099_v14 = vpop.f32.mrb[88].mxu1 }
 0x435   : > { %v5444_v22 = vpop.f32.mrb[88].mxu0  ;;  %5687 = vst [vmem:[%s10232_s8 + $0x2b0] sm:$0xff] %v6406_v13  ;;  %v6409_v37 = vadd.f32 %v3099_v14, %v10218_v39  ;;  %v3101_v19 = vpop.f32.mrb[89].mxu1 }
 0x436   : > { %v5446_v18 = vpop.f32.mrb[89].mxu0  ;;  %5688 = vst [vmem:[%s10232_s8 + $0x2b8] sm:$0xff] %v6408_v21  ;;  %v6411_v24 = vadd.f32 %v3101_v19, %v10222_v2 }
 0x437   : > { %v6410_v7 = vadd.f32 %v6409_v37, %v5444_v22 }
 0x438   : > { %v6412_v30 = vadd.f32 %v6411_v24, %v5446_v18  ;;  %v3109_v43 = vpop.f32.mrb[90].mxu1 }
 0x439   : > { %v5452_v16 = vpop.f32.mrb[90].mxu0  ;;  %5689 = vst [vmem:[%s10232_s8 + $0x2c0] sm:$0xff] %v6410_v7  ;;  %v6413_v48 = vadd.f32 %v3109_v43, %v10218_v39  ;;  %v3111_v52 = vpop.f32.mrb[91].mxu1 }
 0x43a   : > { %v5454_v40 = vpop.f32.mrb[91].mxu0  ;;  %5690 = vst [vmem:[%s10232_s8 + $0x2c8] sm:$0xff] %v6412_v30  ;;  %v6415_v41 = vadd.f32 %v3111_v52, %v10222_v2 }
 0x43b   : > { %v6414_v60 = vadd.f32 %v6413_v48, %v5452_v16 }
 0x43c   : > { %v6416_v27 = vadd.f32 %v6415_v41, %v5454_v40  ;;  %v3119_v50 = vpop.f32.mrb[92].mxu1 }
 0x43d   : > { %v5460_v20 = vpop.f32.mrb[92].mxu0  ;;  %5691 = vst [vmem:[%s10232_s8 + $0x2d0] sm:$0xff] %v6414_v60  ;;  %v6417_v15 = vadd.f32 %v3119_v50, %v10218_v39  ;;  %v3121_v4 = vpop.f32.mrb[93].mxu1 }
 0x43e   : > { %v5462_v53 = vpop.f32.mrb[93].mxu0  ;;  %5692 = vst [vmem:[%s10232_s8 + $0x2d8] sm:$0xff] %v6416_v27  ;;  %v6419_v58 = vadd.f32 %v3121_v4, %v10222_v2 }
 0x43f   : > { %v6418_v54 = vadd.f32 %v6417_v15, %v5460_v20 }
 0x440   : > { %v6420_v38 = vadd.f32 %v6419_v58, %v5462_v53  ;;  %v3129_v12 = vpop.f32.mrb[94].mxu1 }
 0x441   : > { %v5468_v8 = vpop.f32.mrb[94].mxu0  ;;  %5693 = vst [vmem:[%s10232_s8 + $0x2e0] sm:$0xff] %v6418_v54  ;;  %v6421_v26 = vadd.f32 %v3129_v12, %v10218_v39  ;;  %v3131_v3 = vpop.f32.mrb[95].mxu1 }
 0x442   : > { %v5470_v17 = vpop.f32.mrb[95].mxu0  ;;  %5694 = vst [vmem:[%s10232_s8 + $0x2e8] sm:$0xff] %v6420_v38  ;;  %v6423_v6 = vadd.f32 %v3131_v3, %v10222_v2 }
 0x443   : > { %v6422_v28 = vadd.f32 %v6421_v26, %v5468_v8 }
 0x444   : > { %v6424_v45 = vadd.f32 %v6423_v6, %v5470_v17  ;;  %v3139_v9 = vpop.f32.mrb[96].mxu1 }
 0x445   : > { %v5476_v1 = vpop.f32.mrb[96].mxu0  ;;  %5695 = vst [vmem:[%s10232_s8 + $0x2f0] sm:$0xff] %v6422_v28  ;;  %v6425_v61 = vadd.f32 %v3139_v9, %v10218_v39  ;;  %v3141_v35 = vpop.f32.mrb[97].mxu1 }
 0x446   : > { %v5478_v25 = vpop.f32.mrb[97].mxu0  ;;  %5696 = vst [vmem:[%s10232_s8 + $0x2f8] sm:$0xff] %v6424_v45  ;;  %v6427_v47 = vadd.f32 %v3141_v35, %v10222_v2 }
 0x447   : > { %v6426_v32 = vadd.f32 %v6425_v61, %v5476_v1 }
 0x448   : > { %v6428_v49 = vadd.f32 %v6427_v47, %v5478_v25  ;;  %v3149_v29 = vpop.f32.mrb[98].mxu1 }
 0x449   : > { %v5484_v62 = vpop.f32.mrb[98].mxu0  ;;  %5697 = vst [vmem:[%s10232_s8 + $0x300] sm:$0xff] %v6426_v32  ;;  %v6429_v36 = vadd.f32 %v3149_v29, %v10218_v39  ;;  %v3151_v44 = vpop.f32.mrb[99].mxu1 }
 0x44a   : > { %v5486_v56 = vpop.f32.mrb[99].mxu0  ;;  %5698 = vst [vmem:[%s10232_s8 + $0x308] sm:$0xff] %v6428_v49  ;;  %v6431_v0 = vadd.f32 %v3151_v44, %v10222_v2 }
 0x44b   : > { %v6430_v11 = vadd.f32 %v6429_v36, %v5484_v62 }
 0x44c   : > { %v6432_v23 = vadd.f32 %v6431_v0, %v5486_v56  ;;  %v3159_v57 = vpop.f32.mrb[100].mxu1 }
 0x44d   : > { %v5492_v63 = vpop.f32.mrb[100].mxu0  ;;  %5699 = vst [vmem:[%s10232_s8 + $0x310] sm:$0xff] %v6430_v11  ;;  %v6433_v55 = vadd.f32 %v3159_v57, %v10218_v39  ;;  %v3161_v46 = vpop.f32.mrb[101].mxu1 }
 0x44e   : > { %v5494_v10 = vpop.f32.mrb[101].mxu0  ;;  %5700 = vst [vmem:[%s10232_s8 + $0x318] sm:$0xff] %v6432_v23  ;;  %v6435_v42 = vadd.f32 %v3161_v46, %v10222_v2 }
 0x44f   : > { %v6434_v33 = vadd.f32 %v6433_v55, %v5492_v63 }
 0x450   : > { %v6436_v59 = vadd.f32 %v6435_v42, %v5494_v10  ;;  %v3169_v51 = vpop.f32.mrb[102].mxu1 }
 0x451   : > { %v5500_v5 = vpop.f32.mrb[102].mxu0  ;;  %5701 = vst [vmem:[%s10232_s8 + $0x320] sm:$0xff] %v6434_v33  ;;  %v6437_v31 = vadd.f32 %v3169_v51, %v10218_v39  ;;  %v3171_v34 = vpop.f32.mrb[103].mxu1 }
 0x452   : > { %v5502_v13 = vpop.f32.mrb[103].mxu0  ;;  %5702 = vst [vmem:[%s10232_s8 + $0x328] sm:$0xff] %v6436_v59  ;;  %v6439_v21 = vadd.f32 %v3171_v34, %v10222_v2 }
 0x453   : > { %v6438_v14 = vadd.f32 %v6437_v31, %v5500_v5 }
 0x454   : > { %v6440_v22 = vadd.f32 %v6439_v21, %v5502_v13  ;;  %v3179_v37 = vpop.f32.mrb[104].mxu1 }
 0x455   : > { %v5508_v19 = vpop.f32.mrb[104].mxu0  ;;  %5703 = vst [vmem:[%s10232_s8 + $0x330] sm:$0xff] %v6438_v14  ;;  %v6441_v18 = vadd.f32 %v3179_v37, %v10218_v39  ;;  %v3181_v24 = vpop.f32.mrb[105].mxu1 }
 0x456   : > { %v5510_v7 = vpop.f32.mrb[105].mxu0  ;;  %5704 = vst [vmem:[%s10232_s8 + $0x338] sm:$0xff] %v6440_v22  ;;  %v6443_v30 = vadd.f32 %v3181_v24, %v10222_v2 }
 0x457   : > { %v6442_v43 = vadd.f32 %v6441_v18, %v5508_v19 }
 0x458   : > { %v6444_v16 = vadd.f32 %v6443_v30, %v5510_v7  ;;  %v3189_v48 = vpop.f32.mrb[106].mxu1 }
 0x459   : > { %v5516_v52 = vpop.f32.mrb[106].mxu0  ;;  %5705 = vst [vmem:[%s10232_s8 + $0x340] sm:$0xff] %v6442_v43  ;;  %v6445_v40 = vadd.f32 %v3189_v48, %v10218_v39  ;;  %v3191_v41 = vpop.f32.mrb[107].mxu1 }
 0x45a   : > { %v5518_v60 = vpop.f32.mrb[107].mxu0  ;;  %5706 = vst [vmem:[%s10232_s8 + $0x348] sm:$0xff] %v6444_v16  ;;  %v6447_v27 = vadd.f32 %v3191_v41, %v10222_v2 }
 0x45b   : > { %v6446_v50 = vadd.f32 %v6445_v40, %v5516_v52 }
 0x45c   : > { %v6448_v20 = vadd.f32 %v6447_v27, %v5518_v60  ;;  %v3199_v15 = vpop.f32.mrb[108].mxu1 }
 0x45d   : > { %v5524_v4 = vpop.f32.mrb[108].mxu0  ;;  %5707 = vst [vmem:[%s10232_s8 + $0x350] sm:$0xff] %v6446_v50  ;;  %v6449_v53 = vadd.f32 %v3199_v15, %v10218_v39  ;;  %v3201_v58 = vpop.f32.mrb[109].mxu1 }
 0x45e   : > { %v5526_v54 = vpop.f32.mrb[109].mxu0  ;;  %5708 = vst [vmem:[%s10232_s8 + $0x358] sm:$0xff] %v6448_v20  ;;  %v6451_v38 = vadd.f32 %v3201_v58, %v10222_v2 }
 0x45f   : > { %v6450_v12 = vadd.f32 %v6449_v53, %v5524_v4 }
 0x460   : > { %v6452_v8 = vadd.f32 %v6451_v38, %v5526_v54  ;;  %v3209_v26 = vpop.f32.mrb[110].mxu1 }
 0x461   : > { %v5532_v3 = vpop.f32.mrb[110].mxu0  ;;  %5709 = vst [vmem:[%s10232_s8 + $0x360] sm:$0xff] %v6450_v12  ;;  %v6453_v17 = vadd.f32 %v3209_v26, %v10218_v39  ;;  %v3211_v6 = vpop.f32.mrb[111].mxu1 }
 0x462   : > { %v5534_v28 = vpop.f32.mrb[111].mxu0  ;;  %5710 = vst [vmem:[%s10232_s8 + $0x368] sm:$0xff] %v6452_v8  ;;  %v6455_v45 = vadd.f32 %v3211_v6, %v10222_v2 }
 0x463   : > { %v6454_v9 = vadd.f32 %v6453_v17, %v5532_v3 }
 0x464   : > { %v6456_v1 = vadd.f32 %v6455_v45, %v5534_v28  ;;  %v3219_v61 = vpop.f32.mrb[112].mxu1 }
 0x465   : > { %v5540_v35 = vpop.f32.mrb[112].mxu0  ;;  %5711 = vst [vmem:[%s10232_s8 + $0x370] sm:$0xff] %v6454_v9  ;;  %v6457_v25 = vadd.f32 %v3219_v61, %v10218_v39  ;;  %v3221_v47 = vpop.f32.mrb[113].mxu1 }
 0x466   : > { %v5542_v32 = vpop.f32.mrb[113].mxu0  ;;  %5712 = vst [vmem:[%s10232_s8 + $0x378] sm:$0xff] %v6456_v1  ;;  %v6459_v49 = vadd.f32 %v3221_v47, %v10222_v2 }
 0x467   : > { %v6458_v29 = vadd.f32 %v6457_v25, %v5540_v35 }
 0x468   : > { %v6460_v62 = vadd.f32 %v6459_v49, %v5542_v32  ;;  %v3229_v36 = vpop.f32.mrb[114].mxu1 }
 0x469   : > { %v5548_v44 = vpop.f32.mrb[114].mxu0  ;;  %5713 = vst [vmem:[%s10232_s8 + $0x380] sm:$0xff] %v6458_v29  ;;  %v6461_v56 = vadd.f32 %v3229_v36, %v10218_v39  ;;  %v3231_v0 = vpop.f32.mrb[115].mxu1 }
 0x46a   : > { %v5550_v11 = vpop.f32.mrb[115].mxu0  ;;  %5714 = vst [vmem:[%s10232_s8 + $0x388] sm:$0xff] %v6460_v62  ;;  %v6463_v23 = vadd.f32 %v3231_v0, %v10222_v2 }
 0x46b   : > { %v6462_v57 = vadd.f32 %v6461_v56, %v5548_v44 }
 0x46c   : > { %v6464_v63 = vadd.f32 %v6463_v23, %v5550_v11  ;;  %v3239_v55 = vpop.f32.mrb[116].mxu1 }
 0x46d   : > { %v5556_v46 = vpop.f32.mrb[116].mxu0  ;;  %5715 = vst [vmem:[%s10232_s8 + $0x390] sm:$0xff] %v6462_v57  ;;  %v6465_v10 = vadd.f32 %v3239_v55, %v10218_v39  ;;  %v3241_v42 = vpop.f32.mrb[117].mxu1 }
 0x46e   : > { %v5558_v33 = vpop.f32.mrb[117].mxu0  ;;  %5716 = vst [vmem:[%s10232_s8 + $0x398] sm:$0xff] %v6464_v63  ;;  %v6467_v59 = vadd.f32 %v3241_v42, %v10222_v2 }
 0x46f   : > { %v6466_v51 = vadd.f32 %v6465_v10, %v5556_v46 }
 0x470   : > { %v6468_v5 = vadd.f32 %v6467_v59, %v5558_v33  ;;  %v3249_v31 = vpop.f32.mrb[118].mxu1 }
 0x471   : > { %v5564_v34 = vpop.f32.mrb[118].mxu0  ;;  %5717 = vst [vmem:[%s10232_s8 + $0x3a0] sm:$0xff] %v6466_v51  ;;  %v6469_v13 = vadd.f32 %v3249_v31, %v10218_v39  ;;  %v3251_v21 = vpop.f32.mrb[119].mxu1 }
 0x472   : > { %v5566_v14 = vpop.f32.mrb[119].mxu0  ;;  %5718 = vst [vmem:[%s10232_s8 + $0x3a8] sm:$0xff] %v6468_v5  ;;  %v6471_v22 = vadd.f32 %v3251_v21, %v10222_v2 }
 0x473   : > { %v6470_v37 = vadd.f32 %v6469_v13, %v5564_v34 }
 0x474   : > { %v6472_v19 = vadd.f32 %v6471_v22, %v5566_v14  ;;  %v3259_v18 = vpop.f32.mrb[120].mxu1 }
 0x475   : > { %v5572_v24 = vpop.f32.mrb[120].mxu0  ;;  %5719 = vst [vmem:[%s10232_s8 + $0x3b0] sm:$0xff] %v6470_v37  ;;  %v6473_v7 = vadd.f32 %v3259_v18, %v10218_v39  ;;  %v3261_v30 = vpop.f32.mrb[121].mxu1 }
 0x476   : > { %v5574_v43 = vpop.f32.mrb[121].mxu0  ;;  %5720 = vst [vmem:[%s10232_s8 + $0x3b8] sm:$0xff] %v6472_v19  ;;  %v6475_v16 = vadd.f32 %v3261_v30, %v10222_v2 }
 0x477   : > { %v6474_v48 = vadd.f32 %v6473_v7, %v5572_v24 }
 0x478   : > { %v6476_v52 = vadd.f32 %v6475_v16, %v5574_v43  ;;  %v3269_v40 = vpop.f32.mrb[122].mxu1 }
 0x479   : > { %v5580_v41 = vpop.f32.mrb[122].mxu0  ;;  %5721 = vst [vmem:[%s10232_s8 + $0x3c0] sm:$0xff] %v6474_v48  ;;  %v6477_v60 = vadd.f32 %v3269_v40, %v10218_v39  ;;  %v3271_v27 = vpop.f32.mrb[123].mxu1 }
 0x47a   : > { %v5582_v50 = vpop.f32.mrb[123].mxu0  ;;  %5722 = vst [vmem:[%s10232_s8 + $0x3c8] sm:$0xff] %v6476_v52  ;;  %v6479_v20 = vadd.f32 %v3271_v27, %v10222_v2 }
 0x47b   : > { %v6478_v15 = vadd.f32 %v6477_v60, %v5580_v41 }
 0x47c   : > { %v6480_v4 = vadd.f32 %v6479_v20, %v5582_v50  ;;  %v3279_v53 = vpop.f32.mrb[124].mxu1 }
 0x47d   : > { %v5588_v58 = vpop.f32.mrb[124].mxu0  ;;  %5723 = vst [vmem:[%s10232_s8 + $0x3d0] sm:$0xff] %v6478_v15  ;;  %v6481_v54 = vadd.f32 %v3279_v53, %v10218_v39  ;;  %v3281_v38 = vpop.f32.mrb[125].mxu1 }
 0x47e   : > { %v5590_v12 = vpop.f32.mrb[125].mxu0  ;;  %5724 = vst [vmem:[%s10232_s8 + $0x3d8] sm:$0xff] %v6480_v4  ;;  %v6483_v8 = vadd.f32 %v3281_v38, %v10222_v2 }
 0x47f   : > { %v6482_v26 = vadd.f32 %v6481_v54, %v5588_v58 }
 0x480   : > { %v6484_v3 = vadd.f32 %v6483_v8, %v5590_v12  ;;  %v3289_v17 = vpop.f32.mrb[126].mxu1 }
 0x481   : > { %v5596_v6 = vpop.f32.mrb[126].mxu0  ;;  %5725 = vst [vmem:[%s10232_s8 + $0x3e0] sm:$0xff] %v6482_v26  ;;  %v6485_v28 = vadd.f32 %v3289_v17, %v10218_v39  ;;  %v3291_v45 = vpop.f32.mrb[127].mxu1 }
 0x482   : > { %v5598_v9 = vpop.f32.mrb[127].mxu0  ;;  %5726 = vst [vmem:[%s10232_s8 + $0x3e8] sm:$0xff] %v6484_v3  ;;  %v6487_v1 = vadd.f32 %v3291_v45, %v10222_v2 }
 0x483   : > { %v6486_v61 = vadd.f32 %v6485_v28, %v5596_v6 }
 0x484   : > { %v6488_v35 = vadd.f32 %v6487_v1, %v5598_v9 }
 0x485   : > { %5727 = vst [vmem:[%s10232_s8 + $0x3f0] sm:$0xff] %v6486_v61 }
 0x486   : > { %5728 = vst [vmem:[%s10232_s8 + $0x3f8] sm:$0xff] %v6488_v35 }
 0x487   : > { %7133 = shalt.err (!%p7130_p7)
}
 0x488   : > { %s7134_s30 = scalar_lea.hbm %s10529_s11, 16384  ;;  %s7138_s10 = scalar_lea.hbm %s10580_s3, 32768 }
 0x489   : > { %p7135_p9 = scmp.ne.s32.totalorder %s10529_s11, %s7134_s30  ;;  %p7139_p5 = scmp.lt.u32.totalorder %s10529_s11, %s10580_s3 }
 0x48a   : > { %p7140_p11 = scmp.lt.u32.totalorder %s7138_s10, %s7134_s30  ;;  %p7142_p4 = scmp.lt.u32.totalorder %s7134_s30, %s10529_s11 }
 0x48b   : > { %p7136_p1 = pnand %p7135_p9, %p7313_p12 }
 0x48c   : > { %p7141_p2 = por %p7140_p11, %p7139_p5 }
 0x48d   : > { %p7137_p0 = pneg %p7136_p1 }
 0x48e   : > { %p7143_p6 = por %p7142_p4, %p7141_p2 }
 0x490   : > { %p7144_p8 = pnand %p7143_p6, %p7137_p0 }
 0x492   : > { %7147 = shalt.err (!%p7144_p8)
}
 0x493   : > { %s7197_s20 = smov 256   ;;  %s7198_s8 = smov 16  }
 0x494   : > { %7007 = dma.vmem_to_hbm [thread:$0]  (%p7313_p12), %s10531_s4, 16384, %s10529_s11, %s5730_s16, %s7197_s20, %s7197_s20, %s7198_s8  }
 0x495 PF: > { %s5759_s9 = sand.u32 1, %s7178_s12   ;;  %p12172_p10 = scmp.ne.s32.totalorder %s11160_s19, 0 }
 0x496   : > { %p12173_p13 = scmp.ge.s32.totalorder %s7190_s15, 2  ;;  %s5760_s25 = scalar_lea.sflag [#allocation4], %s5759_s9 }
 0x498   : > { %p7018_p3 = pnand %p12173_p13, %p12172_p10 }
 0x49a   : > { %7173 = dma.done.wait (!%p7018_p3), %s5760_s25, 16384  }
 0x49b   : > { %7175 = vsyncadd (!%p7018_p3), %s5760_s25, 4294950912  ;;  %p17_p7 = scmp.ge.s32.totalorder %s7275_s24, 4   ;;  %s12174_s12 = smov %s7182_s13 }
 0x49c   : > { %s12175_s13 = smov %s7186_s14  ;;  %s12176_s14 = smov %s7309_s17 }
 0x49d   : > { %s12177_s15 = smov %s7275_s24  ;;  %19 = sbr.rel (!%p17_p7) target bundleno = 6 (0x6), region = 81 }
 0x4a4   :  { %5765 = vsyncpa [#allocation3], 1 }
 0x4a5   :  { %5767 = vsyncpa [#allocation3 + $0x1], 1 }
 0x4a6   :  { %5768 = vsyncpa [#allocation6], 1 }
 0x4a7   :  { %5769 = vsyncpa [#allocation4], 1 }
 0x4a8   :  { %5771 = vsyncpa [#allocation4 + $0x1], 1 }

</bundles_post_ra>
